<compile_context>
chip_gen: v5e
topology: v5e:2x2
jax: 0.10.0
libtpu: 0.0.40
codegen_flags: <defaults>
</compile_context>

<pallas_src>
import jax
import jax.numpy as jnp
from jax import lax
from jax.experimental import pallas as pl
from jax.experimental.pallas import tpu as pltpu

LANE = 128


def basic_block_kernel(x_ref, w1_ref, w2_ref, bn_ref, o_ref, yp_ref):
    """One (batch, row-tile) per grid step.

    x_ref : (1, H+4, W+2, Cp) bf16  zero-padded image (2 rows / 1 col halo), full image per b
    w*_ref: (9*Cp, Cp)        bf16  im2col-folded conv weights
    bn_ref: (4, Cp)           f32   rows = [scale1, bias1, scale2, bias2]
    o_ref : (1, TH, W, Cp)    f32   output row tile
    yp_ref: (TH+2, W+2, Cp)   bf16  conv1 activation staging (with W halo)
    """
    _, TH, W, Cp = o_ref.shape
    t = pl.program_id(1)
    row0 = pl.multiple_of(t * TH, TH)

    # x slab covering this tile's receptive field: padded rows [t*TH, t*TH+TH+4).
    xs = x_ref[0, pl.ds(row0, TH + 4), :, :]                    # (TH+4, W+2, Cp) bf16

    # ---- conv1 as a single im2col matmul: M=(TH+2)*W, K=9*Cp, N=Cp ----
    taps1 = [xs[kh:kh + TH + 2, kw:kw + W, :]
             for kh in range(3) for kw in range(3)]
    p1 = jnp.concatenate(taps1, axis=-1).reshape((TH + 2) * W, 9 * Cp)
    acc1 = jnp.dot(p1, w1_ref[...], preferred_element_type=jnp.float32)

    # ---- bn1 (folded) + relu in f32, cast to bf16 for conv2's MXU input ----
    y = jnp.maximum(acc1 * bn_ref[0:1, :] + bn_ref[1:2, :], 0.0)
    y3 = y.astype(jnp.bfloat16).reshape(TH + 2, W, Cp)

    # ---- stage y (+ W zero halo) for conv2; only the 2 border columns get zeroed ----
    yp_ref[:, 0:1, :] = jnp.zeros((TH + 2, 1, Cp), jnp.bfloat16)
    yp_ref[:, W + 1:W + 2, :] = jnp.zeros((TH + 2, 1, Cp), jnp.bfloat16)
    yp_ref[:, 1:W + 1, :] = y3

    @pl.when(t == 0)
    def _zero_top():        # y row "-1" is conv2's zero padding, not conv1 output
        yp_ref[0:1, :, :] = jnp.zeros((1, W + 2, Cp), jnp.bfloat16)

    @pl.when(t == pl.num_programs(1) - 1)
    def _zero_bottom():     # y row "H" likewise
        yp_ref[TH + 1:TH + 2, :, :] = jnp.zeros((1, W + 2, Cp), jnp.bfloat16)

    # ---- conv2 as a single im2col matmul: M=TH*W, K=9*Cp, N=Cp ----
    taps2 = [yp_ref[kh:kh + TH, kw:kw + W, :]
             for kh in range(3) for kw in range(3)]
    p2 = jnp.concatenate(taps2, axis=-1).reshape(TH * W, 9 * Cp)
    acc2 = jnp.dot(p2, w2_ref[...], preferred_element_type=jnp.float32)

    # ---- bn2 (folded) + residual (se = Identity, downsample = None) + relu, f32 ----
    out = acc2 * bn_ref[2:3, :] + bn_ref[3:4, :]
    ident = xs[2:TH + 2, 1:W + 1, :].astype(jnp.float32).reshape(TH * W, Cp)
    out = jnp.maximum(out + ident, 0.0)
    o_ref[...] = out.reshape(1, TH, W, Cp)


def fold_bn(gamma, beta, mean, var, eps=1e-5):
    scale = gamma / jnp.sqrt(var + eps)
    bias = beta - mean * scale
    return scale, bias


def basic_block_forward(x_nchw, w1_hwio, s1, b1, w2_hwio, s2, b2):
    """NCHW in / NCHW out. Hot path (both convs, BN, relu, residual) runs in Pallas."""
    B, C, H, W = x_nchw.shape
    assert w1_hwio.shape == (3, 3, C, C) and w2_hwio.shape == (3, 3, C, C), (
        "BasicBlock identity path requires inplanes == planes, stride=1, no downsample")

    Cp = ((C + LANE - 1) // LANE) * LANE          # channels rounded up to 128 lanes
    TH = 8 if H % 8 == 0 else H                   # row tile (grid axis 1)
    T = H // TH
    # NOTE: at production sizes choose TH from a VMEM budget (v7x: ~32 MiB scoped)
    # and/or switch the x BlockSpec to a halo'd per-tile window instead of full-image.

    f32 = jnp.float32
    # Layout prep (fused into one XLA copy under jit): NCHW->NHWC, channel pad to Cp,
    # 2-row / 1-col zero halo, bf16 cast.
    x = jnp.transpose(x_nchw.astype(f32), (0, 2, 3, 1))
    x = jnp.pad(x, ((0, 0), (2, 2), (1, 1), (0, Cp - C))).astype(jnp.bfloat16)

    def prep_w(w):
        w = jnp.pad(w.astype(f32), ((0, 0), (0, 0), (0, Cp - C), (0, Cp - C)))
        return w.reshape(9 * Cp, Cp).astype(jnp.bfloat16)   # row block k = kh*3+kw

    w1 = prep_w(w1_hwio)
    w2 = prep_w(w2_hwio)

    def pad_c(v):
        return jnp.pad(v.reshape(-1).astype(f32), (0, Cp - C))

    bn = jnp.stack([pad_c(s1), pad_c(b1), pad_c(s2), pad_c(b2)], axis=0)   # (4, Cp)

    out_nhwc = pl.pallas_call(
        basic_block_kernel,
        out_shape=jax.ShapeDtypeStruct((B, H, W, Cp), jnp.float32),
        grid_spec=pltpu.PrefetchScalarGridSpec(
            num_scalar_prefetch=0,
            grid=(B, T),
            in_specs=[
                pl.BlockSpec((1, H + 4, W + 2, Cp), lambda b, t: (b, 0, 0, 0)),
                pl.BlockSpec((9 * Cp, Cp), lambda b, t: (0, 0)),
                pl.BlockSpec((9 * Cp, Cp), lambda b, t: (0, 0)),
                pl.BlockSpec((4, Cp), lambda b, t: (0, 0)),
            ],
            out_specs=pl.BlockSpec((1, TH, W, Cp), lambda b, t: (b, t, 0, 0)),
            scratch_shapes=[pltpu.VMEM((TH + 2, W + 2, Cp), jnp.bfloat16)],
        ),
        compiler_params=pltpu.CompilerParams(
            dimension_semantics=("parallel", "parallel")),
    )(x, w1, w2, bn)

    out = out_nhwc[..., :C]                       # drop channel padding
    return jnp.transpose(out, (0, 3, 1, 2))       # back to NCHW


def reference_forward(x_nchw, w1_hwio, s1, b1, w2_hwio, s2, b2):
    """Pure-JAX reference with the same bf16-rounded MXU inputs as the kernel."""
    f32 = jnp.float32
    x = jnp.transpose(x_nchw, (0, 2, 3, 1)).astype(f32)
    xr = x.astype(jnp.bfloat16).astype(f32)
    w1 = w1_hwio.astype(jnp.bfloat16).astype(f32)
    w2 = w2_hwio.astype(jnp.bfloat16).astype(f32)
    dn = ('NHWC', 'HWIO', 'NHWC')
    y = lax.conv_general_dilated(xr, w1, (1, 1), 'SAME', dimension_numbers=dn,
                                 precision=lax.Precision.HIGHEST)
    y = jnp.maximum(y * s1 + b1, 0.0)
    y = y.astype(jnp.bfloat16).astype(f32)        # matches kernel's bf16 conv2 input
    out = lax.conv_general_dilated(y, w2, (1, 1), 'SAME', dimension_numbers=dn,
                                   precision=lax.Precision.HIGHEST)
    out = out * s2 + b2
    out = jnp.maximum(out + xr, 0.0)
    return jnp.transpose(out, (0, 3, 1, 2))


if __name__ == "__main__":
    # BasicBlock(inplanes=4, planes=4, bn_norm="BN", stride=1, downsample=None)
    B, Cin, H, W = 2, 4, 16, 16
    planes = Cin

    key = jax.random.PRNGKey(0)
    ks = jax.random.split(key, 11)

    x = jax.random.normal(ks[0], (B, Cin, H, W), jnp.float32)      # NCHW like PyTorch

    # conv weights: PyTorch OIHW -> HWIO
    w1_oihw = jax.random.normal(ks[1], (planes, Cin, 3, 3), jnp.float32) * 0.1
    w2_oihw = jax.random.normal(ks[2], (planes, planes, 3, 3), jnp.float32) * 0.1
    w1_hwio = jnp.transpose(w1_oihw, (2, 3, 1, 0))
    w2_hwio = jnp.transpose(w2_oihw, (2, 3, 1, 0))

    # BatchNorm2d parameters (eval-mode semantics)
    g1 = 1.0 + 0.1 * jax.random.normal(ks[3], (planes,), jnp.float32)
    be1 = 0.1 * jax.random.normal(ks[4], (planes,), jnp.float32)
    m1 = 0.1 * jax.random.normal(ks[5], (planes,), jnp.float32)
    v1 = jnp.abs(jax.random.normal(ks[6], (planes,), jnp.float32)) + 0.5
    g2 = 1.0 + 0.1 * jax.random.normal(ks[7], (planes,), jnp.float32)
    be2 = 0.1 * jax.random.normal(ks[8], (planes,), jnp.float32)
    m2 = 0.1 * jax.random.normal(ks[9], (planes,), jnp.float32)
    v2 = jnp.abs(jax.random.normal(ks[10], (planes,), jnp.float32)) + 0.5

    s1, b1 = fold_bn(g1, be1, m1, v1)
    s2, b2 = fold_bn(g2, be2, m2, v2)

    fwd = jax.jit(basic_block_forward)
    out = jax.block_until_ready(fwd(x, w1_hwio, s1, b1, w2_hwio, s2, b2))

    ref = reference_forward(x, w1_hwio, s1, b1, w2_hwio, s2, b2)
    assert out.shape == (B, planes, H, W)
    max_err = float(jnp.max(jnp.abs(out - ref)))
    assert jnp.allclose(out, ref, atol=1e-2, rtol=1e-2), f"mismatch vs reference, max_err={max_err}"

    print("KERNEL_OK")
</pallas_src>

<mosaic_0001>
module attributes {stable_mosaic.version = 11 : i64} {
  func.func @basic_block_kernel(%arg0: i32, %arg1: i32, %arg2: memref<1x20x18x128xbf16, #tpu.memory_space<vmem>>, %arg3: memref<1152x128xbf16, #tpu.memory_space<vmem>>, %arg4: memref<1152x128xbf16, #tpu.memory_space<vmem>>, %arg5: memref<4x128xf32, #tpu.memory_space<vmem>>, %arg6: memref<1x8x16x128xf32, #tpu.memory_space<vmem>>, %arg7: memref<10x18x128xbf16, #tpu.memory_space<vmem>>) attributes {dimension_semantics = [#tpu.dimension_semantics<parallel>, #tpu.dimension_semantics<parallel>], iteration_bounds = array<i64: 2, 2>, scalar_prefetch = 0 : i64, scratch_operands = 1 : i64, tpu.core_type = #tpu.core_type<tc>, window_params = [{transform_indices = @transform_0, window_bounds = array<i64: 1, 20, 18, 128>}, {pipeline_mode = #tpu.pipeline_mode<synchronous>, transform_indices = @transform_1, window_bounds = array<i64: 1152, 128>}, {pipeline_mode = #tpu.pipeline_mode<synchronous>, transform_indices = @transform_2, window_bounds = array<i64: 1152, 128>}, {pipeline_mode = #tpu.pipeline_mode<synchronous>, transform_indices = @transform_3, window_bounds = array<i64: 4, 128>}, {transform_indices = @transform_4, window_bounds = array<i64: 1, 8, 16, 128>}]} {
    %c8_i32 = arith.constant 8 : i32
    %0 = arith.muli %arg1, %c8_i32 : i32
    %1 = tpu.assume_multiple %0, 8 : i32
    %c0 = arith.constant 0 : index
    %2 = arith.index_cast %1 : i32 to index
    %c0_0 = arith.constant 0 : index
    %c0_1 = arith.constant 0 : index
    %3 = vector.load %arg2[%c0, %2, %c0_0, %c0_1] : memref<1x20x18x128xbf16, #tpu.memory_space<vmem>>, vector<1x12x18x128xbf16>
    %4 = vector.shape_cast %3 : vector<1x12x18x128xbf16> to vector<12x18x128xbf16>
    %5 = vector.extract_strided_slice %4 {offsets = [0, 0, 0], sizes = [10, 16, 128], strides = [1, 1, 1]} : vector<12x18x128xbf16> to vector<10x16x128xbf16>
    %6 = vector.extract_strided_slice %4 {offsets = [0, 1, 0], sizes = [10, 16, 128], strides = [1, 1, 1]} : vector<12x18x128xbf16> to vector<10x16x128xbf16>
    %7 = vector.extract_strided_slice %4 {offsets = [0, 2, 0], sizes = [10, 16, 128], strides = [1, 1, 1]} : vector<12x18x128xbf16> to vector<10x16x128xbf16>
    %8 = vector.extract_strided_slice %4 {offsets = [1, 0, 0], sizes = [10, 16, 128], strides = [1, 1, 1]} : vector<12x18x128xbf16> to vector<10x16x128xbf16>
    %9 = vector.extract_strided_slice %4 {offsets = [1, 1, 0], sizes = [10, 16, 128], strides = [1, 1, 1]} : vector<12x18x128xbf16> to vector<10x16x128xbf16>
    %10 = vector.extract_strided_slice %4 {offsets = [1, 2, 0], sizes = [10, 16, 128], strides = [1, 1, 1]} : vector<12x18x128xbf16> to vector<10x16x128xbf16>
    %11 = vector.extract_strided_slice %4 {offsets = [2, 0, 0], sizes = [10, 16, 128], strides = [1, 1, 1]} : vector<12x18x128xbf16> to vector<10x16x128xbf16>
    %12 = vector.extract_strided_slice %4 {offsets = [2, 1, 0], sizes = [10, 16, 128], strides = [1, 1, 1]} : vector<12x18x128xbf16> to vector<10x16x128xbf16>
    %13 = vector.extract_strided_slice %4 {offsets = [2, 2, 0], sizes = [10, 16, 128], strides = [1, 1, 1]} : vector<12x18x128xbf16> to vector<10x16x128xbf16>
    %14 = tpu.concatenate %5, %6, %7, %8, %9, %10, %11, %12, %13 in 2 : vector<10x16x128xbf16>, vector<10x16x128xbf16>, vector<10x16x128xbf16>, vector<10x16x128xbf16>, vector<10x16x128xbf16>, vector<10x16x128xbf16>, vector<10x16x128xbf16>, vector<10x16x128xbf16>, vector<10x16x128xbf16> -> vector<10x16x1152xbf16>
    %15 = vector.shape_cast %14 : vector<10x16x1152xbf16> to vector<160x1152xbf16>
    %c0_2 = arith.constant 0 : index
    %c0_3 = arith.constant 0 : index
    %16 = vector.load %arg3[%c0_2, %c0_3] : memref<1152x128xbf16, #tpu.memory_space<vmem>>, vector<1152x128xbf16>
    %cst = arith.constant dense<0.000000e+00> : vector<160x128xf32>
    %17 = tpu.matmul %15, %16, %cst {dimension_numbers = #tpu.dot_dimension_numbers<[1], [0], [0], [1], [0, 0, 1, 1], [], []>} : vector<160x1152xbf16>, vector<1152x128xbf16>, vector<160x128xf32> -> vector<160x128xf32>
    %c0_4 = arith.constant 0 : index
    %c0_5 = arith.constant 0 : index
    %18 = vector.load %arg5[%c0_4, %c0_5] : memref<4x128xf32, #tpu.memory_space<vmem>>, vector<1x128xf32>
    %19 = vector.broadcast %18 : vector<1x128xf32> to vector<160x128xf32>
    %20 = arith.mulf %17, %19 : vector<160x128xf32>
    %c1 = arith.constant 1 : index
    %c0_6 = arith.constant 0 : index
    %21 = vector.load %arg5[%c1, %c0_6] : memref<4x128xf32, #tpu.memory_space<vmem>>, vector<1x128xf32>
    %22 = vector.broadcast %21 : vector<1x128xf32> to vector<160x128xf32>
    %23 = arith.addf %20, %22 : vector<160x128xf32>
    %cst_7 = arith.constant 0.000000e+00 : f32
    %24 = vector.broadcast %cst_7 : f32 to vector<160x128xf32>
    %25 = arith.maximumf %23, %24 : vector<160x128xf32>
    %26 = arith.truncf %25 : vector<160x128xf32> to vector<160x128xbf16>
    %27 = vector.shape_cast %26 : vector<160x128xbf16> to vector<10x16x128xbf16>
    %cst_8 = arith.constant 0.000000e+00 : bf16
    %28 = vector.broadcast %cst_8 : bf16 to vector<10x1x128xbf16>
    %c0_9 = arith.constant 0 : index
    %c0_10 = arith.constant 0 : index
    %c0_11 = arith.constant 0 : index
    %29 = vector.load %arg7[%c0_9, %c0_10, %c0_11] : memref<10x18x128xbf16, #tpu.memory_space<vmem>>, vector<10x1x128xbf16>
    tpu.vector_store %arg7[%c0_9, %c0_10, %c0_11], %28 {strides = array<i32>} : memref<10x18x128xbf16, #tpu.memory_space<vmem>>, vector<10x1x128xbf16>,
    %cst_12 = arith.constant 0.000000e+00 : bf16
    %30 = vector.broadcast %cst_12 : bf16 to vector<10x1x128xbf16>
    %c0_13 = arith.constant 0 : index
    %c17 = arith.constant 17 : index
    %c0_14 = arith.constant 0 : index
    %31 = vector.load %arg7[%c0_13, %c17, %c0_14] : memref<10x18x128xbf16, #tpu.memory_space<vmem>>, vector<10x1x128xbf16>
    tpu.vector_store %arg7[%c0_13, %c17, %c0_14], %30 {strides = array<i32>} : memref<10x18x128xbf16, #tpu.memory_space<vmem>>, vector<10x1x128xbf16>,
    %c0_15 = arith.constant 0 : index
    %c1_16 = arith.constant 1 : index
    %c0_17 = arith.constant 0 : index
    %32 = vector.load %arg7[%c0_15, %c1_16, %c0_17] : memref<10x18x128xbf16, #tpu.memory_space<vmem>>, vector<10x16x128xbf16>
    tpu.vector_store %arg7[%c0_15, %c1_16, %c0_17], %27 {strides = array<i32>} : memref<10x18x128xbf16, #tpu.memory_space<vmem>>, vector<10x16x128xbf16>,
    %c0_i32 = arith.constant 0 : i32
    %33 = arith.cmpi eq, %arg1, %c0_i32 : i32
    %34 = arith.extui %33 : i1 to i32
    %c0_i32_18 = arith.constant 0 : i32
    %35 = arith.cmpi ne, %34, %c0_i32_18 : i32
    scf.if %35 {
      %cst_57 = arith.constant 0.000000e+00 : bf16
      %66 = vector.broadcast %cst_57 : bf16 to vector<1x18x128xbf16>
      %c0_58 = arith.constant 0 : index
      %c0_59 = arith.constant 0 : index
      %c0_60 = arith.constant 0 : index
      %67 = vector.load %arg7[%c0_58, %c0_59, %c0_60] : memref<10x18x128xbf16, #tpu.memory_space<vmem>>, vector<1x18x128xbf16>
      tpu.vector_store %arg7[%c0_58, %c0_59, %c0_60], %66 {strides = array<i32>} : memref<10x18x128xbf16, #tpu.memory_space<vmem>>, vector<1x18x128xbf16>,
    } else {
    }
    %c1_i32 = arith.constant 1 : i32
    %36 = arith.cmpi eq, %arg1, %c1_i32 : i32
    %37 = arith.extui %36 : i1 to i32
    %c0_i32_19 = arith.constant 0 : i32
    %38 = arith.cmpi ne, %37, %c0_i32_19 : i32
    scf.if %38 {
      %cst_57 = arith.constant 0.000000e+00 : bf16
      %66 = vector.broadcast %cst_57 : bf16 to vector<1x18x128xbf16>
      %c9 = arith.constant 9 : index
      %c0_58 = arith.constant 0 : index
      %c0_59 = arith.constant 0 : index
      %67 = vector.load %arg7[%c9, %c0_58, %c0_59] : memref<10x18x128xbf16, #tpu.memory_space<vmem>>, vector<1x18x128xbf16>
      tpu.vector_store %arg7[%c9, %c0_58, %c0_59], %66 {strides = array<i32>} : memref<10x18x128xbf16, #tpu.memory_space<vmem>>, vector<1x18x128xbf16>,
    } else {
    }
    %c0_20 = arith.constant 0 : index
    %c0_21 = arith.constant 0 : index
    %c0_22 = arith.constant 0 : index
    %39 = vector.load %arg7[%c0_20, %c0_21, %c0_22] : memref<10x18x128xbf16, #tpu.memory_space<vmem>>, vector<8x16x128xbf16>
    %c0_23 = arith.constant 0 : index
    %c1_24 = arith.constant 1 : index
    %c0_25 = arith.constant 0 : index
    %40 = vector.load %arg7[%c0_23, %c1_24, %c0_25] : memref<10x18x128xbf16, #tpu.memory_space<vmem>>, vector<8x16x128xbf16>
    %c0_26 = arith.constant 0 : index
    %c2 = arith.constant 2 : index
    %c0_27 = arith.constant 0 : index
    %41 = vector.load %arg7[%c0_26, %c2, %c0_27] : memref<10x18x128xbf16, #tpu.memory_space<vmem>>, vector<8x16x128xbf16>
    %c1_28 = arith.constant 1 : index
    %c0_29 = arith.constant 0 : index
    %c0_30 = arith.constant 0 : index
    %42 = vector.load %arg7[%c1_28, %c0_29, %c0_30] : memref<10x18x128xbf16, #tpu.memory_space<vmem>>, vector<8x16x128xbf16>
    %c1_31 = arith.constant 1 : index
    %c1_32 = arith.constant 1 : index
    %c0_33 = arith.constant 0 : index
    %43 = vector.load %arg7[%c1_31, %c1_32, %c0_33] : memref<10x18x128xbf16, #tpu.memory_space<vmem>>, vector<8x16x128xbf16>
    %c1_34 = arith.constant 1 : index
    %c2_35 = arith.constant 2 : index
    %c0_36 = arith.constant 0 : index
    %44 = vector.load %arg7[%c1_34, %c2_35, %c0_36] : memref<10x18x128xbf16, #tpu.memory_space<vmem>>, vector<8x16x128xbf16>
    %c2_37 = arith.constant 2 : index
    %c0_38 = arith.constant 0 : index
    %c0_39 = arith.constant 0 : index
    %45 = vector.load %arg7[%c2_37, %c0_38, %c0_39] : memref<10x18x128xbf16, #tpu.memory_space<vmem>>, vector<8x16x128xbf16>
    %c2_40 = arith.constant 2 : index
    %c1_41 = arith.constant 1 : index
    %c0_42 = arith.constant 0 : index
    %46 = vector.load %arg7[%c2_40, %c1_41, %c0_42] : memref<10x18x128xbf16, #tpu.memory_space<vmem>>, vector<8x16x128xbf16>
    %c2_43 = arith.constant 2 : index
    %c2_44 = arith.constant 2 : index
    %c0_45 = arith.constant 0 : index
    %47 = vector.load %arg7[%c2_43, %c2_44, %c0_45] : memref<10x18x128xbf16, #tpu.memory_space<vmem>>, vector<8x16x128xbf16>
    %48 = tpu.concatenate %39, %40, %41, %42, %43, %44, %45, %46, %47 in 2 : vector<8x16x128xbf16>, vector<8x16x128xbf16>, vector<8x16x128xbf16>, vector<8x16x128xbf16>, vector<8x16x128xbf16>, vector<8x16x128xbf16>, vector<8x16x128xbf16>, vector<8x16x128xbf16>, vector<8x16x128xbf16> -> vector<8x16x1152xbf16>
    %49 = vector.shape_cast %48 : vector<8x16x1152xbf16> to vector<128x1152xbf16>
    %c0_46 = arith.constant 0 : index
    %c0_47 = arith.constant 0 : index
    %50 = vector.load %arg4[%c0_46, %c0_47] : memref<1152x128xbf16, #tpu.memory_space<vmem>>, vector<1152x128xbf16>
    %cst_48 = arith.constant dense<0.000000e+00> : vector<128x128xf32>
    %51 = tpu.matmul %49, %50, %cst_48 {dimension_numbers = #tpu.dot_dimension_numbers<[1], [0], [0], [1], [0, 0, 1, 1], [], []>} : vector<128x1152xbf16>, vector<1152x128xbf16>, vector<128x128xf32> -> vector<128x128xf32>
    %c2_49 = arith.constant 2 : index
    %c0_50 = arith.constant 0 : index
    %52 = vector.load %arg5[%c2_49, %c0_50] : memref<4x128xf32, #tpu.memory_space<vmem>>, vector<1x128xf32>
    %53 = vector.broadcast %52 : vector<1x128xf32> to vector<128x128xf32>
    %54 = arith.mulf %51, %53 : vector<128x128xf32>
    %c3 = arith.constant 3 : index
    %c0_51 = arith.constant 0 : index
    %55 = vector.load %arg5[%c3, %c0_51] : memref<4x128xf32, #tpu.memory_space<vmem>>, vector<1x128xf32>
    %56 = vector.broadcast %55 : vector<1x128xf32> to vector<128x128xf32>
    %57 = arith.addf %54, %56 : vector<128x128xf32>
    %58 = vector.extract_strided_slice %4 {offsets = [2, 1, 0], sizes = [8, 16, 128], strides = [1, 1, 1]} : vector<12x18x128xbf16> to vector<8x16x128xbf16>
    %59 = arith.extf %58 : vector<8x16x128xbf16> to vector<8x16x128xf32>
    %60 = vector.shape_cast %59 : vector<8x16x128xf32> to vector<128x128xf32>
    %61 = arith.addf %57, %60 : vector<128x128xf32>
    %cst_52 = arith.constant 0.000000e+00 : f32
    %62 = vector.broadcast %cst_52 : f32 to vector<128x128xf32>
    %63 = arith.maximumf %61, %62 : vector<128x128xf32>
    %64 = vector.shape_cast %63 : vector<128x128xf32> to vector<1x8x16x128xf32>
    %c0_53 = arith.constant 0 : index
    %c0_54 = arith.constant 0 : index
    %c0_55 = arith.constant 0 : index
    %c0_56 = arith.constant 0 : index
    %65 = vector.load %arg6[%c0_53, %c0_54, %c0_55, %c0_56] : memref<1x8x16x128xf32, #tpu.memory_space<vmem>>, vector<1x8x16x128xf32>
    tpu.vector_store %arg6[%c0_53, %c0_54, %c0_55, %c0_56], %64 {strides = array<i32>} : memref<1x8x16x128xf32, #tpu.memory_space<vmem>>, vector<1x8x16x128xf32>,
    return
  }
  func.func @transform_0(%arg0: i32, %arg1: i32) -> (i32, i32, i32, i32) {
    %c0_i32 = arith.constant 0 : i32
    %c0_i32_0 = arith.constant 0 : i32
    %c0_i32_1 = arith.constant 0 : i32
    %c0_i32_2 = arith.constant 0 : i32
    return %arg0, %c0_i32, %c0_i32_0, %c0_i32_1 : i32, i32, i32, i32
  }
  func.func @transform_1(%arg0: i32, %arg1: i32) -> (i32, i32) {
    %c0_i32 = arith.constant 0 : i32
    %c0_i32_0 = arith.constant 0 : i32
    %c0_i32_1 = arith.constant 0 : i32
    return %c0_i32, %c0_i32_0 : i32, i32
  }
  func.func @transform_2(%arg0: i32, %arg1: i32) -> (i32, i32) {
    %c0_i32 = arith.constant 0 : i32
    %c0_i32_0 = arith.constant 0 : i32
    %c0_i32_1 = arith.constant 0 : i32
    return %c0_i32, %c0_i32_0 : i32, i32
  }
  func.func @transform_3(%arg0: i32, %arg1: i32) -> (i32, i32) {
    %c0_i32 = arith.constant 0 : i32
    %c0_i32_0 = arith.constant 0 : i32
    %c0_i32_1 = arith.constant 0 : i32
    return %c0_i32, %c0_i32_0 : i32, i32
  }
  func.func @transform_4(%arg0: i32, %arg1: i32) -> (i32, i32, i32, i32) {
    %c0_i32 = arith.constant 0 : i32
    %c0_i32_0 = arith.constant 0 : i32
    %c0_i32_1 = arith.constant 0 : i32
    return %arg0, %arg1, %c0_i32, %c0_i32_0 : i32, i32, i32, i32
  }
}

</mosaic_0001>

<bundles_post_ra>
// kernel: basic_block_forward.1
= control target key start
LH: loop header
LB: loop body
LE: loop exit
PB: predicated region body
PF: predicated region fallthrough
CT: control target
= control target key end

     0   :  { %s5273_s15 = smov 0   ;;  %s5275_s16 = smov 0   ;;  %s6832_s0 = inlined_call_operand.vmem [shape: bf16[2,20,18,128], index: 0, kind: input, shape index: {}]   ;;  %s6833_s1 = inlined_call_operand.vmem [shape: bf16[1152,128], index: 1, kind: input, shape index: {}]   ;;  %s6834_s2 = inlined_call_operand.vmem [shape: bf16[1152,128], index: 2, kind: input, shape index: {}]   ;;  %s6835_s3 = inlined_call_operand.vmem [shape: f32[4,128], index: 3, kind: input, shape index: {}]   ;;  %s6836_s4 = inlined_call_operand.vmem [shape: f32[2,16,16,128], index: 4, kind: output, shape index: {}]  }
   0x1   :  { %s5277_s17 = smov 0   ;;  %s5279_s18 = smov 0  }
   0x2   :  { %s5281_s19 = smov 0  }
   0x3 LB: > { %s23_s20 = sadd.s32 1, %s5236_s17  ;;  %s26_s21 = sadd.s32 1, %s5240_s18  ;;  %s5244_s19 = sphi %s5281_s19, %s14_s19   ;;  %s5240_s18 = sphi %s5279_s18, %s6906_s18   ;;  %s5236_s17 = sphi %s5277_s17, %s6905_s17   ;;  %s5232_s16 = sphi %s5275_s16, %s6904_s16   ;;  %s5228_s15 = sphi %s5273_s15, %s6903_s15  }
   0x4   : > { %p24_p0 = scmp.ge.s32.totalorder %s23_s20, 2  ;;  %p4219_p1 = scmp.ge.s32.totalorder %s5244_s19, 1 }
   0x5   : > { %p176_p2 = scmp.lt.s32.totalorder %s5244_s19, 5 }
   0x6   : > { %s6908_s20 = smov (%p24_p0, %s23_s20), 0  ;;  %s6910_s21 = smov (!%p24_p0, %s26_s21), %s5240_s18 }
   0x7   : > { %p177_p3 = pnand %p4219_p1, %p176_p2  ;;  %p28_p4 = scmp.ge.s32.totalorder %s6910_s21, 2 }
   0x9   : > { %s6912_s21 = smov (%p28_p4, %s6910_s21), 0  ;;  %180 = sbr.rel (%p177_p3) target bundleno = 1278 (0x4fe), region = 36 }
   0xe   : > { %v4876_v0 = vld [vmem:[%s6833_s1 + $0x38] sm:$0xff]  ;;  %p207_p5 = scmp.lt.s32.totalorder %s5232_s16, 1  ;;  %s4221_s26 = sshll.u32 %s5228_s15, 3  ;;  %v4875_v2 = vld [vmem:[%s6833_s1 + $0x30] sm:$0xff]  ;;  %v4874_v5 = vld [vmem:[%s6833_s1 + $0x28] sm:$0xff]  ;;  %vm485_vm1 = vcmask 1046528  }
   0xf   : > { %v4884_v1 = vld [vmem:[%s6833_s1 + $0x78] sm:$0xff]  ;;  %p215_p6 = scmp.lt.s32.totalorder %s4221_s26, 15  ;;  %s4856_s27 = smul.u32 96, %s5228_s15  ;;  %1154 = vmatpush.bf16.msra.mxu0 %v4876_v0  ;;  %v4883_v3 = vld [vmem:[%s6833_s1 + $0x70] sm:$0xff]  ;;  %v4882_v6 = vld [vmem:[%s6833_s1 + $0x68] sm:$0xff]  ;;  %vm1769_vm2 = vcmask 1040384  }
  0x10   : > { %1213 = vmatpush.bf16.msra.mxu1 %v4884_v1  ;;  %s6914_s16 = smov (!%p207_p5, %s5232_s16), 1  ;;  %5107 = vmatpush.bf16.msra.mxu3 %v4884_v1  ;;  %v5322_v4 = vld [vmem:[%s6833_s1 + $0xb8] sm:$0xff]  ;;  %v4873_v7 = vld [vmem:[%s6833_s1 + $0x20] sm:$0xff]  ;;  %v4891_v25 = vld [vmem:[%s6833_s1 + $0xb0] sm:$0xff]  ;;  %vm354_vm0 = vsmask.f32 7424 }
  0x11   : > { %s6916_s26 = smov (!%p215_p6, %s4221_s26), 15  ;;  %s5123_s6 = smul.u32 240, %s6914_s16  ;;  %5115 = vmatpush.bf16.msra.mxu2 %v5322_v4  ;;  %v4881_v8 = vld [vmem:[%s6833_s1 + $0x60] sm:$0xff]  ;;  %v4872_v19 = vld [vmem:[%s6833_s1 + $0x18] sm:$0xff]  ;;  %v4871_v26 = vld [vmem:[%s6833_s1 + $0x10] sm:$0xff]  ;;  %vm2036_vm7 = vcmask 1043456  }
  0x12   : > { %s4223_s7 = sshll.u32 %s6914_s16, 5  ;;  %s4222_s8 = sshll.u32 %s6916_s26, 1  ;;  %v4880_v20 = vld [vmem:[%s6833_s1 + $0x58] sm:$0xff]  ;;  %v4879_v27 = vld [vmem:[%s6833_s1 + $0x50] sm:$0xff]  ;;  %v5406_v32 = vld [vmem:[%s6833_s1 + $0xa8] sm:$0xff] }
  0x13   : > { %1155 = vmatpush.bf16.msra.mxu0 %v4875_v2  ;;  %s211_s16 = scalar_lea.vmem %s6832_s0, %s5123_s6  ;;  %s219_s24 = sadd.s32 %s4223_s7, %s4222_s8  ;;  %v4870_v33 = vld [vmem:[%s6833_s1 + $0x8] sm:$0xff]  ;;  %v5422_v41 = vld [vmem:[%s6833_s1 + $0xa0] sm:$0xff]  ;;  %v4900_v50 = vld [vmem:[%s6833_s1 + $0xf8] sm:$0xff]  ;;  %vm1770_vm3 = vsmask.f32 256 }
  0x14   : > { %1214 = vmatpush.bf16.msra.mxu1 %v4883_v3  ;;  %5108 = vmatpush.bf16.msra.mxu3 %v4883_v3  ;;  %s4224_s25 = sshll.u32 %s219_s24, 3  ;;  %s5333_s26 = scalar_lea.vmem %s211_s16, %s4856_s27  ;;  %v4878_v34 = vld [vmem:[%s6833_s1 + $0x48] sm:$0xff]  ;;  %v4869_v42 = vld [vmem:[%s6833_s1] sm:$0xff]  ;;  %v4888_v51 = vld [vmem:[%s6833_s1 + $0x98] sm:$0xff]  ;;  %vm1802_vm5 = vsmask.f32 7938 }
  0x15   : > { %s5345_s7 = scalar_lea.vmem %s6836_s4, %s4224_s25  ;;  %v5348_v9 = vld [vmem:[%s5333_s26 + $0x18] sm:$0xff]   ;;  %v5351_v10 = vld [vmem:[%s5333_s26 + $0x24] sm:$0xff]   ;;  %v5354_v11 = vld [vmem:[%s5333_s26 + $0x30] sm:$0xff]   ;;  %5116 = vmatpush.bf16.msra.mxu2 %v4891_v25  ;;  %vm1834_vm9 = vsmask.f32 4368  ;;  %p4564_p7 = scmp.ne.s32.totalorder %s5228_s15, 0 }
  0x16   : > { %6855 = vst [vmem:[#allocation3_spill] sm:$0xff] %v5348_v9  ;;  %v5357_v12 = vld [vmem:[%s5333_s26 + $0x3c] sm:$0xff]   ;;  %v5360_v13 = vld [vmem:[%s5333_s26 + $0x48] sm:$0xff]   ;;  %v5363_v14 = vld [vmem:[%s5333_s26 + $0x54] sm:$0xff]  }
  0x17   : > { %6856 = vst [vmem:[#allocation4_spill] sm:$0xff] %v5351_v10  ;;  %1156 = vmatpush.bf16.msra.mxu0 %v4874_v5  ;;  %v5366_v15 = vld [vmem:[%s5333_s26 + $0x60] sm:$0xff]   ;;  %v5369_v16 = vld [vmem:[%s5333_s26 + $0x6c] sm:$0xff]   ;;  %v230_v17 = vld [vmem:[%s5333_s26 + $0x8] sm:$0x1] }
  0x18   : > { %6857 = vst [vmem:[#allocation5_spill] sm:$0xff] %v5354_v11  ;;  %1215 = vmatpush.bf16.msra.mxu1 %v4882_v6  ;;  %5109 = vmatpush.bf16.msra.mxu3 %v4882_v6  ;;  %v5373_v18 = vld [vmem:[%s5333_s26 + $0x5c] sm:$0x1]  ;;  %v5382_v21 = vld [vmem:[%s5333_s26] sm:$0xff]  ;;  %v334_v22 = vunpack.c.l.b16 %v230_v17  ;;  %v5385_v23 = vld [vmem:[%s5333_s26 + $0x54] sm:$0xff] }
  0x19   : > { %6858 = vst [vmem:[#allocation6_spill] sm:$0xff] %v5357_v12  ;;  %v341_v24 = vunpack.c.l.b16 %v5373_v18  ;;  %v358_v29 = vshll.u32 %v5382_v21, 16  ;;  %v442_v31 = vshll.u32 %v5385_v23, 16  ;;  %v356_v35 = vshrl.u32 %v5382_v21, 16  ;;  %5117 = vmatpush.bf16.msra.mxu2 %v5406_v32  ;;  %v4877_v43 = vld [vmem:[%s6833_s1 + $0x40] sm:$0xff]  ;;  %v5443_v53 = vld [vmem:[%s5333_s26 + $0xc] sm:$0xff]  ;;  %vm6007_vm4 = vmand %vm1769_vm2, %vm1770_vm3 }
  0x1a   : > { %6859 = vst [vmem:[#allocation7_spill] sm:$0xff] %v5360_v13  ;;  %v5397_v28 = vpack.c.b16 %v334_v22, %v334_v22  ;;  %v440_v38 = vshrl.u32 %v5385_v23, 16  ;;  %v233_v48 = vld [vmem:[%s5333_s26 + $0x14] sm:$0x1]  ;;  %v5433_v49 = vld [vmem:[%s5333_s26 + $0x68] sm:$0x1]  ;;  %vm6019_vm6 = vmand %vm1769_vm2, %vm1802_vm5 }
  0x1b   : > { %6860 = vst [vmem:[#allocation8_spill] sm:$0xff] %v5363_v14  ;;  %1157 = vmatpush.bf16.msra.mxu0 %v4873_v7  ;;  %v5400_v30 = vpack.c.b16 %v341_v24, %v341_v24  ;;  %v360_v36 = vrot.slane %v358_v29, 1  ;;  %v444_v39 = vrot.slane %v442_v31, 1  ;;  %v335_v54 = vunpack.c.l.b16 %v233_v48  ;;  %v5450_v56 = vld [vmem:[%s5333_s26 + $0x60] sm:$0xff]  ;;  %v4899_v58 = vld [vmem:[%s6833_s1 + $0xf0] sm:$0xff]  ;;  %v4898_v1 = vld [vmem:[%s6833_s1 + $0xe8] sm:$0xff] }
  0x1c   : > { %6861 = vst [vmem:[#allocation9_spill] sm:$0xff] %v5366_v15  ;;  %1216 = vmatpush.bf16.msra.mxu1 %v4881_v8  ;;  %5110 = vmatpush.bf16.msra.mxu3 %v4881_v8  ;;  %v363_v37 = vshll.u32 %v5397_v28, 16  ;;  %v342_v57 = vunpack.c.l.b16 %v5433_v49  ;;  %v4887_v59 = vld [vmem:[%s6833_s1 + $0x90] sm:$0xff]  ;;  %v370_v61 = vshll.u32 %v5443_v53, 16  ;;  %v454_v63 = vshll.u32 %v5450_v56, 16  ;;  %v4886_v2 = vld [vmem:[%s6833_s1 + $0x88] sm:$0xff]  ;;  %vm6080_vm8 = vmand %vm2036_vm7, %vm1802_vm5 }
  0x1d   : > { %6862 = vst [vmem:[#allocation10_spill] sm:$0xff] %v5369_v16  ;;  %v447_v40 = vshll.u32 %v5400_v30, 16  ;;  %v361_v44 = vor.u32 %v360_v36, %v356_v35  ;;  %v445_v46 = vor.u32 %v444_v39, %v440_v38  ;;  %5118 = vmatpush.bf16.msra.mxu2 %v5422_v41  ;;  %v5461_v60 = vpack.c.b16 %v335_v54, %v335_v54  ;;  %v5468_v0 = vld [vmem:[%s5333_s26 + $0x2c] sm:$0x1]  ;;  %v5477_v3 = vld [vmem:[%s5333_s26 + $0x24] sm:$0xff]  ;;  %v4896_v35 = vld [vmem:[%s6833_s1 + $0xd8] sm:$0xff] }
  0x1e   : > { %6863 = vst [vmem:[#allocation11_spill] sm:$0xff] %v5373_v18  ;;  %v365_v45 = vrot.slane %v363_v37, 1  ;;  %v5464_v62 = vpack.c.b16 %v342_v57, %v342_v57  ;;  %v368_v5 = vshrl.u32 %v5443_v53, 16  ;;  %v372_v6 = vrot.slane %v370_v61, 1  ;;  %v4897_v22 = vld [vmem:[%s6833_s1 + $0xe0] sm:$0xff]  ;;  %v5512_v38 = vld [vmem:[%s5333_s26 + $0x18] sm:$0xff]  ;;  %vm6101_vm10 = vmor %vm1770_vm3, %vm1834_vm9 }
  0x1f   : > { %1158 = vmatpush.bf16.msra.mxu0 %v4872_v19  ;;  %v449_v47 = vrot.slane %v447_v40, 1  ;;  %6864 = vst [vmem:[#allocation12_spill] sm:$0xff] %v5433_v49  ;;  %v375_v7 = vshll.u32 %v5461_v60, 16  ;;  %v452_v17 = vshrl.u32 %v5450_v56, 16  ;;  %v456_v19 = vrot.slane %v454_v63, 1  ;;  %v4885_v24 = vld [vmem:[%s6833_s1 + $0x80] sm:$0xff] }
  0x20   : > { %1217 = vmatpush.bf16.msra.mxu1 %v4880_v20  ;;  %5111 = vmatpush.bf16.msra.mxu3 %v4880_v20  ;;  %v366_v52 = vsel %vm354_vm0, %v361_v44, %v365_v45  ;;  %6865 = vst [vmem:[#allocation13_spill] sm:$0xff] %v5468_v0  ;;  %v459_v20 = vshll.u32 %v5464_v62, 16  ;;  %v382_v45 = vshll.u32 %v5512_v38, 16  ;;  %v380_v57 = vshrl.u32 %v5512_v38, 16  ;;  %v4926_v16 = vld [vmem:[%s6833_s1 + $0x1c8] sm:$0xff]  ;;  %v4901_v49 = vld [vmem:[%s6833_s1 + $0x100] sm:$0xff] }
  0x21   : > { %v5446_v55 = vsel %vm354_vm0, %v445_v46, %v449_v47  ;;  %5119 = vmatpush.bf16.msra.mxu2 %v4888_v51  ;;  %v377_v29 = vrot.slane %v375_v7, 1  ;;  %v457_v31 = vor.u32 %v456_v19, %v452_v17  ;;  %v5533_v46 = vld [vmem:[%s5333_s26 + $0x38] sm:$0x1]  ;;  %v4910_v15 = vld [vmem:[%s6833_s1 + $0x148] sm:$0xff]  ;;  %v4909_v14 = vld [vmem:[%s6833_s1 + $0x140] sm:$0xff] }
  0x22   : > { %6869 = vst [vmem:[#allocation17_spill] sm:$0xff] %v5533_v46 }
  0x23   : > { %1159 = vmatpush.bf16.msra.mxu0 %v4871_v26 }
  0x24   : > { %1218 = vmatpush.bf16.msra.mxu1 %v4879_v27  ;;  %5112 = vmatpush.bf16.msra.mxu3 %v4879_v27  ;;  %v373_v27 = vor.u32 %v372_v6, %v368_v5 }
  0x25   : > { %5120 = vmatpush.bf16.msra.mxu2 %v4887_v59 }
  0x26   : > { %v5509_v37 = vsel %vm354_vm0, %v373_v27, %v377_v29  ;;  %v5572_v29 = vld [vmem:[%s5333_s26 + $0x3c] sm:$0xff] }
  0x27   : > { %1160 = vmatpush.bf16.msra.mxu0 %v4870_v33  ;;  %v5496_v33 = vld [vmem:[%s5333_s26 + $0x20] sm:$0x1] }
  0x28   : > { %1219 = vmatpush.bf16.msra.mxu1 %v4878_v34  ;;  %5113 = vmatpush.bf16.msra.mxu3 %v4878_v34  ;;  %6866 = vst [vmem:[#allocation14_spill] sm:$0xff] %v5496_v33  ;;  %v5500_v34 = vld [vmem:[%s5333_s26 + $0x74] sm:$0x1]  ;;  %v336_v39 = vunpack.c.l.b16 %v5496_v33  ;;  %v4938_v33 = vld [vmem:[%s6833_s1 + $0x228] sm:$0xff] }
  0x29   : > { %5121 = vmatpush.bf16.msra.mxu2 %v4886_v2  ;;  %6867 = vst [vmem:[#allocation15_spill] sm:$0xff] %v5500_v34 }
  0x2a   : > { %v5529_v44 = vpack.c.b16 %v336_v39, %v336_v39 }
  0x2b   : > { %1161 = vmatpush.bf16.msra.mxu0 %v4869_v42  ;;  %v343_v42 = vunpack.c.l.b16 %v5500_v34  ;;  %v4903_v34 = vld [vmem:[%s6833_s1 + $0x110] sm:$0xff] }
  0x2c   : > { %1220 = vmatpush.bf16.msra.mxu1 %v4877_v43  ;;  %5114 = vmatpush.bf16.msra.mxu3 %v4877_v43  ;;  %v4895_v43 = vld [vmem:[%s6833_s1 + $0xd0] sm:$0xff]  ;;  %v387_v61 = vshll.u32 %v5529_v44, 16 }
  0x2d   : > { %5122 = vmatpush.bf16.msra.mxu2 %v4885_v24  ;;  %v5535_v47 = vpack.c.b16 %v343_v42, %v343_v42  ;;  %v501_v42 = vrot.slane %v5572_v29, 1 }
  0x2e   : > { %1162 = vmatmul.bf16.vlgmr.msra.gmra.mxu0 %v5382_v21  ;;  %v389_v17 = vrot.slane %v387_v61, 1  ;;  %v5593_v61 = vld [vmem:[%s5333_s26 + $0x48] sm:$0xff] }
  0x2f   : > { %1272 = vmatpush.bf16.msrb.mxu0 %v5322_v4  ;;  %1221 = vmatmul.bf16.vlgmr.msra.gmra.mxu1 %v366_v52  ;;  %v337_v4 = vunpack.c.l.b16 %v5468_v0  ;;  %v5543_v52 = vld [vmem:[%s5333_s26 + $0x30] sm:$0xff] }
  0x30   : > { %1331 = vmatpush.bf16.msrb.mxu3 %v4900_v50  ;;  %v338_v50 = vunpack.c.l.b16 %v5533_v46  ;;  %v498_v5 = vrot.slane %v5543_v52, 1 }
  0x31   : > { %1256 = vmatmul.bf16.vlgmr.msra.gmra.mxu3 %v5446_v55  ;;  %v5482_v8 = vpack.c.b16 %v337_v4, %v337_v4  ;;  %v471_v4 = vshll.u32 %v5535_v47, 16 }
  0x32   : > { %v348_v54 = vpack.c.b16 %v338_v50, %v338_v50 }
  0x33   : > { %1273 = vmatpush.bf16.msrb.mxu0 %v4891_v25  ;;  %v495_v25 = vrot.slane %v5477_v3, 1  ;;  %v496_v26 = vrot.slane %v5482_v8, 1  ;;  %v399_v39 = vshll.u32 %v5482_v8, 16  ;;  %v406_v8 = vshll.u32 %v5543_v52, 16 }
  0x34   : > { %1332 = vmatpush.bf16.msrb.mxu3 %v4899_v58  ;;  %v384_v58 = vrot.slane %v382_v45, 1  ;;  %v499_v6 = vrot.slane %v348_v54, 1 }
  0x35   : > { %v5506_v36 = vsel %vm485_vm1, %v495_v25, %v496_v26  ;;  %v5568_v26 = vld [vmem:[%s5333_s26 + $0x44] sm:$0x1] }
  0x36   : > { %6868 = vst [vmem:[#allocation16_spill] sm:$0xff] %v5506_v36  ;;  %1295 = vmatmul.bf16.vlgmr.msra.gmra.mxu2 %v5506_v36  ;;  %v385_v7 = vor.u32 %v384_v58, %v380_v57  ;;  %v339_v27 = vunpack.c.l.b16 %v5568_v26  ;;  %v5589_v57 = vld [vmem:[%s5333_s26 + $0x50] sm:$0x1] }
  0x37   : > { %1274 = vmatpush.bf16.msrb.mxu0 %v5406_v32  ;;  %v461_v32 = vrot.slane %v459_v20, 1  ;;  %v473_v20 = vrot.slane %v471_v4, 1  ;;  %6870 = vst [vmem:[#allocation18_spill] sm:$0xff] %v5568_v26  ;;  %v340_v58 = vunpack.c.l.b16 %v5589_v57  ;;  %v408_v4 = vrot.slane %v406_v8, 1  ;;  %v5802_v26 = vld [vmem:[%s5333_s26 + $0x78] sm:$0xff] }
  0x38   : > { %1333 = vmatpush.bf16.msrb.mxu3 %v4898_v1  ;;  %6871 = vst [vmem:[#allocation19_spill] sm:$0xff] %v5589_v57 }
  0x39   : > { %v5516_v40 = vsel %vm354_vm0, %v457_v31, %v461_v32  ;;  %v349_v31 = vpack.c.b16 %v339_v27, %v339_v27  ;;  %v392_v32 = vshrl.u32 %v5477_v3, 16 }
  0x3b   : > { %1275 = vmatpush.bf16.msrb.mxu0 %v5422_v41  ;;  %v5519_v41 = vld [vmem:[%s5333_s26 + $0x6c] sm:$0xff] }
  0x3c   : > { %1334 = vmatpush.bf16.msrb.mxu3 %v4897_v22  ;;  %v466_v48 = vshll.u32 %v5519_v41, 16  ;;  %v464_v63 = vshrl.u32 %v5519_v41, 16  ;;  %v5554_v22 = vsel %vm485_vm1, %v498_v5, %v499_v6  ;;  %v504_v5 = vrot.slane %v5593_v61, 1 }
  0x3e   : > { %1167 = vmatmul.bf16.gmra.mxu0 %v5443_v53  ;;  %v468_v1 = vrot.slane %v466_v48, 1  ;;  %v401_v48 = vrot.slane %v399_v39, 1  ;;  %v508_v39 = vrot.slane %v5400_v30, 1  ;;  %v428_v30 = vshrl.u32 %v5593_v61, 16 }
  0x3f   : > { %1276 = vmatpush.bf16.msrb.mxu0 %v4888_v51  ;;  %1226 = vmatmul.bf16.gmra.mxu1 %v5509_v37  ;;  %v4894_v51 = vld [vmem:[%s6833_s1 + $0xc8] sm:$0xff] }
  0x40   : > { %1335 = vmatpush.bf16.msrb.mxu3 %v4896_v35  ;;  %v469_v19 = vor.u32 %v468_v1, %v464_v63  ;;  %v350_v63 = vpack.c.b16 %v340_v58, %v340_v58  ;;  %v404_v1 = vshrl.u32 %v5543_v52, 16 }
  0x41   : > { %1261 = vmatmul.bf16.gmra.mxu3 %v5516_v40 }
  0x42   : > { %v5560_v25 = vsel %vm354_vm0, %v469_v19, %v473_v20  ;;  %v505_v6 = vrot.slane %v350_v63, 1  ;;  %v435_v58 = vshll.u32 %v350_v63, 16  ;;  %v513_v63 = vrot.slane %v5519_v41, 1 }
  0x43   : > { %1277 = vmatpush.bf16.msrb.mxu0 %v4887_v59  ;;  %v4893_v59 = vld [vmem:[%s6833_s1 + $0xc0] sm:$0xff] }
  0x44   : > { %1336 = vmatpush.bf16.msrb.mxu3 %v4895_v43  ;;  %v502_v43 = vrot.slane %v349_v31, 1  ;;  %v5598_v19 = vsel %vm485_vm1, %v504_v5, %v505_v6  ;;  %v437_v5 = vrot.slane %v435_v58, 1 }
  0x46   : > { %1300 = vmatmul.bf16.gmra.mxu2 %v5554_v22  ;;  %v5578_v50 = vsel %vm485_vm1, %v501_v42, %v502_v43 }
  0x47   : > { %1278 = vmatpush.bf16.msrb.mxu0 %v4886_v2  ;;  %v5557_v2 = vsel %vm354_vm0, %v385_v7, %v389_v17  ;;  %v409_v7 = vor.u32 %v408_v4, %v404_v1  ;;  %v510_v1 = vrot.slane %v5450_v56, 1  ;;  %v511_v4 = vrot.slane %v5464_v62, 1 }
  0x48   : > { %1337 = vmatpush.bf16.msrb.mxu3 %v4894_v51  ;;  %v514_v62 = vrot.slane %v5535_v47, 1  ;;  %v4908_v47 = vld [vmem:[%s6833_s1 + $0x138] sm:$0xff] }
  0x49   : > { %v5626_v6 = vsel %vm485_vm1, %v510_v1, %v511_v4  ;;  %v4924_v1 = vld [vmem:[%s6833_s1 + $0x1b8] sm:$0xff] }
  0x4a   : > { %1508 = vmatpush.bf16.msrb.mxu2 %v4924_v1  ;;  %v4932_v4 = vld [vmem:[%s6833_s1 + $0x1f8] sm:$0xff]  ;;  %v4930_v1 = vld [vmem:[%s6833_s1 + $0x1e8] sm:$0xff] }
  0x4b   : > { %1279 = vmatpush.bf16.msrb.mxu0 %v4885_v24  ;;  %v394_v24 = vshll.u32 %v5477_v3, 16 }
  0x4c   : > { %1338 = vmatpush.bf16.msrb.mxu3 %v4893_v59  ;;  %v411_v59 = vshll.u32 %v348_v54, 16  ;;  %v418_v54 = vshll.u32 %v5572_v29, 16 }
  0x4d   : > { %v396_v35 = vrot.slane %v394_v24, 1  ;;  %v416_v24 = vshrl.u32 %v5572_v29, 16 }
  0x4e   : > { %1172 = vmatmul.bf16.gmra.mxu0 %v5512_v38  ;;  %v413_v17 = vrot.slane %v411_v59, 1  ;;  %v420_v27 = vrot.slane %v418_v54, 1 }
  0x4f   : > { %1231 = vmatmul.bf16.gmra.mxu1 %v5557_v2  ;;  %v397_v45 = vor.u32 %v396_v35, %v392_v32  ;;  %v423_v32 = vshll.u32 %v349_v31, 16  ;;  %v507_v35 = vrot.slane %v5385_v23, 1  ;;  %v430_v31 = vshll.u32 %v5593_v61, 16  ;;  %1390 = vmatpush.bf16.msra.mxu0 %v4908_v47 }
  0x50   : > { %v5601_v20 = vsel %vm354_vm0, %v409_v7, %v413_v17  ;;  %v421_v42 = vor.u32 %v420_v27, %v416_v24  ;;  %v5638_v17 = vsel %vm485_vm1, %v513_v63, %v514_v62  ;;  %1567 = vmatpush.bf16.msra.mxu3 %v4932_v4  ;;  %v4916_v63 = vld [vmem:[%s6833_s1 + $0x178] sm:$0xff]  ;;  %v4923_v62 = vld [vmem:[%s6833_s1 + $0x1b0] sm:$0xff]  ;;  %v486_v4 = vrot.slane %v5382_v21, 1  ;;  %v4929_v21 = vld [vmem:[%s6833_s1 + $0x1e0] sm:$0xff] }
  0x51   : > { %1266 = vmatmul.bf16.gmra.mxu3 %v5560_v25  ;;  %v5581_v51 = vsel %vm354_vm0, %v397_v45, %v401_v48  ;;  %v425_v43 = vrot.slane %v423_v32, 1  ;;  %v5612_v45 = vsel %vm485_vm1, %v507_v35, %v508_v39  ;;  %v432_v8 = vrot.slane %v430_v31, 1  ;;  %v4906_v31 = vld [vmem:[%s6833_s1 + $0x128] sm:$0xff]  ;;  %1449 = vmatpush.bf16.msrb.mxu1 %v4916_v63 }
  0x52   : > { %1509 = vmatpush.bf16.msrb.mxu2 %v4923_v62  ;;  %v4914_v63 = vld [vmem:[%s6833_s1 + $0x168] sm:$0xff]  ;;  %v4921_v62 = vld [vmem:[%s6833_s1 + $0x1a0] sm:$0xff] }
  0x53   : > { %v5615_v48 = vsel %vm354_vm0, %v421_v42, %v425_v43  ;;  %v433_v59 = vor.u32 %v432_v8, %v428_v30  ;;  %v4907_v42 = vld [vmem:[%s6833_s1 + $0x130] sm:$0xff] }
  0x54   : > { %1391 = vmatpush.bf16.msra.mxu0 %v4907_v42 }
  0x55   : > { %v5629_v7 = vsel %vm354_vm0, %v433_v59, %v437_v5  ;;  %v4905_v59 = vld [vmem:[%s6833_s1 + $0x120] sm:$0xff] }
  0x56   : > { %1305 = vmatmul.bf16.gmra.mxu2 %v5578_v50 }
  0x58   : > { %1392 = vmatpush.bf16.msra.mxu0 %v4906_v31  ;;  %v4915_v31 = vld [vmem:[%s6833_s1 + $0x170] sm:$0xff] }
  0x59   : > { %1450 = vmatpush.bf16.msrb.mxu1 %v4915_v31 }
  0x5c   : > { %1393 = vmatpush.bf16.msra.mxu0 %v4905_v59  ;;  %v487_v59 = vrot.slane %v5397_v28, 1 }
  0x5d   : > { %1451 = vmatpush.bf16.msrb.mxu1 %v4914_v63  ;;  %v4913_v63 = vld [vmem:[%s6833_s1 + $0x160] sm:$0xff] }
  0x5e   : > { %1177 = vmatmul.bf16.gmra.mxu0 %v5477_v3 }
  0x5f   : > { %1236 = vmatmul.bf16.gmra.mxu1 %v5581_v51 }
  0x61   : > { %1339 = vmatmul.bf16.vlgmr.msrb.gmra.mxu3 %v5443_v53  ;;  %1452 = vmatpush.bf16.msrb.mxu1 %v4913_v63 }
  0x66   : > { %1310 = vmatmul.bf16.gmra.mxu2 %v5598_v19 }
  0x6e   : > { %1182 = vmatmul.bf16.gmra.mxu0 %v5543_v52 }
  0x6f   : > { %1241 = vmatmul.bf16.gmra.mxu1 %v5601_v20 }
  0x71   : > { %1344 = vmatmul.bf16.gmra.mxu3 %v5512_v38 }
  0x76   : > { %1315 = vmatmul.bf16.gmra.mxu2 %v5612_v45 }
  0x7e   : > { %1187 = vmatmul.bf16.gmra.mxu0 %v5572_v29 }
  0x7f   : > { %1246 = vmatmul.bf16.gmra.mxu1 %v5615_v48 }
  0x81   : > { %1349 = vmatmul.bf16.gmra.mxu3 %v5477_v3 }
  0x86   : > { %1320 = vmatmul.bf16.gmra.mxu2 %v5626_v6 }
  0x8e   : > { %1192 = vmatmul.bf16.gmra.mxu0 %v5593_v61 }
  0x8f   : > { %1251 = vmatmul.bf16.gmra.mxu1 %v5629_v7 }
  0x91   : > { %1354 = vmatmul.bf16.gmra.mxu3 %v5543_v52 }
  0x96   : > { %1325 = vmatmul.bf16.gmra.mxu2 %v5638_v17 }
  0x9e   : > { %1197 = vmatmul.bf16.gmra.mxu0 %v5385_v23 }
  0xa1   : > { %1359 = vmatmul.bf16.gmra.mxu3 %v5572_v29 }
  0xab   : > { %v1163_v54 = vpop.f32.mrf.mxu0 }
  0xac   : > { %v1222_v24 = vpop.f32.mrf.mxu1 }
  0xad   : > { %v5643_v27 = vadd.f32 %v1222_v24, %v1163_v54  ;;  %v4931_v24 = vld [vmem:[%s6833_s1 + $0x1f0] sm:$0xff] }
  0xae   : > { %1202 = vmatmul.bf16.gmra.mxu0 %v5450_v56  ;;  %1568 = vmatpush.bf16.msra.mxu3 %v4931_v24 }
  0xb1   : > { %1364 = vmatmul.bf16.gmra.mxu3 %v5593_v61 }
  0xb2   : > { %1569 = vmatpush.bf16.msra.mxu3 %v4930_v1 }
  0xb3   : > { %v5652_v35 = vpop.f32.mrf.mxu0 }
  0xb4   : > { %v5650_v32 = vpop.f32.mrf.mxu3  ;;  %v5654_v39 = vpop.f32.mrf.mxu1 }
  0xb6   : > { %1570 = vmatpush.bf16.msra.mxu3 %v4929_v21  ;;  %v4919_v21 = vld [vmem:[%s6833_s1 + $0x190] sm:$0xff] }
  0xb9   : > { %v5677_v5 = vpop.f32.mrf.mxu2 }
  0xbb   : > { %v1168_v30 = vpop.f32.mrf.mxu0 }
  0xbc   : > { %v5659_v43 = vpop.f32.mrf.mxu3  ;;  %v1227_v8 = vpop.f32.mrf.mxu1 }
  0xbd   : > { %v5664_v58 = vadd.f32 %v1227_v8, %v1168_v30  ;;  %v4922_v30 = vld [vmem:[%s6833_s1 + $0x1a8] sm:$0xff]  ;;  %v4904_v8 = vld [vmem:[%s6833_s1 + $0x118] sm:$0xff] }
  0xbe   : > { %1207 = vmatmul.bf16.gmra.mxu0 %v5519_v41  ;;  %1510 = vmatpush.bf16.msrb.mxu2 %v4922_v30 }
  0xbf   : > { %1394 = vmatpush.bf16.msra.mxu0 %v4904_v8  ;;  %v488_v8 = vsel %vm485_vm1, %v486_v4, %v487_v59  ;;  %v4928_v4 = vld [vmem:[%s6833_s1 + $0x1d8] sm:$0xff] }
  0xc0   : > { %1571 = vmatpush.bf16.msra.mxu3 %v4928_v4  ;;  %v4912_v59 = vld [vmem:[%s6833_s1 + $0x158] sm:$0xff]  ;;  %v4911_v4 = vld [vmem:[%s6833_s1 + $0x150] sm:$0xff] }
  0xc1   : > { %1369 = vmatmul.bf16.gmra.mxu3 %v5385_v23  ;;  %v5716_v31 = vpop.f32.mrf.mxu2  ;;  %1453 = vmatpush.bf16.msrb.mxu1 %v4912_v59  ;;  %v4918_v59 = vld [vmem:[%s6833_s1 + $0x188] sm:$0xff] }
  0xc2   : > { %1511 = vmatpush.bf16.msrb.mxu2 %v4921_v62  ;;  %v4920_v62 = vld [vmem:[%s6833_s1 + $0x198] sm:$0xff] }
  0xc3   : > { %v5690_v47 = vpop.f32.mrf.mxu0  ;;  %1395 = vmatpush.bf16.msra.mxu0 %v4903_v34  ;;  %v4927_v34 = vld [vmem:[%s6833_s1 + $0x1d0] sm:$0xff] }
  0xc4   : > { %v5685_v54 = vpop.f32.mrf.mxu3  ;;  %v5692_v42 = vpop.f32.mrf.mxu1  ;;  %1572 = vmatpush.bf16.msra.mxu3 %v4927_v34  ;;  %v4917_v34 = vld [vmem:[%s6833_s1 + $0x180] sm:$0xff] }
  0xc5   : > { %1454 = vmatpush.bf16.msrb.mxu1 %v4911_v4 }
  0xc6   : > { %1512 = vmatpush.bf16.msrb.mxu2 %v4920_v62 }
  0xc8   : > { %1573 = vmatpush.bf16.msra.mxu3 %v4926_v16 }
  0xc9   : > { %v1301_v62 = vpop.f32.mrf.mxu2  ;;  %1455 = vmatpush.bf16.msrb.mxu1 %v4910_v15  ;;  %v4940_v15 = vld [vmem:[%s6833_s1 + $0x238] sm:$0xff] }
  0xca   : > { %1513 = vmatpush.bf16.msrb.mxu2 %v4919_v21  ;;  %v489_v21 = vrot.slane %v5443_v53, 1  ;;  %v4925_v53 = vld [vmem:[%s6833_s1 + $0x1c0] sm:$0xff] }
  0xcb   : > { %v1173_v28 = vpop.f32.mrf.mxu0 }
  0xcc   : > { %v5714_v24 = vpop.f32.mrf.mxu3  ;;  %v1232_v30 = vpop.f32.mrf.mxu1  ;;  %1574 = vmatpush.bf16.msra.mxu3 %v4925_v53 }
  0xcd   : > { %v5722_v1 = vadd.f32 %v1232_v30, %v1173_v28  ;;  %v4902_v30 = vld [vmem:[%s6833_s1 + $0x108] sm:$0xff]  ;;  %1456 = vmatpush.bf16.msrb.mxu1 %v4909_v14 }
  0xce   : > { %1280 = vmatmul.bf16.vlgmr.msrb.gmra.mxu0 %v488_v8  ;;  %1514 = vmatpush.bf16.msrb.mxu2 %v4918_v59 }
  0xcf   : > { %1396 = vmatpush.bf16.msra.mxu0 %v4902_v30  ;;  %v490_v30 = vrot.slane %v5461_v60, 1 }
  0xd1   : > { %1374 = vmatmul.bf16.gmra.mxu3 %v5450_v56  ;;  %v5785_v57 = vpop.f32.mrf.mxu2 }
  0xd2   : > { %1515 = vmatpush.bf16.msrb.mxu2 %v4917_v34  ;;  %v493_v34 = vrot.slane %v5529_v44, 1 }
  0xd3   : > { %v5751_v8 = vpop.f32.mrf.mxu0  ;;  %1397 = vmatpush.bf16.msra.mxu0 %v4901_v49  ;;  %v491_v49 = vsel %vm485_vm1, %v489_v21, %v490_v30 }
  0xd4   : > { %v5743_v28 = vpop.f32.mrf.mxu3  ;;  %v5753_v63 = vpop.f32.mrf.mxu1  ;;  %1457 = vmatmul.bf16.vlgmr.msrb.gmra.mxu1 %v491_v49 }
  0xd5   : > { %1516 = vmatmul.bf16.vlgmr.msrb.gmra.mxu2 %v5512_v38 }
  0xd7   : > { %1626 = vmatpush.bf16.msrb.mxu0 %v4940_v15 }
  0xd9   : > { %v1306_v14 = vpop.f32.mrf.mxu2 }
  0xdb   : > { %v1178_v18 = vpop.f32.mrf.mxu0 }
  0xdc   : > { %v5775_v4 = vpop.f32.mrf.mxu3  ;;  %v1237_v60 = vpop.f32.mrf.mxu1 }
  0xdd   : > { %v1238_v59 = vadd.f32 %v1237_v60, %v1178_v18 }
  0xde   : > { %1285 = vmatmul.bf16.gmra.mxu0 %v491_v49 }
  0xdf   : > { %v1297_v16 = vadd.f32 %v5677_v5, %v1238_v59  ;;  %v492_v5 = vrot.slane %v5512_v38, 1 }
  0xe1   : > { %1379 = vmatmul.bf16.gmra.mxu3 %v5519_v41  ;;  %v5799_v13 = vsel %vm485_vm1, %v492_v5, %v493_v34  ;;  %v5810_v44 = vpop.f32.mrf.mxu2  ;;  %v4939_v5 = vld [vmem:[%s6833_s1 + $0x230] sm:$0xff] }
  0xe2   : > { %6872 = vst [vmem:[#allocation20_spill] sm:$0xff] %v5799_v13  ;;  %1627 = vmatpush.bf16.msrb.mxu0 %v4939_v5 }
  0xe3   : > { %v1180_v21 = vpop.f32.mrf.mxu0 }
  0xe4   : > { %v5792_v18 = vpop.f32.mrf.mxu3  ;;  %v1239_v30 = vpop.f32.mrf.mxu1  ;;  %1462 = vmatmul.bf16.gmra.mxu1 %v5799_v13 }
  0xe5   : > { %1521 = vmatmul.bf16.gmra.mxu2 %v5477_v3 }
  0xe6   : > { %1628 = vmatpush.bf16.msrb.mxu0 %v4938_v33  ;;  %v1240_v33 = vadd.f32 %v1239_v30, %v1180_v21 }
  0xeb   : > { %v1183_v60 = vpop.f32.mrf.mxu0 }
  0xec   : > { %v5796_v53 = vpop.f32.mrf.mxu3  ;;  %v1242_v59 = vpop.f32.mrf.mxu1 }
  0xed   : > { %v1243_v15 = vadd.f32 %v1242_v59, %v1183_v60 }
  0xee   : > { %1290 = vmatmul.bf16.gmra.mxu0 %v5799_v13 }
  0xef   : > { %v1302_v49 = vadd.f32 %v1301_v62, %v1243_v15  ;;  %v1311_v15 = vpop.f32.mrf.mxu2 }
  0xf1   : > { %1384 = vmatmul.bf16.gmra.mxu3 %v5802_v26 }
  0xf3   : > { %v1185_v12 = vpop.f32.mrf.mxu0 }
  0xf4   : > { %v5808_v38 = vpop.f32.mrf.mxu3  ;;  %v1244_v46 = vpop.f32.mrf.mxu1  ;;  %1467 = vmatmul.bf16.gmra.mxu1 %v5506_v36 }
  0xf5   : > { %1526 = vmatmul.bf16.gmra.mxu2 %v5543_v52  ;;  %v1245_v21 = vadd.f32 %v1244_v46, %v1185_v12  ;;  %v4936_v12 = vld [vmem:[%s6833_s1 + $0x218] sm:$0xff] }
  0xfb   : > { %v1188_v34 = vpop.f32.mrf.mxu0 }
  0xfc   : > { %v5815_v62 = vpop.f32.mrf.mxu3  ;;  %v1247_v60 = vpop.f32.mrf.mxu1 }
  0xfd   : > { %v1248_v59 = vadd.f32 %v1247_v60, %v1188_v34  ;;  %v5826_v34 = vpop.f32.mrf.mxu2 }
  0xfe   : > { %1398 = vmatmul.bf16.vlgmr.msra.gmra.mxu0 %v5509_v37 }
  0xff   : > { %v1307_v3 = vadd.f32 %v1306_v14, %v1248_v59 }
 0x101   : > { %1575 = vmatmul.bf16.vlgmr.msra.gmra.mxu3 %v5557_v2 }
 0x103   : > { %v1190_v0 = vpop.f32.mrf.mxu0 }
 0x104   : > { %v5821_v11 = vpop.f32.mrf.mxu3  ;;  %v1249_v10 = vpop.f32.mrf.mxu1  ;;  %1472 = vmatmul.bf16.gmra.mxu1 %v5554_v22 }
 0x105   : > { %6873 = vst [vmem:[#allocation21_spill] sm:$0xff] %v5821_v11  ;;  %v1250_v5 = vadd.f32 %v1249_v10, %v1190_v0  ;;  %1531 = vmatmul.bf16.gmra.mxu2 %v5572_v29  ;;  %v1316_v10 = vpop.f32.mrf.mxu2 }
 0x10b   : > { %v1193_v37 = vpop.f32.mrf.mxu0 }
 0x10c   : > { %v5828_v14 = vpop.f32.mrf.mxu3  ;;  %v1252_v60 = vpop.f32.mrf.mxu1 }
 0x10d   : > { %6874 = vst [vmem:[#allocation22_spill] sm:$0xff] %v5828_v14  ;;  %v1253_v59 = vadd.f32 %v1252_v60, %v1193_v37  ;;  %v1299_v14 = vadd.f32 %v5716_v31, %v1240_v33  ;;  %v5839_v37 = vpop.f32.mrf.mxu2 }
 0x10e   : > { %1403 = vmatmul.bf16.gmra.mxu0 %v5557_v2  ;;  %v4937_v2 = vld [vmem:[%s6833_s1 + $0x220] sm:$0xff] }
 0x10f   : > { %v1312_v52 = vadd.f32 %v1311_v15, %v1253_v59  ;;  %1629 = vmatpush.bf16.msrb.mxu0 %v4937_v2 }
 0x111   : > { %1580 = vmatmul.bf16.gmra.mxu3 %v5581_v51 }
 0x113   : > { %v1195_v36 = vpop.f32.mrf.mxu0  ;;  %1630 = vmatpush.bf16.msrb.mxu0 %v4936_v12 }
 0x114   : > { %v1355_v0 = vpop.f32.mrf.mxu3  ;;  %1477 = vmatmul.bf16.gmra.mxu1 %v5578_v50 }
 0x115   : > { %v5834_v9 = vadd.f32 %v1355_v0, %v1297_v16  ;;  %1536 = vmatmul.bf16.gmra.mxu2 %v5593_v61  ;;  %v1321_v30 = vpop.f32.mrf.mxu2 }
 0x11b   : > { %v1198_v15 = vpop.f32.mrf.mxu0 }
 0x11c   : > { %v1357_v13 = vpop.f32.mrf.mxu3  ;;  %v1258_v29 = vadd.f32 %v5650_v32, %v1198_v15 }
 0x11d   : > { %v5837_v11 = vadd.f32 %v1357_v13, %v1299_v14  ;;  %v1304_v14 = vadd.f32 %v5785_v57, %v1245_v21  ;;  %v1323_v61 = vpop.f32.mrf.mxu2 }
 0x11e   : > { %v1317_v60 = vadd.f32 %v1316_v10, %v1258_v29  ;;  %1408 = vmatmul.bf16.gmra.mxu0 %v5581_v51 }
 0x121   : > { %1585 = vmatmul.bf16.gmra.mxu3 %v5601_v20 }
 0x123   : > { %v1200_v16 = vpop.f32.mrf.mxu0 }
 0x124   : > { %v1360_v13 = vpop.f32.mrf.mxu3  ;;  %1482 = vmatmul.bf16.gmra.mxu1 %v5598_v19 }
 0x125   : > { %v5849_v31 = vadd.f32 %v1360_v13, %v1302_v49  ;;  %1541 = vmatmul.bf16.gmra.mxu2 %v5385_v23  ;;  %v1326_v15 = vpop.f32.mrf.mxu2 }
 0x12b   : > { %v1203_v10 = vpop.f32.mrf.mxu0 }
 0x12c   : > { %v1362_v59 = vpop.f32.mrf.mxu3  ;;  %v1263_v51 = vadd.f32 %v5685_v54, %v1203_v10 }
 0x12d   : > { %v5852_v32 = vadd.f32 %v1362_v59, %v1304_v14 }
 0x12e   : > { %v1322_v0 = vadd.f32 %v1321_v30, %v1263_v51  ;;  %1413 = vmatmul.bf16.gmra.mxu0 %v5601_v20  ;;  %v1309_v20 = vadd.f32 %v5810_v44, %v1250_v5  ;;  %v1328_v30 = vpop.f32.mrf.mxu2 }
 0x131   : > { %1590 = vmatmul.bf16.gmra.mxu3 %v5615_v48 }
 0x133   : > { %v1205_v49 = vpop.f32.mrf.mxu0 }
 0x134   : > { %v1365_v46 = vpop.f32.mrf.mxu3  ;;  %v1265_v54 = vadd.f32 %v5714_v24, %v1205_v49  ;;  %1487 = vmatmul.bf16.gmra.mxu1 %v5612_v45  ;;  %v1254_v24 = vpop.f32.mrf.mxu1 }
 0x135   : > { %v5862_v57 = vadd.f32 %v1365_v46, %v1307_v3  ;;  %1546 = vmatmul.bf16.gmra.mxu2 %v5450_v56  ;;  %v1255_v59 = vadd.f32 %v1254_v24, %v1195_v36  ;;  %v1225_v36 = vadd.f32 %v5654_v39, %v5652_v35  ;;  %v1230_v39 = vadd.f32 %v5692_v42, %v5690_v47  ;;  %v5919_v47 = vld [vmem:[%s5333_s26 + $0x84] sm:$0xff] }
 0x136   : > { %v1324_v33 = vadd.f32 %v1323_v61, %v1265_v54  ;;  %v548_v42 = vrot.slane %v5802_v26, 1 }
 0x137   : > { %v1314_v56 = vadd.f32 %v5826_v34, %v1255_v59  ;;  %v536_v59 = vshrl.u32 %v5802_v26, 16 }
 0x13b   : > { %v1208_v23 = vpop.f32.mrf.mxu0 }
 0x13c   : > { %v1367_v2 = vpop.f32.mrf.mxu3  ;;  %v1268_v13 = vadd.f32 %v5743_v28, %v1208_v23  ;;  %v4935_v28 = vld [vmem:[%s6833_s1 + $0x210] sm:$0xff] }
 0x13d   : > { %v5866_v29 = vadd.f32 %v1367_v2, %v1309_v20  ;;  %1631 = vmatpush.bf16.msrb.mxu0 %v4935_v28 }
 0x13e   : > { %v5869_v21 = vadd.f32 %v1326_v15, %v1268_v13  ;;  %1418 = vmatmul.bf16.gmra.mxu0 %v5615_v48  ;;  %v260_v15 = vld [vmem:[%s5333_s26 + $0x80] sm:$0x1] }
 0x13f   : > { %v533_v2 = vunpack.c.l.b16 %v260_v15  ;;  %v4933_v13 = vld [vmem:[%s6833_s1 + $0x200] sm:$0xff] }
 0x141   : > { %1595 = vmatmul.bf16.gmra.mxu3 %v5629_v7 }
 0x143   : > { %v1210_v5 = vpop.f32.mrf.mxu0 }
 0x144   : > { %v1370_v3 = vpop.f32.mrf.mxu3  ;;  %v1270_v14 = vadd.f32 %v5775_v4, %v1210_v5  ;;  %1492 = vmatmul.bf16.gmra.mxu1 %v5626_v6 }
 0x145   : > { %v5875_v44 = vadd.f32 %v1370_v3, %v1312_v52  ;;  %1551 = vmatmul.bf16.gmra.mxu2 %v5519_v41  ;;  %v534_v3 = vpack.c.b16 %v533_v2, %v533_v2 }
 0x146   : > { %v5881_v48 = vadd.f32 %v1328_v30, %v1270_v14 }
 0x14b   : > { %v1281_v61 = vpop.f32.mrf.mxu0 }
 0x14c   : > { %v1372_v10 = vpop.f32.mrf.mxu3  ;;  %v1282_v52 = vadd.f32 %v1281_v61, %v5643_v27  ;;  %v4934_v27 = vld [vmem:[%s6833_s1 + $0x208] sm:$0xff] }
 0x14d   : > { %v5884_v51 = vadd.f32 %v1372_v10, %v1314_v56  ;;  %1632 = vmatpush.bf16.msrb.mxu0 %v4934_v27  ;;  %v543_v10 = vshll.u32 %v534_v3, 16 }
 0x14e   : > { %1423 = vmatmul.bf16.gmra.mxu0 %v5629_v7  ;;  %v1260_v7 = vadd.f32 %v5659_v43, %v1200_v16  ;;  %v1341_v27 = vadd.f32 %v5792_v18, %v1282_v52 }
 0x150   : > { %v1319_v41 = vadd.f32 %v5839_v37, %v1260_v7 }
 0x151   : > { %1600 = vmatmul.bf16.gmra.mxu3 %v5446_v55  ;;  %1633 = vmatpush.bf16.msrb.mxu0 %v4933_v13 }
 0x153   : > { %v1283_v34 = vpop.f32.mrf.mxu0 }
 0x154   : > { %v1375_v4 = vpop.f32.mrf.mxu3  ;;  %v1284_v46 = vadd.f32 %v1283_v34, %v1225_v36  ;;  %1497 = vmatmul.bf16.gmra.mxu1 %v5638_v17  ;;  %v545_v36 = vrot.slane %v543_v10, 1 }
 0x155   : > { %v5893_v12 = vadd.f32 %v1375_v4, %v1317_v60  ;;  %1556 = vmatmul.bf16.gmra.mxu2 %v5802_v26  ;;  %v263_v4 = vld [vmem:[%s5333_s26 + $0x8c] sm:$0x1] }
 0x15b   : > { %v1286_v20 = vpop.f32.mrf.mxu0 }
 0x15c   : > { %v1377_v49 = vpop.f32.mrf.mxu3  ;;  %v1287_v35 = vadd.f32 %v1286_v20, %v5664_v58  ;;  %v1343_v20 = vadd.f32 %v5796_v53, %v1284_v46 }
 0x15d   : > { %v5900_v54 = vadd.f32 %v1377_v49, %v1319_v41  ;;  %v559_v41 = vunpack.c.l.b16 %v263_v4  ;;  %v564_v49 = vshll.u32 %v5919_v47, 16 }
 0x15e   : > { %1428 = vmatmul.bf16.gmra.mxu0 %v5446_v55  ;;  %v1346_v2 = vadd.f32 %v5808_v38, %v1287_v35  ;;  %v6877_v38 = vld [vmem:[#allocation22_spill] sm:$0xff] }
 0x15f   : > { %v566_v52 = vrot.slane %v564_v49, 1 }
 0x161   : > { %1605 = vmatmul.bf16.gmra.mxu3 %v5516_v40 }
 0x163   : > { %v1288_v60 = vpop.f32.mrf.mxu0 }
 0x164   : > { %v1380_v43 = vpop.f32.mrf.mxu3  ;;  %v1289_v16 = vadd.f32 %v1288_v60, %v1230_v39 }
 0x165   : > { %v5909_v37 = vadd.f32 %v1380_v43, %v1322_v0  ;;  %v549_v0 = vrot.slane %v534_v3, 1  ;;  %1561 = vmatmul.bf16.gmra.mxu2 %v5919_v47  ;;  %v6875_v3 = vld [vmem:[#allocation21_spill] sm:$0xff] }
 0x166   : > { %v1348_v53 = vadd.f32 %v5815_v62, %v1289_v16  ;;  %v6878_v62 = vld [vmem:[#allocation16_spill] sm:$0xff] }
 0x167   : > { %v5927_v5 = vsel %vm485_vm1, %v548_v42, %v549_v0 }
 0x168   : > { %1502 = vmatmul.bf16.gmra.mxu1 %v5927_v5 }
 0x16b   : > { %v1291_v55 = vpop.f32.mrf.mxu0 }
 0x16c   : > { %v1382_v58 = vpop.f32.mrf.mxu3  ;;  %v1292_v24 = vadd.f32 %v1291_v55, %v5722_v1  ;;  %v1235_v1 = vadd.f32 %v5753_v63, %v5751_v8 }
 0x16d   : > { %v5912_v23 = vadd.f32 %v1382_v58, %v1324_v33  ;;  %v538_v33 = vshll.u32 %v5802_v26, 16  ;;  %v5945_v26 = vpack.c.b16 %v559_v41, %v559_v41 }
 0x16e   : > { %1433 = vmatmul.bf16.gmra.mxu0 %v5516_v40  ;;  %v1351_v42 = vadd.f32 %v6875_v3, %v1292_v24 }
 0x16f   : > { %v540_v56 = vrot.slane %v538_v33, 1  ;;  %v569_v43 = vshll.u32 %v5945_v26, 16 }
 0x171   : > { %1610 = vmatmul.bf16.gmra.mxu3 %v5560_v25  ;;  %v541_v61 = vor.u32 %v540_v56, %v536_v59  ;;  %v571_v15 = vrot.slane %v569_v43, 1 }
 0x173   : > { %v1293_v28 = vpop.f32.mrf.mxu0 }
 0x174   : > { %v1385_v30 = vpop.f32.mrf.mxu3  ;;  %v1294_v14 = vadd.f32 %v1293_v28, %v1235_v1  ;;  %v6876_v1 = vld [vmem:[#allocation20_spill] sm:$0xff] }
 0x175   : > { %v5933_v40 = vadd.f32 %v1385_v30, %v5869_v21  ;;  %v546_v21 = vsel %vm354_vm0, %v541_v61, %v545_v36 }
 0x176   : > { %v1353_v35 = vadd.f32 %v6877_v38, %v1294_v14 }
 0x17b   : > { %v1399_v8 = vpop.f32.mrf.mxu0 }
 0x17c   : > { %v1387_v34 = vpop.f32.mrf.mxu3  ;;  %v5941_v63 = vadd.f32 %v1399_v8, %v1341_v27  ;;  %v1458_v8 = vpop.f32.mrf.mxu1 }
 0x17d   : > { %v5939_v7 = vadd.f32 %v1387_v34, %v5881_v48  ;;  %v562_v48 = vshrl.u32 %v5919_v47, 16 }
 0x17e   : > { %1438 = vmatmul.bf16.gmra.mxu0 %v5560_v25 }
 0x17f   : > { %v567_v60 = vor.u32 %v566_v52, %v562_v48 }
 0x181   : > { %1615 = vmatmul.bf16.gmra.mxu3 %v546_v21  ;;  %v572_v55 = vsel %vm354_vm0, %v567_v60, %v571_v15 }
 0x183   : > { %v1401_v39 = vpop.f32.mrf.mxu0 }
 0x184   : > { %v5949_v18 = vadd.f32 %v1401_v39, %v1343_v20 }
 0x18b   : > { %v1404_v25 = vpop.f32.mrf.mxu0 }
 0x18c   : > { %v5954_v58 = vadd.f32 %v1404_v25, %v1346_v2 }
 0x18e   : > { %1443 = vmatmul.bf16.gmra.mxu0 %v546_v21 }
 0x191   : > { %1620 = vmatmul.bf16.gmra.mxu3 %v572_v55  ;;  %v1804_v55 = vld [vmem:[#allocation2 + $0x8] sm:$0x1] }
 0x193   : > { %v1406_v46 = vpop.f32.mrf.mxu0 }
 0x194   : > { %v5958_v13 = vadd.f32 %v1406_v46, %v1348_v53 }
 0x19b   : > { %v1409_v0 = vpop.f32.mrf.mxu0 }
 0x19c   : > { %v5961_v33 = vadd.f32 %v1409_v0, %v1351_v42  ;;  %v1459_v42 = vadd.f32 %v1458_v8, %v5941_v63  ;;  %v6051_v63 = vld [vmem:[%s6835_s3] ss:$0 sm:$0xff] }
 0x19e   : > { %1634 = vmatmul.bf16.vlgmr.msrb.gmra.mxu0 %v6876_v1  ;;  %v1775_v1 = vld [vmem:[#allocation2 + $0xc] sm:$0x1] }
 0x1a3   : > { %v1411_v30 = vpop.f32.mrf.mxu0 }
 0x1a4   : > { %v5965_v28 = vadd.f32 %v1411_v30, %v1353_v35 }
 0x1ab   : > { %v1414_v59 = vpop.f32.mrf.mxu0 }
 0x1ac   : > { %v5968_v56 = vadd.f32 %v1414_v59, %v5834_v9 }
 0x1ae   : > { %1639 = vmatmul.bf16.gmra.mxu0 %v6878_v62 }
 0x1b3   : > { %v1416_v16 = vpop.f32.mrf.mxu0 }
 0x1b4   : > { %v5972_v10 = vadd.f32 %v1416_v16, %v5837_v11 }
 0x1bb   : > { %v1419_v24 = vpop.f32.mrf.mxu0 }
 0x1bc   : > { %v5975_v61 = vadd.f32 %v1419_v24, %v5849_v31 }
 0x1be   : > { %1644 = vmatmul.bf16.gmra.mxu0 %v5554_v22 }
 0x1c3   : > { %v1421_v14 = vpop.f32.mrf.mxu0 }
 0x1c4   : > { %v5979_v36 = vadd.f32 %v1421_v14, %v5852_v32 }
 0x1cb   : > { %v1424_v4 = vpop.f32.mrf.mxu0 }
 0x1cc   : > { %v5982_v9 = vadd.f32 %v1424_v4, %v5862_v57  ;;  %v1517_v57 = vpop.f32.mrf.mxu2  ;;  %v6056_v4 = vld [vmem:[%s6835_s3 + $0x1] ss:$0 sm:$0xff] }
 0x1cd   : > { %v1518_v30 = vadd.f32 %v1517_v57, %v1459_v42 }
 0x1ce   : > { %1649 = vmatmul.bf16.gmra.mxu0 %v5578_v50  ;;  %v1576_v50 = vpop.f32.mrf.mxu3 }
 0x1cf   : > { %v1577_v62 = vadd.f32 %v1576_v50, %v1518_v30 }
 0x1d3   : > { %v1426_v34 = vpop.f32.mrf.mxu0 }
 0x1d4   : > { %v5986_v11 = vadd.f32 %v1426_v34, %v5866_v29  ;;  %v1460_v29 = vpop.f32.mrf.mxu1  ;;  %v1519_v20 = vpop.f32.mrf.mxu2 }
 0x1db   : > { %v1429_v27 = vpop.f32.mrf.mxu0 }
 0x1dc   : > { %v5989_v31 = vadd.f32 %v1429_v27, %v5875_v44  ;;  %v1463_v48 = vpop.f32.mrf.mxu1  ;;  %v1522_v52 = vpop.f32.mrf.mxu2 }
 0x1dd   : > { %v1464_v57 = vadd.f32 %v1463_v48, %v5954_v58  ;;  %v574_v58 = vrot.slane %v5919_v47, 1  ;;  %v575_v48 = vrot.slane %v5945_v26, 1 }
 0x1de   : > { %1654 = vmatmul.bf16.gmra.mxu0 %v5598_v19  ;;  %v1578_v19 = vpop.f32.mrf.mxu3 }
 0x1df   : > { %v576_v26 = vsel %vm485_vm1, %v574_v58, %v575_v48  ;;  %v1781_v48 = vld [vmem:[#allocation2 + $0x24] sm:$0x1] }
 0x1e3   : > { %v1431_v22 = vpop.f32.mrf.mxu0 }
 0x1e4   : > { %v5993_v32 = vadd.f32 %v1431_v22, %v5884_v51  ;;  %v6023_v2 = vpop.f32.mrf.mxu2 }
 0x1e6   : > { %v6011_v43 = vpop.f32.mrf.mxu3 }
 0x1eb   : > { %v1434_v21 = vpop.f32.mrf.mxu0 }
 0x1ec   : > { %v5996_v41 = vadd.f32 %v1434_v21, %v5893_v12  ;;  %v6036_v38 = vpop.f32.mrf.mxu2 }
 0x1ee   : > { %1659 = vmatmul.bf16.gmra.mxu0 %v5612_v45  ;;  %v6030_v46 = vpop.f32.mrf.mxu3 }
 0x1f3   : > { %v1436_v49 = vpop.f32.mrf.mxu0 }
 0x1f4   : > { %v6000_v44 = vadd.f32 %v1436_v49, %v5900_v54  ;;  %v1772_v54 = vld [vmem:[#allocation2] sm:$0x1]  ;;  %v6060_v27 = vpop.f32.mrf.mxu2 }
 0x1f6   : > { %v6043_v59 = vpop.f32.mrf.mxu3 }
 0x1fb   : > { %v1439_v39 = vpop.f32.mrf.mxu0 }
 0x1fc   : > { %v6003_v51 = vadd.f32 %v1439_v39, %v5909_v37  ;;  %v1773_v37 = vsel %vm6007_vm4, 0, %v1772_v54  ;;  %v1778_v39 = vld [vmem:[#allocation2 + $0x18] sm:$0x1] }
 0x1fd   : > { %1774 = vst [vmem:[#allocation2] sm:$0x1] %v1773_v37  ;;  %v1779_v37 = vsel %vm6007_vm4, 0, %v1778_v39 }
 0x1fe   : > { %1664 = vmatmul.bf16.gmra.mxu0 %v5626_v6  ;;  %v1465_v6 = vpop.f32.mrf.mxu1  ;;  %v6066_v50 = vpop.f32.mrf.mxu3  ;;  %1780 = vst [vmem:[#allocation2 + $0x18] sm:$0x1] %v1779_v37 }
 0x203   : > { %v1441_v12 = vpop.f32.mrf.mxu0 }
 0x204   : > { %v6014_v60 = vadd.f32 %v1441_v12, %v5912_v23  ;;  %v1805_v23 = vsel %vm6019_vm6, 0, %v1804_v55  ;;  %v6075_v55 = vpop.f32.mrf.mxu2 }
 0x205   : > { %1806 = vst [vmem:[#allocation2 + $0x8] sm:$0x1] %v1805_v23 }
 0x206   : > { %v6033_v3 = vpop.f32.mrf.mxu1 }
 0x207   : > { %v1469_v39 = vadd.f32 %v6033_v3, %v5961_v33 }
 0x20b   : > { %v1444_v25 = vpop.f32.mrf.mxu0 }
 0x20c   : > { %v6026_v53 = vadd.f32 %v1444_v25, %v5933_v40  ;;  %v1776_v40 = vsel %vm6007_vm4, 0, %v1775_v1  ;;  %v1523_v25 = vadd.f32 %v1522_v52, %v1464_v57  ;;  %v1466_v1 = vadd.f32 %v1465_v6, %v5958_v13  ;;  %v2038_v52 = vld [vmem:[#allocation2] sm:$0xf] }
 0x20d   : > { %1777 = vst [vmem:[#allocation2 + $0xc] sm:$0x1] %v1776_v40 }
 0x20e   : > { %1669 = vmatmul.bf16.gmra.mxu0 %v5638_v17  ;;  %v1461_v17 = vadd.f32 %v1460_v29, %v5949_v18  ;;  %v6046_v16 = vpop.f32.mrf.mxu1  ;;  %v1582_v30 = vadd.f32 %v6011_v43, %v1523_v25 }
 0x210   : > { %v1520_v18 = vadd.f32 %v1519_v20, %v1461_v17 }
 0x212   : > { %v1579_v21 = vadd.f32 %v1578_v19, %v1520_v18  ;;  %v1525_v18 = vadd.f32 %v6023_v2, %v1466_v1  ;;  %v1528_v1 = vadd.f32 %v6036_v38, %v1469_v39 }
 0x213   : > { %v1446_v0 = vpop.f32.mrf.mxu0 }
 0x214   : > { %v6039_v35 = vadd.f32 %v1446_v0, %v5939_v7  ;;  %v1807_v7 = vld [vmem:[#allocation2 + $0x14] sm:$0x1] }
 0x215   : > { %v1808_v34 = vsel %vm6019_vm6, 0, %v1807_v7  ;;  %v6086_v7 = vpop.f32.mrf.mxu3 }
 0x216   : > { %1809 = vst [vmem:[#allocation2 + $0x14] sm:$0x1] %v1808_v34  ;;  %v6068_v12 = vpop.f32.mrf.mxu1 }
 0x21b   : > { %v1635_v24 = vpop.f32.mrf.mxu0 }
 0x21c   : > { %v1636_v14 = vadd.f32 %v1635_v24, %v1577_v62  ;;  %v1810_v24 = vld [vmem:[#allocation2 + $0x20] sm:$0x1] }
 0x21d   : > { %v1811_v34 = vsel %vm6019_vm6, 0, %v1810_v24  ;;  %v1471_v24 = vadd.f32 %v6046_v16, %v5965_v28 }
 0x21e   : > { %v1687_v22 = vmul.f32 %v6051_v63, %v1636_v14  ;;  %1674 = vmatmul.bf16.gmra.mxu0 %v5927_v5  ;;  %v6093_v43 = vpop.f32.mrf.mxu1  ;;  %1812 = vst [vmem:[#allocation2 + $0x20] sm:$0x1] %v1811_v34 }
 0x220   : > { %v1709_v8 = vadd.f32 %v6056_v4, %v1687_v22 }
 0x222   : > { %v1729_v29 = vmax.f32 %v1709_v8, 0.0 }
 0x223   : > { %v1637_v49 = vpop.f32.mrf.mxu0 }
 0x224   : > { %v1749_v54 = vpack.c.bf16 %v1729_v29, %v1729_v29  ;;  %v1638_v20 = vadd.f32 %v1637_v49, %v1579_v21  ;;  %v1584_v49 = vadd.f32 %v6030_v46, %v1525_v18  ;;  %v1813_v18 = vld [vmem:[#allocation2 + $0x2c] sm:$0x1] }
 0x226   : > { %v1837_v5 = vshrl.u32 %v1749_v54, 16  ;;  %v1688_v19 = vmul.f32 %v6051_v63, %v1638_v20  ;;  %v1840_v42 = vshll.u32 %v1749_v54, 16  ;;  %v2042_v54 = vld [vmem:[#allocation2 + $0x8] sm:$0x1]  ;;  %v6105_v20 = vpop.f32.mrf.mxu2 }
 0x228   : > { %v1839_v23 = vrot.slane %v1837_v5, 7  ;;  %v1710_v0 = vadd.f32 %v6056_v4, %v1688_v19 }
 0x22a   : > { %v1842_v62 = vor.u32 %v1840_v42, %v1839_v23  ;;  %v1730_v47 = vmax.f32 %v1710_v0, 0.0  ;;  %v1843_v37 = vrot.slane %v1839_v23, 4  ;;  %v1782_v0 = vsel %vm6007_vm4, 0, %v1781_v48  ;;  %v6114_v23 = vpop.f32.mrf.mxu3 }
 0x22b   : > { %v1640_v17 = vpop.f32.mrf.mxu0  ;;  %1783 = vst [vmem:[#allocation2 + $0x24] sm:$0x1] %v1782_v0 }
 0x22c   : > { %v2039_v14 = vsel %vm6080_vm8, %v1842_v62, %v2038_v52  ;;  %v1750_v13 = vpack.c.bf16 %v1730_v47, %v1730_v47  ;;  %v1641_v6 = vadd.f32 %v1640_v17, %v1582_v30  ;;  %v6117_v62 = vpop.f32.mrf.mxu1 }
 0x22d   : > { %2040 = vst [vmem:[#allocation2] sm:$0xf] %v2039_v14  ;;  %v2045_v14 = vld [vmem:[#allocation2 + $0xc] sm:$0xf] }
 0x22e   : > { %v1845_v22 = vshrl.u32 %v1750_v13, 16  ;;  %v1689_v8 = vmul.f32 %v6051_v63, %v1641_v6  ;;  %1679 = vmatmul.bf16.gmra.mxu0 %v576_v26  ;;  %v1848_v57 = vshll.u32 %v1750_v13, 16  ;;  %v1587_v13 = vadd.f32 %v6043_v59, %v1528_v1 }
 0x230   : > { %v1847_v21 = vrot.slane %v1845_v22, 7  ;;  %v1711_v29 = vadd.f32 %v6056_v4, %v1689_v8  ;;  %v6123_v22 = vpop.f32.mrf.mxu2 }
 0x232   : > { %v1850_v25 = vor.u32 %v1848_v57, %v1847_v21  ;;  %v1852_v5 = vrot.slane %v1847_v21, 4  ;;  %v1731_v19 = vmax.f32 %v1711_v29, 0.0  ;;  %v1814_v29 = vsel %vm6019_vm6, 0, %v1813_v18  ;;  %v6131_v16 = vpop.f32.mrf.mxu3 }
 0x233   : > { %v1642_v58 = vpop.f32.mrf.mxu0  ;;  %1815 = vst [vmem:[#allocation2 + $0x2c] sm:$0x1] %v1814_v29 }
 0x234   : > { %v1851_v46 = vsel %vm6101_vm10, %v1843_v37, %v1850_v25  ;;  %v2043_v33 = vsel %vm6007_vm4, %v1852_v5, %v2042_v54  ;;  %v1751_v3 = vpack.c.bf16 %v1731_v19, %v1731_v19  ;;  %v1643_v42 = vadd.f32 %v1642_v58, %v1584_v49  ;;  %v2049_v19 = vld [vmem:[#allocation2 + $0x14] sm:$0x1]  ;;  %v6137_v58 = vpop.f32.mrf.mxu1 }
 0x235   : > { %2041 = vst [vmem:[#allocation2 + $0x4] sm:$0xf] %v1851_v46  ;;  %v1530_v49 = vadd.f32 %v6060_v27, %v1471_v24  ;;  %v1474_v5 = vadd.f32 %v6068_v12, %v5968_v56 }
 0x236   : > { %2044 = vst [vmem:[#allocation2 + $0x8] sm:$0x1] %v2043_v33  ;;  %v1854_v52 = vshrl.u32 %v1751_v3, 16  ;;  %v1690_v30 = vmul.f32 %v6051_v63, %v1643_v42  ;;  %v1857_v17 = vshll.u32 %v1751_v3, 16  ;;  %v1784_v42 = vld [vmem:[#allocation2 + $0x30] sm:$0x1] }
 0x237   : > { %v1589_v25 = vadd.f32 %v6066_v50, %v1530_v49  ;;  %v1785_v56 = vsel %vm6007_vm4, 0, %v1784_v42  ;;  %v1533_v12 = vadd.f32 %v6075_v55, %v1474_v5  ;;  %v1787_v42 = vld [vmem:[#allocation2 + $0x3c] sm:$0x1] }
 0x238   : > { %v1856_v47 = vrot.slane %v1854_v52, 7  ;;  %v1712_v26 = vadd.f32 %v6056_v4, %v1690_v30  ;;  %v6146_v30 = vpop.f32.mrf.mxu2  ;;  %1786 = vst [vmem:[#allocation2 + $0x30] sm:$0x1] %v1785_v56 }
 0x23a   : > { %v1859_v38 = vor.u32 %v1857_v17, %v1856_v47  ;;  %v1732_v6 = vmax.f32 %v1712_v26, 0.0  ;;  %v1860_v27 = vrot.slane %v1856_v47, 4 }
 0x23b   : > { %v1645_v34 = vpop.f32.mrf.mxu0 }
 0x23c   : > { %v2046_v8 = vsel %vm6080_vm8, %v1859_v38, %v2045_v14  ;;  %v1752_v21 = vpack.c.bf16 %v1732_v6, %v1732_v6  ;;  %v1646_v57 = vadd.f32 %v1645_v34, %v1587_v13  ;;  %v1476_v13 = vadd.f32 %v6093_v43, %v5972_v10  ;;  %v2052_v38 = vld [vmem:[#allocation2 + $0x18] sm:$0xf]  ;;  %v6153_v34 = vpop.f32.mrf.mxu3 }
 0x23d   : > { %2047 = vst [vmem:[#allocation2 + $0xc] sm:$0xf] %v2046_v8  ;;  %v1592_v6 = vadd.f32 %v6086_v7, %v1533_v12 }
 0x23e   : > { %v1862_v28 = vshrl.u32 %v1752_v21, 16  ;;  %v1691_v59 = vmul.f32 %v6051_v63, %v1646_v57  ;;  %v1865_v54 = vshll.u32 %v1752_v21, 16  ;;  %v1816_v21 = vld [vmem:[#allocation2 + $0x38] sm:$0x1]  ;;  %v1483_v57 = vpop.f32.mrf.mxu1  ;;  %v1535_v10 = vadd.f32 %v6105_v20, %v1476_v13  ;;  %v2059_v13 = vld [vmem:[#allocation2 + $0x24] sm:$0xf] }
 0x240   : > { %v1864_v39 = vrot.slane %v1862_v28, 7  ;;  %v1713_v37 = vadd.f32 %v6056_v4, %v1691_v59  ;;  %v1817_v59 = vsel %vm6019_vm6, 0, %v1816_v21  ;;  %v1594_v5 = vadd.f32 %v6114_v23, %v1535_v10 }
 0x241   : > { %1818 = vst [vmem:[#allocation2 + $0x38] sm:$0x1] %v1817_v59 }
 0x242   : > { %v1867_v48 = vor.u32 %v1865_v54, %v1864_v39  ;;  %v1869_v46 = vrot.slane %v1864_v39, 4  ;;  %v1733_v33 = vmax.f32 %v1713_v37, 0.0  ;;  %v6161_v39 = vpop.f32.mrf.mxu2 }
 0x243   : > { %v1647_v3 = vpop.f32.mrf.mxu0 }
 0x244   : > { %v1868_v0 = vsel %vm6101_vm10, %v1860_v27, %v1867_v48  ;;  %v2050_v1 = vsel %vm6007_vm4, %v1869_v46, %v2049_v19  ;;  %v1753_v52 = vpack.c.bf16 %v1733_v33, %v1733_v33  ;;  %v1648_v50 = vadd.f32 %v1647_v3, %v1589_v25  ;;  %v2056_v27 = vld [vmem:[#allocation2 + $0x20] sm:$0x1] }
 0x245   : > { %2048 = vst [vmem:[#allocation2 + $0x10] sm:$0xf] %v1868_v0  ;;  %v1479_v19 = vadd.f32 %v6117_v62, %v5975_v61  ;;  %v6167_v0 = vpop.f32.mrf.mxu3  ;;  %v1788_v61 = vsel %vm6007_vm4, 0, %v1787_v42 }
 0x246   : > { %2051 = vst [vmem:[#allocation2 + $0x14] sm:$0x1] %v2050_v1  ;;  %v1871_v47 = vshrl.u32 %v1753_v52, 16  ;;  %v1692_v17 = vmul.f32 %v6051_v63, %v1648_v50  ;;  %v1874_v24 = vshll.u32 %v1753_v52, 16  ;;  %v1485_v56 = vpop.f32.mrf.mxu1 }
 0x247   : > { %v1538_v62 = vadd.f32 %v6123_v22, %v1479_v19  ;;  %1789 = vst [vmem:[#allocation2 + $0x3c] sm:$0x1] %v1788_v61 }
 0x248   : > { %v1873_v26 = vrot.slane %v1871_v47, 7  ;;  %v1714_v14 = vadd.f32 %v6056_v4, %v1692_v17 }
 0x24a   : > { %v1876_v55 = vor.u32 %v1874_v24, %v1873_v26  ;;  %v1734_v18 = vmax.f32 %v1714_v14, 0.0  ;;  %v1877_v48 = vrot.slane %v1873_v26, 4  ;;  %v1481_v14 = vadd.f32 %v6137_v58, %v5979_v36 }
 0x24b   : > { %v1650_v8 = vpop.f32.mrf.mxu0 }
 0x24c   : > { %v2053_v29 = vsel %vm6080_vm8, %v1876_v55, %v2052_v38  ;;  %v1754_v49 = vpack.c.bf16 %v1734_v18, %v1734_v18  ;;  %v1651_v28 = vadd.f32 %v1650_v8, %v1592_v6  ;;  %v1597_v38 = vadd.f32 %v6131_v16, %v1538_v62  ;;  %v1544_v6 = vpop.f32.mrf.mxu2  ;;  %v1819_v8 = vld [vmem:[#allocation2 + $0x44] sm:$0x1] }
 0x24d   : > { %2054 = vst [vmem:[#allocation2 + $0x18] sm:$0xf] %v2053_v29  ;;  %v1540_v59 = vadd.f32 %v6146_v30, %v1481_v14  ;;  %v1603_v36 = vpop.f32.mrf.mxu3 }
 0x24e   : > { %v1879_v43 = vshrl.u32 %v1754_v49, 16  ;;  %v1693_v7 = vmul.f32 %v6051_v63, %v1651_v28  ;;  %v1882_v37 = vshll.u32 %v1754_v49, 16  ;;  %v1820_v28 = vsel %vm6019_vm6, 0, %v1819_v8  ;;  %v1488_v10 = vpop.f32.mrf.mxu1 }
 0x24f   : > { %1821 = vst [vmem:[#allocation2 + $0x44] sm:$0x1] %v1820_v28 }
 0x250   : > { %v1881_v54 = vrot.slane %v1879_v43, 7  ;;  %v1715_v25 = vadd.f32 %v6056_v4, %v1693_v7 }
 0x252   : > { %v1884_v46 = vor.u32 %v1882_v37, %v1881_v54  ;;  %v1886_v20 = vrot.slane %v1881_v54, 4  ;;  %v1735_v33 = vmax.f32 %v1715_v25, 0.0  ;;  %v1599_v37 = vadd.f32 %v6153_v34, %v1540_v59 }
 0x253   : > { %v1652_v3 = vpop.f32.mrf.mxu0  ;;  %v1484_v25 = vadd.f32 %v1483_v57, %v5982_v9 }
 0x254   : > { %v1885_v1 = vsel %vm6101_vm10, %v1877_v48, %v1884_v46  ;;  %v2057_v52 = vsel %vm6007_vm4, %v1886_v20, %v2056_v27  ;;  %v1755_v50 = vpack.c.bf16 %v1735_v33, %v1735_v33  ;;  %v1653_v23 = vadd.f32 %v1652_v3, %v1594_v5  ;;  %v2063_v5 = vld [vmem:[#allocation2 + $0x2c] sm:$0x1]  ;;  %v1790_v20 = vld [vmem:[#allocation2 + $0x48] sm:$0x1]  ;;  %v1547_v33 = vpop.f32.mrf.mxu2 }
 0x255   : > { %2055 = vst [vmem:[#allocation2 + $0x1c] sm:$0xf] %v1885_v1  ;;  %v1791_v9 = vsel %vm6007_vm4, 0, %v1790_v20  ;;  %v1543_v34 = vadd.f32 %v6161_v39, %v1484_v25  ;;  %v1822_v39 = vld [vmem:[#allocation2 + $0x50] sm:$0x1] }
 0x256   : > { %2058 = vst [vmem:[#allocation2 + $0x20] sm:$0x1] %v2057_v52  ;;  %v1888_v12 = vshrl.u32 %v1755_v50, 16  ;;  %v1694_v47 = vmul.f32 %v6051_v63, %v1653_v23  ;;  %v1891_v26 = vshll.u32 %v1755_v50, 16  ;;  %v1606_v23 = vpop.f32.mrf.mxu3  ;;  %v1823_v8 = vsel %vm6019_vm6, 0, %v1822_v39 }
 0x257   : > { %1792 = vst [vmem:[#allocation2 + $0x48] sm:$0x1] %v1791_v9 }
 0x258   : > { %v1890_v17 = vrot.slane %v1888_v12, 7  ;;  %v1716_v24 = vadd.f32 %v6056_v4, %v1694_v47  ;;  %v1486_v47 = vadd.f32 %v1485_v56, %v5986_v11  ;;  %1824 = vst [vmem:[#allocation2 + $0x50] sm:$0x1] %v1823_v8  ;;  %v2077_v8 = vld [vmem:[#allocation2 + $0x44] sm:$0x1] }
 0x25a   : > { %v1893_v55 = vor.u32 %v1891_v26, %v1890_v17  ;;  %v1736_v18 = vmax.f32 %v1716_v24, 0.0  ;;  %v1894_v19 = vrot.slane %v1890_v17, 4  ;;  %v2066_v17 = vld [vmem:[#allocation2 + $0x30] sm:$0xf]  ;;  %v1602_v26 = vadd.f32 %v6167_v0, %v1543_v34  ;;  %v1490_v24 = vpop.f32.mrf.mxu1  ;;  %v2073_v34 = vld [vmem:[#allocation2 + $0x3c] sm:$0xf] }
 0x25b   : > { %v1655_v22 = vpop.f32.mrf.mxu0  ;;  %v1491_v9 = vadd.f32 %v1490_v24, %v5993_v32 }
 0x25c   : > { %v2060_v21 = vsel %vm6080_vm8, %v1893_v55, %v2059_v13  ;;  %v1756_v29 = vpack.c.bf16 %v1736_v18, %v1736_v18  ;;  %v1656_v49 = vadd.f32 %v1655_v22, %v1597_v38 }
 0x25d   : > { %2061 = vst [vmem:[#allocation2 + $0x24] sm:$0xf] %v2060_v21  ;;  %v1545_v21 = vadd.f32 %v1544_v6, %v1486_v47 }
 0x25e   : > { %v1896_v58 = vshrl.u32 %v1756_v29, 16  ;;  %v1695_v16 = vmul.f32 %v6051_v63, %v1656_v49  ;;  %v1899_v7 = vshll.u32 %v1756_v29, 16  ;;  %v1549_v29 = vpop.f32.mrf.mxu2 }
 0x25f   : > { %v1604_v59 = vadd.f32 %v1603_v36, %v1545_v21 }
 0x260   : > { %v1898_v43 = vrot.slane %v1896_v58, 7  ;;  %v1717_v54 = vadd.f32 %v6056_v4, %v1695_v16  ;;  %v1489_v58 = vadd.f32 %v1488_v10, %v5989_v31  ;;  %v2070_v16 = vld [vmem:[#allocation2 + $0x38] sm:$0x1] }
 0x262   : > { %v1901_v27 = vor.u32 %v1899_v7, %v1898_v43  ;;  %v1903_v48 = vrot.slane %v1898_v43, 4  ;;  %v1737_v30 = vmax.f32 %v1717_v54, 0.0  ;;  %v1608_v43 = vpop.f32.mrf.mxu3  ;;  %v1548_v36 = vadd.f32 %v1547_v33, %v1489_v58 }
 0x263   : > { %v1657_v46 = vpop.f32.mrf.mxu0 }
 0x264   : > { %v1902_v3 = vsel %vm6101_vm10, %v1894_v19, %v1901_v27  ;;  %v2064_v42 = vsel %vm6007_vm4, %v1903_v48, %v2063_v5  ;;  %v1757_v1 = vpack.c.bf16 %v1737_v30, %v1737_v30  ;;  %v1658_v52 = vadd.f32 %v1657_v46, %v1599_v37  ;;  %v1793_v5 = vld [vmem:[#allocation2 + $0x54] sm:$0x1]  ;;  %v1493_v19 = vpop.f32.mrf.mxu1 }
 0x265   : > { %2062 = vst [vmem:[#allocation2 + $0x28] sm:$0xf] %v1902_v3  ;;  %v1794_v31 = vsel %vm6007_vm4, 0, %v1793_v5 }
 0x266   : > { %2065 = vst [vmem:[#allocation2 + $0x2c] sm:$0x1] %v2064_v42  ;;  %v1905_v57 = vshrl.u32 %v1757_v1, 16  ;;  %v1696_v50 = vmul.f32 %v6051_v63, %v1658_v52  ;;  %v1908_v62 = vshll.u32 %v1757_v1, 16  ;;  %v1552_v3 = vpop.f32.mrf.mxu2 }
 0x267   : > { %1795 = vst [vmem:[#allocation2 + $0x54] sm:$0x1] %v1794_v31 }
 0x268   : > { %v1907_v61 = vrot.slane %v1905_v57, 7  ;;  %v1718_v12 = vadd.f32 %v6056_v4, %v1696_v50  ;;  %v1607_v57 = vadd.f32 %v1606_v23, %v1548_v36 }
 0x26a   : > { %v1910_v14 = vor.u32 %v1908_v62, %v1907_v61  ;;  %v1738_v13 = vmax.f32 %v1718_v12, 0.0  ;;  %v1911_v7 = vrot.slane %v1907_v61, 4  ;;  %v1825_v12 = vld [vmem:[#allocation2 + $0x5c] sm:$0x1]  ;;  %v1611_v47 = vpop.f32.mrf.mxu3 }
 0x26b   : > { %v1660_v38 = vpop.f32.mrf.mxu0 }
 0x26c   : > { %v2067_v55 = vsel %vm6080_vm8, %v1910_v14, %v2066_v17  ;;  %v1758_v18 = vpack.c.bf16 %v1738_v13, %v1738_v13  ;;  %v1661_v22 = vadd.f32 %v1660_v38, %v1602_v26  ;;  %v1826_v14 = vsel %vm6019_vm6, 0, %v1825_v12  ;;  %v1495_v38 = vpop.f32.mrf.mxu1 }
 0x26d   : > { %2068 = vst [vmem:[#allocation2 + $0x30] sm:$0xf] %v2067_v55  ;;  %v1550_v13 = vadd.f32 %v1549_v29, %v1491_v9 }
 0x26e   : > { %v1913_v11 = vshrl.u32 %v1758_v18, 16  ;;  %v1697_v56 = vmul.f32 %v6051_v63, %v1661_v22  ;;  %v1916_v49 = vshll.u32 %v1758_v18, 16  ;;  %1827 = vst [vmem:[#allocation2 + $0x5c] sm:$0x1] %v1826_v14  ;;  %v1494_v22 = vadd.f32 %v1493_v19, %v5996_v41  ;;  %v1554_v21 = vpop.f32.mrf.mxu2 }
 0x26f   : > { %v1609_v18 = vadd.f32 %v1608_v43, %v1550_v13 }
 0x270   : > { %v1915_v0 = vrot.slane %v1913_v11, 7  ;;  %v1719_v28 = vadd.f32 %v6056_v4, %v1697_v56  ;;  %v1553_v43 = vadd.f32 %v1552_v3, %v1494_v22 }
 0x272   : > { %v1918_v54 = vor.u32 %v1916_v49, %v1915_v0  ;;  %v1920_v37 = vrot.slane %v1915_v0, 4  ;;  %v1739_v25 = vmax.f32 %v1719_v28, 0.0  ;;  %v1796_v28 = vld [vmem:[#allocation2 + $0x60] sm:$0x1] }
 0x273   : > { %v1662_v6 = vpop.f32.mrf.mxu0  ;;  %v1797_v41 = vsel %vm6007_vm4, 0, %v1796_v28 }
 0x274   : > { %v1919_v27 = vsel %vm6101_vm10, %v1911_v7, %v1918_v54  ;;  %v2071_v48 = vsel %vm6007_vm4, %v1920_v37, %v2070_v16  ;;  %v1759_v30 = vpack.c.bf16 %v1739_v25, %v1739_v25  ;;  %v1663_v46 = vadd.f32 %v1662_v6, %v1604_v59  ;;  %v1613_v54 = vpop.f32.mrf.mxu3  ;;  %1798 = vst [vmem:[#allocation2 + $0x60] sm:$0x1] %v1797_v41  ;;  %v1498_v6 = vpop.f32.mrf.mxu1 }
 0x275   : > { %2069 = vst [vmem:[#allocation2 + $0x34] sm:$0xf] %v1919_v27 }
 0x276   : > { %2072 = vst [vmem:[#allocation2 + $0x38] sm:$0x1] %v2071_v48  ;;  %v1922_v10 = vshrl.u32 %v1759_v30, 16  ;;  %v1698_v20 = vmul.f32 %v6051_v63, %v1663_v46  ;;  %v1925_v1 = vshll.u32 %v1759_v30, 16  ;;  %v1496_v48 = vadd.f32 %v1495_v38, %v6000_v44  ;;  %v2080_v30 = vld [vmem:[#allocation2 + $0x48] sm:$0xf]  ;;  %v1557_v3 = vpop.f32.mrf.mxu2 }
 0x277   : > { %v1612_v46 = vadd.f32 %v1611_v47, %v1553_v43 }
 0x278   : > { %v1924_v42 = vrot.slane %v1922_v10, 7  ;;  %v1720_v52 = vadd.f32 %v6056_v4, %v1698_v20  ;;  %v1828_v20 = vld [vmem:[#allocation2 + $0x68] sm:$0x1] }
 0x279   : > { %v1829_v9 = vsel %vm6019_vm6, 0, %v1828_v20 }
 0x27a   : > { %v1927_v50 = vor.u32 %v1925_v1, %v1924_v42  ;;  %v1740_v61 = vmax.f32 %v1720_v52, 0.0  ;;  %v1928_v11 = vrot.slane %v1924_v42, 4  ;;  %1830 = vst [vmem:[#allocation2 + $0x68] sm:$0x1] %v1829_v9 }
 0x27b   : > { %v1665_v62 = vpop.f32.mrf.mxu0 }
 0x27c   : > { %v2074_v33 = vsel %vm6080_vm8, %v1927_v50, %v2073_v34  ;;  %v1760_v17 = vpack.c.bf16 %v1740_v61, %v1740_v61  ;;  %v1666_v26 = vadd.f32 %v1665_v62, %v1607_v57  ;;  %v1555_v34 = vadd.f32 %v1554_v21, %v1496_v48  ;;  %v1616_v50 = vpop.f32.mrf.mxu3 }
 0x27d   : > { %2075 = vst [vmem:[#allocation2 + $0x3c] sm:$0xf] %v2074_v33  ;;  %v1499_v33 = vadd.f32 %v1498_v6, %v6003_v51 }
 0x27e   : > { %v1930_v39 = vshrl.u32 %v1760_v17, 16  ;;  %v1699_v32 = vmul.f32 %v6051_v63, %v1666_v26  ;;  %v1933_v24 = vshll.u32 %v1760_v17, 16  ;;  %v1614_v47 = vadd.f32 %v1613_v54, %v1555_v34  ;;  %v2084_v17 = vld [vmem:[#allocation2 + $0x50] sm:$0x1]  ;;  %v1500_v26 = vpop.f32.mrf.mxu1  ;;  %v1559_v21 = vpop.f32.mrf.mxu2  ;;  %v1831_v54 = vld [vmem:[#allocation2 + $0x74] sm:$0x1] }
 0x27f   : > { %v1501_v28 = vadd.f32 %v1500_v26, %v6014_v60 }
 0x280   : > { %v1932_v23 = vrot.slane %v1930_v39, 7  ;;  %v1721_v55 = vadd.f32 %v6056_v4, %v1699_v32 }
 0x282   : > { %v1935_v56 = vor.u32 %v1933_v24, %v1932_v23  ;;  %v1937_v0 = vrot.slane %v1932_v23, 4  ;;  %v1741_v49 = vmax.f32 %v1721_v55, 0.0  ;;  %v1799_v23 = vld [vmem:[#allocation2 + $0x6c] sm:$0x1] }
 0x283   : > { %v1667_v29 = vpop.f32.mrf.mxu0  ;;  %v1800_v51 = vsel %vm6007_vm4, 0, %v1799_v23 }
 0x284   : > { %v1936_v59 = vsel %vm6101_vm10, %v1928_v11, %v1935_v56  ;;  %v2078_v58 = vsel %vm6007_vm4, %v1937_v0, %v2077_v8  ;;  %v1761_v16 = vpack.c.bf16 %v1741_v49, %v1741_v49  ;;  %v1668_v7 = vadd.f32 %v1667_v29, %v1609_v18  ;;  %1801 = vst [vmem:[#allocation2 + $0x6c] sm:$0x1] %v1800_v51 }
 0x285   : > { %2076 = vst [vmem:[#allocation2 + $0x40] sm:$0xf] %v1936_v59  ;;  %v1558_v8 = vadd.f32 %v1557_v3, %v1499_v33  ;;  %v2087_v59 = vld [vmem:[#allocation2 + $0x54] sm:$0xf]  ;;  %v2091_v3 = vld [vmem:[#allocation2 + $0x5c] sm:$0x1] }
 0x286   : > { %2079 = vst [vmem:[#allocation2 + $0x44] sm:$0x1] %v2078_v58  ;;  %v1939_v37 = vshrl.u32 %v1761_v16, 16  ;;  %v1700_v25 = vmul.f32 %v6051_v63, %v1668_v7  ;;  %v1942_v19 = vshll.u32 %v1761_v16, 16  ;;  %v1618_v16 = vpop.f32.mrf.mxu3 }
 0x287   : > { %v1617_v58 = vadd.f32 %v1616_v50, %v1558_v8 }
 0x288   : > { %v1941_v5 = vrot.slane %v1939_v37, 7  ;;  %v1722_v27 = vadd.f32 %v6056_v4, %v1700_v25  ;;  %v1503_v37 = vpop.f32.mrf.mxu1 }
 0x289   : > { %v1504_v20 = vadd.f32 %v1503_v37, %v6026_v53 }
 0x28a   : > { %v1944_v31 = vor.u32 %v1942_v19, %v1941_v5  ;;  %v1742_v36 = vmax.f32 %v1722_v27, 0.0  ;;  %v1945_v14 = vrot.slane %v1941_v5, 4  ;;  %v1832_v19 = vsel %vm6019_vm6, 0, %v1831_v54 }
 0x28b   : > { %v1670_v10 = vpop.f32.mrf.mxu0  ;;  %v1560_v27 = vadd.f32 %v1559_v21, %v1501_v28  ;;  %1833 = vst [vmem:[#allocation2 + $0x74] sm:$0x1] %v1832_v19 }
 0x28c   : > { %v2081_v42 = vsel %vm6080_vm8, %v1944_v31, %v2080_v30  ;;  %v1762_v1 = vpack.c.bf16 %v1742_v36, %v1742_v36  ;;  %v1671_v52 = vadd.f32 %v1670_v10, %v1612_v46  ;;  %v1562_v30 = vpop.f32.mrf.mxu2 }
 0x28d   : > { %2082 = vst [vmem:[#allocation2 + $0x48] sm:$0xf] %v2081_v42  ;;  %v1619_v10 = vadd.f32 %v1618_v16, %v1560_v27 }
 0x28e   : > { %v1947_v57 = vshrl.u32 %v1762_v1, 16  ;;  %v1701_v44 = vmul.f32 %v6051_v63, %v1671_v52  ;;  %v1950_v62 = vshll.u32 %v1762_v1, 16  ;;  %v1621_v34 = vpop.f32.mrf.mxu3 }
 0x290   : > { %v1949_v61 = vrot.slane %v1947_v57, 7  ;;  %v1723_v12 = vadd.f32 %v6056_v4, %v1701_v44 }
 0x292   : > { %v1952_v13 = vor.u32 %v1950_v62, %v1949_v61  ;;  %v1954_v38 = vrot.slane %v1949_v61, 4  ;;  %v1743_v39 = vmax.f32 %v1723_v12, 0.0  ;;  %v1563_v62 = vadd.f32 %v1562_v30, %v1504_v20  ;;  %v1505_v12 = vpop.f32.mrf.mxu1 }
 0x293   : > { %v1672_v32 = vpop.f32.mrf.mxu0 }
 0x294   : > { %v1953_v24 = vsel %vm6101_vm10, %v1945_v14, %v1952_v13  ;;  %v2085_v55 = vsel %vm6007_vm4, %v1954_v38, %v2084_v17  ;;  %v1763_v18 = vpack.c.bf16 %v1743_v39, %v1743_v39  ;;  %v1673_v22 = vadd.f32 %v1672_v32, %v1614_v47  ;;  %v2094_v13 = vld [vmem:[#allocation2 + $0x60] sm:$0xf]  ;;  %v1564_v39 = vpop.f32.mrf.mxu2 }
 0x295   : > { %2083 = vst [vmem:[#allocation2 + $0x4c] sm:$0xf] %v1953_v24  ;;  %v1506_v14 = vadd.f32 %v1505_v12, %v6039_v35  ;;  %v1622_v38 = vadd.f32 %v1621_v34, %v1563_v62 }
 0x296   : > { %2086 = vst [vmem:[#allocation2 + $0x50] sm:$0x1] %v2085_v55  ;;  %v1956_v11 = vshrl.u32 %v1763_v18, 16  ;;  %v1702_v56 = vmul.f32 %v6051_v63, %v1673_v22  ;;  %v1959_v49 = vshll.u32 %v1763_v18, 16  ;;  %v1623_v8 = vpop.f32.mrf.mxu3 }
 0x297   : > { %v1565_v51 = vadd.f32 %v1564_v39, %v1506_v14 }
 0x298   : > { %v1958_v0 = vrot.slane %v1956_v11, 7  ;;  %v1724_v29 = vadd.f32 %v6056_v4, %v1702_v56 }
 0x29a   : > { %v1961_v7 = vor.u32 %v1959_v49, %v1958_v0  ;;  %v1744_v41 = vmax.f32 %v1724_v29, 0.0  ;;  %v1962_v42 = vrot.slane %v1958_v0, 4  ;;  %v1624_v49 = vadd.f32 %v1623_v8, %v1565_v51  ;;  %v2098_v29 = vld [vmem:[#allocation2 + $0x68] sm:$0x1] }
 0x29b   : > { %v1675_v43 = vpop.f32.mrf.mxu0 }
 0x29c   : > { %v2088_v25 = vsel %vm6080_vm8, %v1961_v7, %v2087_v59  ;;  %v1764_v6 = vpack.c.bf16 %v1744_v41, %v1744_v41  ;;  %v1676_v5 = vadd.f32 %v1675_v43, %v1617_v58 }
 0x29d   : > { %2089 = vst [vmem:[#allocation2 + $0x54] sm:$0xf] %v2088_v25 }
 0x29e   : > { %v1964_v48 = vshrl.u32 %v1764_v6, 16  ;;  %v1703_v60 = vmul.f32 %v6051_v63, %v1676_v5  ;;  %v1967_v31 = vshll.u32 %v1764_v6, 16 }
 0x2a0   : > { %v1966_v46 = vrot.slane %v1964_v48, 7  ;;  %v1725_v36 = vadd.f32 %v6056_v4, %v1703_v60  ;;  %v2101_v48 = vld [vmem:[#allocation2 + $0x6c] sm:$0xf] }
 0x2a2   : > { %v1969_v1 = vor.u32 %v1967_v31, %v1966_v46  ;;  %v1971_v52 = vrot.slane %v1966_v46, 4  ;;  %v1745_v15 = vmax.f32 %v1725_v36, 0.0 }
 0x2a3   : > { %v1677_v9 = vpop.f32.mrf.mxu0 }
 0x2a4   : > { %v1970_v57 = vsel %vm6101_vm10, %v1962_v42, %v1969_v1  ;;  %v2092_v44 = vsel %vm6007_vm4, %v1971_v52, %v2091_v3  ;;  %v1765_v50 = vpack.c.bf16 %v1745_v15, %v1745_v15  ;;  %v1678_v61 = vadd.f32 %v1677_v9, %v1619_v10  ;;  %v2105_v3 = vld [vmem:[#allocation2 + $0x74] sm:$0x1] }
 0x2a5   : > { %2090 = vst [vmem:[#allocation2 + $0x58] sm:$0xf] %v1970_v57 }
 0x2a6   : > { %2093 = vst [vmem:[#allocation2 + $0x5c] sm:$0x1] %v2092_v44  ;;  %v1973_v53 = vshrl.u32 %v1765_v50, 16  ;;  %v1704_v47 = vmul.f32 %v6051_v63, %v1678_v61  ;;  %v1976_v17 = vshll.u32 %v1765_v50, 16 }
 0x2a8   : > { %v1975_v33 = vrot.slane %v1973_v53, 7  ;;  %v1726_v26 = vadd.f32 %v6056_v4, %v1704_v47 }
 0x2aa   : > { %v1978_v32 = vor.u32 %v1976_v17, %v1975_v33  ;;  %v1746_v23 = vmax.f32 %v1726_v26, 0.0  ;;  %v1979_v28 = vrot.slane %v1975_v33, 4 }
 0x2ab   : > { %v1680_v24 = vpop.f32.mrf.mxu0 }
 0x2ac   : > { %v2095_v55 = vsel %vm6080_vm8, %v1978_v32, %v2094_v13  ;;  %v1766_v18 = vpack.c.bf16 %v1746_v23, %v1746_v23  ;;  %v1681_v22 = vadd.f32 %v1680_v24, %v1622_v38 }
 0x2ad   : > { %2096 = vst [vmem:[#allocation2 + $0x60] sm:$0xf] %v2095_v55 }
 0x2ae   : > { %v1981_v21 = vshrl.u32 %v1766_v18, 16  ;;  %v1705_v11 = vmul.f32 %v6051_v63, %v1681_v22  ;;  %v1984_v0 = vshll.u32 %v1766_v18, 16 }
 0x2b0   : > { %v1983_v56 = vrot.slane %v1981_v21, 7  ;;  %v1727_v35 = vadd.f32 %v6056_v4, %v1705_v11 }
 0x2b2   : > { %v1986_v59 = vor.u32 %v1984_v0, %v1983_v56  ;;  %v1988_v58 = vrot.slane %v1983_v56, 4  ;;  %v1747_v16 = vmax.f32 %v1727_v35, 0.0 }
 0x2b3   : > { %v1682_v7 = vpop.f32.mrf.mxu0 }
 0x2b4   : > { %v1987_v41 = vsel %vm6101_vm10, %v1979_v28, %v1986_v59  ;;  %v2099_v43 = vsel %vm6007_vm4, %v1988_v58, %v2098_v29  ;;  %v1767_v54 = vpack.c.bf16 %v1747_v16, %v1747_v16  ;;  %v1683_v37 = vadd.f32 %v1682_v7, %v1624_v49 }
 0x2b5   : > { %2097 = vst [vmem:[#allocation2 + $0x64] sm:$0xf] %v1987_v41 }
 0x2b6   : > { %2100 = vst [vmem:[#allocation2 + $0x68] sm:$0x1] %v2099_v43  ;;  %v1990_v25 = vshrl.u32 %v1767_v54, 16  ;;  %v1706_v6 = vmul.f32 %v6051_v63, %v1683_v37  ;;  %v1993_v19 = vshll.u32 %v1767_v54, 16 }
 0x2b8   : > { %v1992_v5 = vrot.slane %v1990_v25, 7  ;;  %v1728_v27 = vadd.f32 %v6056_v4, %v1706_v6 }
 0x2ba   : > { %v1995_v60 = vor.u32 %v1993_v19, %v1992_v5  ;;  %v1748_v30 = vmax.f32 %v1728_v27, 0.0  ;;  %v1996_v42 = vrot.slane %v1992_v5, 4 }
 0x2bc   : > { %v2102_v46 = vsel %vm6080_vm8, %v1995_v60, %v2101_v48  ;;  %v1768_v31 = vpack.c.bf16 %v1748_v30, %v1748_v30 }
 0x2bd   : > { %2103 = vst [vmem:[#allocation2 + $0x6c] sm:$0xf] %v2102_v46 }
 0x2be   : > { %v1998_v36 = vshrl.u32 %v1768_v31, 16  ;;  %v2001_v20 = vshll.u32 %v1768_v31, 16 }
 0x2c0   : > { %v2000_v10 = vrot.slane %v1998_v36, 7 }
 0x2c2   : > { %v2003_v1 = vor.u32 %v2001_v20, %v2000_v10  ;;  %v2005_v52 = vrot.slane %v2000_v10, 4  ;;  %2111 = sbr.rel (%p4564_p7) target bundleno = 715 (0x2cb), region = 40 }
 0x2c4   : > { %v2004_v63 = vsel %vm6101_vm10, %v1996_v42, %v2003_v1  ;;  %v2106_v4 = vsel %vm6007_vm4, %v2005_v52, %v2105_v3 }
 0x2c5   : > { %2104 = vst [vmem:[#allocation2 + $0x70] sm:$0xf] %v2004_v63 }
 0x2c6   : > { %2107 = vst [vmem:[#allocation2 + $0x74] sm:$0x1] %v2106_v4 }
 0x2c7   : > { %v5246_v40 = vmov 0  }
 0x2c8   : > { %2112 = vst [vmem:[#allocation2] sm:$0xf] %v5246_v40 }
 0x2c9   : > { %2113 = vst [vmem:[#allocation2 + $0x4] sm:$0xf] %v5246_v40 }
 0x2ca   : > { %2114 = vst [vmem:[#allocation2 + $0x8] sm:$0x1] %v5246_v40 }
 0x2cb PF: > { %p4565_p8 = scmp.ne.s32.totalorder %s5228_s15, 1 }
 0x2cd   : > { %2118 = sbr.rel (%p4565_p8) target bundleno = 726 (0x2d6), region = 44 }
 0x2d2   : > { %v5247_v15 = vmov 0  }
 0x2d3   : > { %2120 = vst [vmem:[#allocation2 + $0x6c] sm:$0xf] %v5247_v15 }
 0x2d4   : > { %2121 = vst [vmem:[#allocation2 + $0x70] sm:$0xf] %v5247_v15 }
 0x2d5   : > { %2122 = vst [vmem:[#allocation2 + $0x74] sm:$0x1] %v5247_v15 }
 0x2d6 PF: > { %v4948_v45 = vld [vmem:[%s6834_s2 + $0x38] sm:$0xff]  ;;  %v4947_v34 = vld [vmem:[%s6834_s2 + $0x30] sm:$0xff]  ;;  %v4946_v50 = vld [vmem:[%s6834_s2 + $0x28] sm:$0xff] }
 0x2d7   : > { %v4956_v2 = vld [vmem:[%s6834_s2 + $0x78] sm:$0xff]  ;;  %3493 = vmatpush.bf16.msra.mxu1 %v4948_v45  ;;  %v4955_v57 = vld [vmem:[%s6834_s2 + $0x70] sm:$0xff]  ;;  %v4954_v61 = vld [vmem:[%s6834_s2 + $0x68] sm:$0xff] }
 0x2d8   : > { %v4964_v9 = vld [vmem:[%s6834_s2 + $0xb8] sm:$0xff]  ;;  %3542 = vmatpush.bf16.msra.mxu2 %v4956_v2  ;;  %v4963_v44 = vld [vmem:[%s6834_s2 + $0xb0] sm:$0xff]  ;;  %v4962_v62 = vld [vmem:[%s6834_s2 + $0xa8] sm:$0xff] }
 0x2d9   : > { %3591 = vmatpush.bf16.msrb.mxu3 %v4964_v9  ;;  %v4945_v12 = vld [vmem:[%s6834_s2 + $0x20] sm:$0xff]  ;;  %v2139_v33 = vld [vmem:[#allocation2 + $0x8] sm:$0x1]  ;;  %v4944_v17 = vld [vmem:[%s6834_s2 + $0x18] sm:$0xff] }
 0x2da   : > { %v4953_v53 = vld [vmem:[%s6834_s2 + $0x60] sm:$0xff]  ;;  %v4952_v26 = vld [vmem:[%s6834_s2 + $0x58] sm:$0xff]  ;;  %v2277_v14 = vunpack.c.l.b16 %v2139_v33  ;;  %v4943_v39 = vld [vmem:[%s6834_s2 + $0x10] sm:$0xff] }
 0x2db   : > { %3494 = vmatpush.bf16.msra.mxu1 %v4947_v34  ;;  %v4961_v47 = vld [vmem:[%s6834_s2 + $0xa0] sm:$0xff]  ;;  %v4960_v13 = vld [vmem:[%s6834_s2 + $0x98] sm:$0xff]  ;;  %v4951_v32 = vld [vmem:[%s6834_s2 + $0x50] sm:$0xff] }
 0x2dc   : > { %3543 = vmatpush.bf16.msra.mxu2 %v4955_v57  ;;  %v5014_v38 = vld [vmem:[#allocation2] sm:$0xff]   ;;  %v2285_v24 = vpack.c.b16 %v2277_v14, %v2277_v14  ;;  %v4959_v55 = vld [vmem:[%s6834_s2 + $0x90] sm:$0xff]  ;;  %v4942_v51 = vld [vmem:[%s6834_s2 + $0x8] sm:$0xff] }
 0x2dd   : > { %3592 = vmatpush.bf16.msrb.mxu3 %v4963_v44  ;;  %v2296_v23 = vshll.u32 %v5014_v38, 16  ;;  %v5071_v18 = vld [vmem:[#allocation2] sm:$0xf0]  ;;  %v5072_v22 = vld [vmem:[#allocation2] sm:$0xe]  ;;  %v4950_v8 = vld [vmem:[%s6834_s2 + $0x48] sm:$0xff] }
 0x2de   : > { %v2294_v21 = vshrl.u32 %v5014_v38, 16  ;;  %v2301_v56 = vshll.u32 %v2285_v24, 16  ;;  %v4958_v0 = vld [vmem:[%s6834_s2 + $0x88] sm:$0xff]  ;;  %v5073_v35 = vor.u32 %v5072_v22, %v5071_v18  ;;  %v5170_v29 = vld [vmem:[#allocation2 + $0xc] sm:$0xf0]  ;;  %v4941_v28 = vld [vmem:[%s6834_s2] sm:$0xff] }
 0x2df   : > { %3495 = vmatpush.bf16.msra.mxu1 %v4946_v50  ;;  %v2298_v11 = vrot.slane %v2296_v23, 1  ;;  %v2125_v49 = vld [vmem:[#allocation2 + $0xc] sm:$0xff]   ;;  %v4949_v59 = vld [vmem:[%s6834_s2 + $0x40] sm:$0xff]  ;;  %v4980_v41 = vld [vmem:[%s6834_s2 + $0x138] sm:$0xff]  ;;  %v2422_v54 = vrot.slane %v2285_v24, 1 }
 0x2e0   : > { %3544 = vmatpush.bf16.msra.mxu2 %v4954_v61  ;;  %v2303_v16 = vrot.slane %v2301_v56, 1  ;;  %v4957_v7 = vld [vmem:[%s6834_s2 + $0x80] sm:$0xff]  ;;  %v2421_v43 = vrot.slane %v5073_v35, 1  ;;  %v2140_v37 = vld [vmem:[#allocation2 + $0x14] sm:$0x1]  ;;  %v4972_v25 = vld [vmem:[%s6834_s2 + $0xf8] sm:$0xff] }
 0x2e1   : > { %3593 = vmatpush.bf16.msrb.mxu3 %v4962_v62  ;;  %v2299_v58 = vor.u32 %v2298_v11, %v2294_v21  ;;  %v2278_v5 = vunpack.c.l.b16 %v2140_v37  ;;  %v4979_v27 = vld [vmem:[%s6834_s2 + $0x130] sm:$0xff]  ;;  %v5171_v48 = vld [vmem:[#allocation2 + $0xc] sm:$0xe]  ;;  %v2308_v46 = vshll.u32 %v2125_v49, 16  ;;  %v2306_v10 = vshrl.u32 %v2125_v49, 16  ;;  %v6375_v9 = vld [vmem:[#allocation2 + $0x18] sm:$0xff]  }
 0x2e2   : > { %v2423_v19 = vsel %vm485_vm1, %v2421_v43, %v2422_v54  ;;  %v4971_v60 = vld [vmem:[%s6834_s2 + $0xf0] sm:$0xff]  ;;  %v4978_v31 = vld [vmem:[%s6834_s2 + $0x128] sm:$0xff]  ;;  %v5172_v42 = vor.u32 %v5171_v48, %v5170_v29  ;;  %v2141_v40 = vld [vmem:[#allocation2 + $0x20] sm:$0x1]  ;;  %v2320_v57 = vshll.u32 %v6375_v9, 16 }
 0x2e3   : > { %3496 = vmatpush.bf16.msra.mxu1 %v4945_v12  ;;  %v2304_v6 = vsel %vm354_vm0, %v2299_v58, %v2303_v16  ;;  %v2286_v30 = vpack.c.b16 %v2278_v5, %v2278_v5  ;;  %v4970_v36 = vld [vmem:[%s6834_s2 + $0xe8] sm:$0xff]  ;;  %v2310_v20 = vrot.slane %v2308_v46, 1  ;;  %v2279_v45 = vunpack.c.l.b16 %v2141_v40  ;;  %v4977_v34 = vld [vmem:[%s6834_s2 + $0x120] sm:$0xff]  ;;  %v5074_v61 = vld [vmem:[#allocation2 + $0x18] sm:$0xf0] }
 0x2e4   : > { %3545 = vmatpush.bf16.msra.mxu2 %v4953_v53  ;;  %v2424_v63 = vrot.slane %v5172_v42, 1  ;;  %v4969_v50 = vld [vmem:[%s6834_s2 + $0xe0] sm:$0xff]  ;;  %v5075_v62 = vld [vmem:[#allocation2 + $0x18] sm:$0xe]  ;;  %v2318_v12 = vshrl.u32 %v6375_v9, 16  ;;  %v2322_v53 = vrot.slane %v2320_v57, 1 }
 0x2e5   : > { %3594 = vmatpush.bf16.msrb.mxu3 %v4961_v47  ;;  %v2313_v3 = vshll.u32 %v2286_v30, 16  ;;  %v2311_v1 = vor.u32 %v2310_v20, %v2306_v10  ;;  %v2425_v4 = vrot.slane %v2286_v30, 1  ;;  %v2287_v44 = vpack.c.b16 %v2279_v45, %v2279_v45  ;;  %v5174_v18 = vld [vmem:[#allocation2 + $0x24] sm:$0xe]  ;;  %v4976_v22 = vld [vmem:[%s6834_s2 + $0x118] sm:$0xff]  ;;  %v6399_v43 = vld [vmem:[#allocation2 + $0x30] sm:$0xff]  }
 0x2e6   : > { %v5076_v33 = vor.u32 %v5075_v62, %v5074_v61  ;;  %v6385_v14 = vor.u32 %v2322_v53, %v2318_v12  ;;  %v4968_v21 = vld [vmem:[%s6834_s2 + $0xd8] sm:$0xff]  ;;  %v4975_v54 = vld [vmem:[%s6834_s2 + $0x110] sm:$0xff]  ;;  %v2344_v37 = vshll.u32 %v6399_v43, 16  ;;  %v2144_v42 = vld [vmem:[#allocation2 + $0x44] sm:$0x1] }
 0x2e7   : > { %3497 = vmatpush.bf16.msra.mxu1 %v4944_v17  ;;  %v2315_v52 = vrot.slane %v2313_v3, 1  ;;  %v2426_v2 = vsel %vm485_vm1, %v2424_v63, %v2425_v4  ;;  %v2325_v47 = vshll.u32 %v2287_v44, 16  ;;  %v2129_v17 = vld [vmem:[#allocation2 + $0x24] sm:$0xff]   ;;  %v2143_v58 = vld [vmem:[#allocation2 + $0x38] sm:$0x1]  ;;  %v2133_v46 = vld [vmem:[#allocation2 + $0x3c] sm:$0xff]  }
 0x2e8   : > { %3546 = vmatpush.bf16.msra.mxu2 %v4952_v26  ;;  %v5173_v26 = vld [vmem:[#allocation2 + $0x24] sm:$0xf0]  ;;  %v2330_v11 = vshrl.u32 %v2129_v17, 16  ;;  %v5077_v5 = vld [vmem:[#allocation2 + $0x30] sm:$0xf0]  ;;  %v2346_v48 = vrot.slane %v2344_v37, 1 }
 0x2e9   : > { %3595 = vmatpush.bf16.msrb.mxu3 %v4960_v13  ;;  %v2316_v15 = vsel %vm354_vm0, %v2311_v1, %v2315_v52  ;;  %v2327_v13 = vrot.slane %v2325_v47, 1  ;;  %v5175_v35 = vor.u32 %v5174_v18, %v5173_v26  ;;  %v2282_v52 = vunpack.c.l.b16 %v2144_v42  ;;  %v5177_v4 = vld [vmem:[#allocation2 + $0x3c] sm:$0xe]  ;;  %v4974_v40 = vld [vmem:[%s6834_s2 + $0x108] sm:$0xff]  ;;  %v4973_v18 = vld [vmem:[%s6834_s2 + $0x100] sm:$0xff] }
 0x2ea   : > { %v2356_v45 = vshll.u32 %v2133_v46, 16  ;;  %v4996_v57 = vld [vmem:[%s6834_s2 + $0x1b8] sm:$0xff]  ;;  %v2354_v61 = vshrl.u32 %v2133_v46, 16  ;;  %v4986_v47 = vld [vmem:[%s6834_s2 + $0x168] sm:$0xff] }
 0x2eb   : > { %3498 = vmatpush.bf16.msra.mxu1 %v4943_v39  ;;  %v2428_v39 = vrot.slane %v2287_v44, 1  ;;  %v2328_v23 = vsel %vm354_vm0, %v6385_v14, %v2327_v13  ;;  %v4987_v44 = vld [vmem:[%s6834_s2 + $0x170] sm:$0xff]  ;;  %3787 = vmatpush.bf16.msra.mxu0 %v4996_v57  ;;  %v4990_v42 = vld [vmem:[%s6834_s2 + $0x188] sm:$0xff] }
 0x2ec   : > { %3547 = vmatpush.bf16.msra.mxu2 %v4951_v32  ;;  %v2142_v32 = vld [vmem:[#allocation2 + $0x2c] sm:$0x1]  ;;  %v2358_v62 = vrot.slane %v2356_v45, 1 }
 0x2ed   : > { %3596 = vmatpush.bf16.msrb.mxu3 %v4959_v55  ;;  %v2280_v24 = vunpack.c.l.b16 %v2142_v32  ;;  %v2156_v45 = vld [vmem:[#allocation2 + $0xc] sm:$0xff]  }
 0x2ef   : > { %3499 = vmatpush.bf16.msra.mxu1 %v4942_v51  ;;  %v2288_v51 = vpack.c.b16 %v2280_v24, %v2280_v24 }
 0x2f0   : > { %3548 = vmatpush.bf16.msra.mxu2 %v4950_v8  ;;  %v2332_v8 = vshll.u32 %v2129_v17, 16 }
 0x2f1   : > { %3597 = vmatpush.bf16.msrb.mxu3 %v4958_v0  ;;  %v2337_v0 = vshll.u32 %v2288_v51, 16 }
 0x2f2   : > { %v2334_v56 = vrot.slane %v2332_v8, 1  ;;  %v4984_v8 = vld [vmem:[%s6834_s2 + $0x158] sm:$0xff] }
 0x2f3   : > { %3500 = vmatpush.bf16.msra.mxu1 %v4941_v28  ;;  %v2339_v29 = vrot.slane %v2337_v0, 1  ;;  %v2430_v28 = vrot.slane %v5175_v35, 1  ;;  %v5081_v0 = vld [vmem:[#allocation2 + $0x48] sm:$0xe]  ;;  %v4983_v35 = vld [vmem:[%s6834_s2 + $0x150] sm:$0xff] }
 0x2f4   : > { %3549 = vmatpush.bf16.msra.mxu2 %v4949_v59  ;;  %v2431_v59 = vrot.slane %v2288_v51, 1 }
 0x2f5   : > { %3598 = vmatpush.bf16.msrb.mxu3 %v4957_v7  ;;  %v2281_v7 = vunpack.c.l.b16 %v2143_v58 }
 0x2f6   : > { %3501 = vmatmul.bf16.vlgmr.msra.gmra.mxu1 %v5014_v38  ;;  %v2427_v38 = vrot.slane %v5076_v33, 1  ;;  %v2359_v33 = vor.u32 %v2358_v62, %v2354_v61  ;;  %v2172_v61 = vld [vmem:[#allocation2 + $0x14] sm:$0x1] }
 0x2f7   : > { %3640 = vmatpush.bf16.msrb.mxu1 %v4972_v25  ;;  %3550 = vmatmul.bf16.vlgmr.msra.gmra.mxu2 %v2304_v6  ;;  %v2289_v25 = vpack.c.b16 %v2281_v7, %v2281_v7  ;;  %v4967_v6 = vld [vmem:[%s6834_s2 + $0xd0] sm:$0xff]  ;;  %v5179_v7 = vld [vmem:[#allocation2 + $0x54] sm:$0xf0] }
 0x2f8   : > { %3689 = vmatpush.bf16.msrb.mxu2 %v4980_v41  ;;  %3599 = vmatmul.bf16.vlgmr.msrb.gmra.mxu3 %v2423_v19  ;;  %v2429_v55 = vsel %vm485_vm1, %v2427_v38, %v2428_v39  ;;  %v2432_v41 = vsel %vm485_vm1, %v2430_v28, %v2431_v59  ;;  %v5078_v19 = vld [vmem:[#allocation2 + $0x30] sm:$0xe]  ;;  %v2145_v38 = vld [vmem:[#allocation2 + $0x50] sm:$0x1]  ;;  %v4985_v39 = vld [vmem:[%s6834_s2 + $0x160] sm:$0xff] }
 0x2f9   : > { %v5079_v30 = vor.u32 %v5078_v19, %v5077_v5  ;;  %v2434_v3 = vrot.slane %v2289_v25, 1  ;;  %v2146_v19 = vld [vmem:[#allocation2 + $0x5c] sm:$0x1] }
 0x2fb   : > { %3641 = vmatpush.bf16.msrb.mxu1 %v4971_v60  ;;  %v2349_v60 = vshll.u32 %v2289_v25, 16  ;;  %v2433_v20 = vrot.slane %v5079_v30, 1  ;;  %v4991_v30 = vld [vmem:[%s6834_s2 + $0x190] sm:$0xff] }
 0x2fc   : > { %3690 = vmatpush.bf16.msrb.mxu2 %v4979_v27  ;;  %v2342_v27 = vshrl.u32 %v6399_v43, 16 }
 0x2fd   : > { %v2351_v10 = vrot.slane %v2349_v60, 1  ;;  %v2435_v63 = vsel %vm485_vm1, %v2433_v20, %v2434_v3  ;;  %v4981_v60 = vld [vmem:[%s6834_s2 + $0x140] sm:$0xff] }
 0x2ff   : > { %3642 = vmatpush.bf16.msrb.mxu1 %v4970_v36  ;;  %v6409_v36 = vor.u32 %v2346_v48, %v2342_v27  ;;  %v2284_v48 = vunpack.c.l.b16 %v2146_v19 }
 0x300   : > { %3691 = vmatpush.bf16.msrb.mxu2 %v4978_v31  ;;  %v5176_v31 = vld [vmem:[#allocation2 + $0x3c] sm:$0xf0] }
 0x301   : > { %v2352_v1 = vsel %vm354_vm0, %v6409_v36, %v2351_v10  ;;  %v5178_v53 = vor.u32 %v5177_v4, %v5176_v31  ;;  %v5180_v31 = vld [vmem:[#allocation2 + $0x54] sm:$0xe]  ;;  %v5012_v10 = vld [vmem:[%s6834_s2 + $0x238] sm:$0xff]  ;;  %v2292_v20 = vpack.c.b16 %v2284_v48, %v2284_v48  ;;  %v5185_v48 = vld [vmem:[#allocation2 + $0x24] sm:$0xf0] }
 0x303   : > { %3643 = vmatpush.bf16.msrb.mxu1 %v4969_v50  ;;  %v4995_v50 = vld [vmem:[%s6834_s2 + $0x1b0] sm:$0xff]  ;;  %v2436_v26 = vrot.slane %v5178_v53, 1  ;;  %v2385_v4 = vshll.u32 %v2292_v20, 16 }
 0x304   : > { %3692 = vmatpush.bf16.msrb.mxu2 %v4977_v34  ;;  %v4966_v34 = vld [vmem:[%s6834_s2 + $0xc8] sm:$0xff]  ;;  %3788 = vmatpush.bf16.msra.mxu0 %v4995_v50  ;;  %v2443_v50 = vrot.slane %v2292_v20, 1 }
 0x305   : > { %v2387_v57 = vrot.slane %v2385_v4, 1 }
 0x306   : > { %3506 = vmatmul.bf16.gmra.mxu1 %v2125_v49  ;;  %v2335_v49 = vor.u32 %v2334_v56, %v2330_v11  ;;  %v4965_v11 = vld [vmem:[%s6834_s2 + $0xc0] sm:$0xff]  ;;  %v5080_v56 = vld [vmem:[#allocation2 + $0x48] sm:$0xf0] }
 0x307   : > { %3555 = vmatmul.bf16.gmra.mxu2 %v2316_v15  ;;  %3644 = vmatpush.bf16.msrb.mxu1 %v4968_v21  ;;  %v2290_v15 = vpack.c.b16 %v2282_v52, %v2282_v52  ;;  %v4994_v21 = vld [vmem:[%s6834_s2 + $0x1a8] sm:$0xff]  ;;  %v5082_v58 = vor.u32 %v5081_v0, %v5080_v56 }
 0x308   : > { %3604 = vmatmul.bf16.gmra.mxu3 %v2426_v2  ;;  %3693 = vmatpush.bf16.msrb.mxu2 %v4976_v22  ;;  %v2340_v16 = vsel %vm354_vm0, %v2335_v49, %v2339_v29  ;;  %v4988_v2 = vld [vmem:[%s6834_s2 + $0x178] sm:$0xff]  ;;  %v4993_v49 = vld [vmem:[%s6834_s2 + $0x1a0] sm:$0xff] }
 0x309   : > { %3738 = vmatpush.bf16.msra.mxu3 %v4988_v2  ;;  %v2361_v12 = vshll.u32 %v2290_v15, 16  ;;  %v2437_v13 = vrot.slane %v2290_v15, 1  ;;  %3789 = vmatpush.bf16.msra.mxu0 %v4994_v21  ;;  %v5181_v15 = vor.u32 %v5180_v31, %v5179_v7  ;;  %v5182_v2 = vld [vmem:[#allocation2 + $0xc] sm:$0xf0]  ;;  %v2174_v31 = vld [vmem:[#allocation2 + $0x2c] sm:$0x1] }
 0x30b   : > { %3645 = vmatpush.bf16.msrb.mxu1 %v4967_v6  ;;  %v2438_v24 = vsel %vm485_vm1, %v2436_v26, %v2437_v13  ;;  %v2439_v6 = vrot.slane %v5082_v58, 1  ;;  %v2528_v26 = vshll.u32 %v2156_v45, 16  ;;  %v5003_v13 = vld [vmem:[%s6834_s2 + $0x1f0] sm:$0xff]  ;;  %v5083_v58 = vld [vmem:[#allocation2 + $0x18] sm:$0xf0] }
 0x30c   : > { %3694 = vmatpush.bf16.msrb.mxu2 %v4975_v54  ;;  %v4992_v54 = vld [vmem:[%s6834_s2 + $0x198] sm:$0xff] }
 0x30d   : > { %3739 = vmatpush.bf16.msra.mxu3 %v4987_v44  ;;  %3790 = vmatpush.bf16.msra.mxu0 %v4993_v49  ;;  %v2442_v44 = vrot.slane %v5181_v15, 1  ;;  %v5009_v15 = vld [vmem:[%s6834_s2 + $0x220] sm:$0xff] }
 0x30f   : > { %3646 = vmatpush.bf16.msrb.mxu1 %v4966_v34  ;;  %v2444_v53 = vsel %vm485_vm1, %v2442_v44, %v2443_v50  ;;  %v5001_v50 = vld [vmem:[%s6834_s2 + $0x1e0] sm:$0xff] }
 0x310   : > { %3695 = vmatpush.bf16.msrb.mxu2 %v4974_v40  ;;  %v4989_v40 = vld [vmem:[%s6834_s2 + $0x180] sm:$0xff] }
 0x311   : > { %3740 = vmatpush.bf16.msra.mxu3 %v4986_v47  ;;  %3791 = vmatpush.bf16.msra.mxu0 %v4992_v54  ;;  %v5183_v47 = vld [vmem:[#allocation2 + $0xc] sm:$0xe] }
 0x312   : > { %v5002_v54 = vld [vmem:[%s6834_s2 + $0x1e8] sm:$0xff] }
 0x313   : > { %3647 = vmatpush.bf16.msrb.mxu1 %v4965_v11  ;;  %v2173_v11 = vld [vmem:[#allocation2 + $0x20] sm:$0x1] }
 0x314   : > { %3696 = vmatpush.bf16.msrb.mxu2 %v4973_v18  ;;  %v5184_v18 = vor.u32 %v5183_v47, %v5182_v2  ;;  %v6532_v47 = vld [vmem:[#allocation2 + $0x3c] sm:$0xf0] }
 0x315   : > { %3741 = vmatpush.bf16.msra.mxu3 %v4985_v39  ;;  %3792 = vmatpush.bf16.msra.mxu0 %v4991_v30  ;;  %v2530_v39 = vrot.slane %v2528_v26, 1 }
 0x316   : > { %3511 = vmatmul.bf16.gmra.mxu1 %v6375_v9 }
 0x317   : > { %3560 = vmatmul.bf16.gmra.mxu2 %v2328_v23  ;;  %v2283_v23 = vunpack.c.l.b16 %v2145_v38  ;;  %v2526_v38 = vshrl.u32 %v2156_v45, 16 }
 0x318   : > { %3609 = vmatmul.bf16.gmra.mxu3 %v2429_v55  ;;  %v6441_v55 = vld [vmem:[#allocation2 + $0x48] sm:$0xff]   ;;  %3885 = vmatpush.bf16.msra.mxu2 %v5012_v10 }
 0x319   : > { %v2368_v22 = vshll.u32 %v6441_v55, 16  ;;  %v2291_v51 = vpack.c.b16 %v2283_v23, %v2283_v23  ;;  %3742 = vmatpush.bf16.msra.mxu3 %v4984_v8  ;;  %v2366_v29 = vshrl.u32 %v6441_v55, 16  ;;  %3793 = vmatpush.bf16.msra.mxu0 %v4990_v42  ;;  %v6502_v23 = vld [vmem:[#allocation2 + $0x24] sm:$0xff]   ;;  %v2653_v8 = vrot.slane %v5184_v18, 1 }
 0x31b   : > { %v2370_v28 = vrot.slane %v2368_v22, 1  ;;  %v2373_v59 = vshll.u32 %v2291_v51, 16  ;;  %v2440_v5 = vrot.slane %v2291_v51, 1  ;;  %v2531_v22 = vor.u32 %v2530_v39, %v2526_v38 }
 0x31d   : > { %3743 = vmatpush.bf16.msra.mxu3 %v4983_v35  ;;  %v6469_v37 = vor.u32 %v2370_v28, %v2366_v29  ;;  %v2375_v25 = vrot.slane %v2373_v59, 1  ;;  %3794 = vmatpush.bf16.msra.mxu0 %v4989_v40  ;;  %v2510_v35 = vunpack.c.l.b16 %v2173_v11  ;;  %v5010_v29 = vld [vmem:[%s6834_s2 + $0x228] sm:$0xff]  ;;  %v5186_v40 = vld [vmem:[#allocation2 + $0x24] sm:$0xe] }
 0x31f   : > { %v2376_v27 = vsel %vm354_vm0, %v6469_v37, %v2375_v25  ;;  %v2518_v28 = vpack.c.b16 %v2510_v35, %v2510_v35  ;;  %v5008_v35 = vld [vmem:[%s6834_s2 + $0x218] sm:$0xff] }
 0x320   : > { %3795 = vmatmul.bf16.vlgmr.msra.gmra.mxu0 %v6375_v9 }
 0x326   : > { %3516 = vmatmul.bf16.gmra.mxu1 %v2129_v17  ;;  %v2363_v17 = vrot.slane %v2361_v12, 1  ;;  %v2509_v12 = vunpack.c.l.b16 %v2172_v61 }
 0x327   : > { %3565 = vmatmul.bf16.gmra.mxu2 %v2340_v16  ;;  %v2137_v16 = vld [vmem:[#allocation2 + $0x54] sm:$0xff]  }
 0x328   : > { %3614 = vmatmul.bf16.gmra.mxu3 %v2432_v41  ;;  %v2364_v32 = vsel %vm354_vm0, %v2359_v33, %v2363_v17  ;;  %v4982_v41 = vld [vmem:[%s6834_s2 + $0x148] sm:$0xff]  ;;  %v2380_v3 = vshll.u32 %v2137_v16, 16  ;;  %v2378_v52 = vshrl.u32 %v2137_v16, 16  ;;  %v5011_v33 = vld [vmem:[%s6834_s2 + $0x230] sm:$0xff]  ;;  %v2517_v17 = vpack.c.b16 %v2509_v12, %v2509_v12 }
 0x329   : > { %3744 = vmatpush.bf16.msra.mxu3 %v4982_v41  ;;  %3886 = vmatpush.bf16.msra.mxu2 %v5011_v33 }
 0x32a   : > { %v2654_v21 = vrot.slane %v2517_v17, 1 }
 0x32c   : > { %v2655_v49 = vsel %vm485_vm1, %v2653_v8, %v2654_v21 }
 0x32d   : > { %3745 = vmatpush.bf16.msra.mxu3 %v4981_v60  ;;  %3887 = vmatpush.bf16.msra.mxu2 %v5010_v29 }
 0x330   : > { %3800 = vmatmul.bf16.gmra.mxu0 %v6502_v23 }
 0x331   : > { %3888 = vmatpush.bf16.msra.mxu2 %v5009_v15  ;;  %v5007_v15 = vld [vmem:[%s6834_s2 + $0x210] sm:$0xff] }
 0x335   : > { %3889 = vmatpush.bf16.msra.mxu2 %v5008_v35 }
 0x336   : > { %3521 = vmatmul.bf16.gmra.mxu1 %v6399_v43 }
 0x337   : > { %3570 = vmatmul.bf16.gmra.mxu2 %v2352_v1  ;;  %v5004_v1 = vld [vmem:[%s6834_s2 + $0x1f8] sm:$0xff] }
 0x338   : > { %3619 = vmatmul.bf16.gmra.mxu3 %v2435_v63  ;;  %v2382_v63 = vrot.slane %v2380_v3, 1  ;;  %3836 = vmatpush.bf16.msra.mxu1 %v5004_v1 }
 0x339   : > { %3890 = vmatpush.bf16.msra.mxu2 %v5007_v15 }
 0x33a   : > { %v2383_v34 = vor.u32 %v2382_v63, %v2378_v52  ;;  %v2511_v52 = vunpack.c.l.b16 %v2174_v31 }
 0x33c   : > { %v2388_v62 = vsel %vm354_vm0, %v2383_v34, %v2387_v57  ;;  %3837 = vmatpush.bf16.msra.mxu1 %v5003_v13 }
 0x340   : > { %3838 = vmatpush.bf16.msra.mxu1 %v5002_v54  ;;  %3805 = vmatmul.bf16.gmra.mxu0 %v6399_v43 }
 0x344   : > { %3839 = vmatpush.bf16.msra.mxu1 %v5001_v50  ;;  %v4999_v50 = vld [vmem:[%s6834_s2 + $0x1d0] sm:$0xff] }
 0x346   : > { %3526 = vmatmul.bf16.gmra.mxu1 %v2133_v46  ;;  %v2441_v46 = vsel %vm485_vm1, %v2439_v6, %v2440_v5  ;;  %v2545_v6 = vshll.u32 %v2518_v28, 16 }
 0x347   : > { %3575 = vmatmul.bf16.gmra.mxu2 %v2364_v32  ;;  %v2533_v32 = vshll.u32 %v2517_v17, 16  ;;  %v5187_v17 = vor.u32 %v5186_v40, %v5185_v48  ;;  %v5189_v40 = vld [vmem:[#allocation2 + $0x3c] sm:$0xe] }
 0x348   : > { %3624 = vmatmul.bf16.gmra.mxu3 %v2438_v24  ;;  %v6504_v24 = vld [vmem:[#allocation2 + $0x24] sm:$0xf0]  ;;  %v2547_v60 = vrot.slane %v2545_v6, 1 }
 0x349   : > { %v2535_v51 = vrot.slane %v2533_v32, 1  ;;  %v2659_v38 = vrot.slane %v5187_v17, 1  ;;  %v2175_v32 = vld [vmem:[#allocation2 + $0x38] sm:$0x1] }
 0x34a   : > { %v2548_v1 = vsel %vm354_vm0, %v6385_v14, %v2547_v60  ;;  %v2512_v11 = vunpack.c.l.b16 %v2175_v32  ;;  %v6564_v17 = vld [vmem:[#allocation2 + $0x54] sm:$0xf0] }
 0x34b   : > { %v2536_v0 = vsel %vm354_vm0, %v2531_v22, %v2535_v51 }
 0x356   : > { %3531 = vmatmul.bf16.gmra.mxu1 %v6441_v55 }
 0x357   : > { %3580 = vmatmul.bf16.gmra.mxu2 %v2376_v27  ;;  %v2160_v27 = vld [vmem:[#allocation2 + $0x24] sm:$0xff]  }
 0x358   : > { %3629 = vmatmul.bf16.gmra.mxu3 %v2441_v46  ;;  %v2657_v46 = vrot.slane %v2518_v28, 1  ;;  %v2552_v2 = vshll.u32 %v2160_v27, 16  ;;  %v5086_v28 = vld [vmem:[#allocation2 + $0x30] sm:$0xf0] }
 0x35a   : > { %v2554_v12 = vrot.slane %v2552_v2, 1 }
 0x366   : > { %3536 = vmatmul.bf16.gmra.mxu1 %v2137_v16  ;;  %v5084_v16 = vld [vmem:[#allocation2 + $0x18] sm:$0xe] }
 0x367   : > { %3585 = vmatmul.bf16.gmra.mxu2 %v2388_v62  ;;  %v5085_v19 = vor.u32 %v5084_v16, %v5083_v58  ;;  %v2550_v62 = vshrl.u32 %v2160_v27, 16 }
 0x368   : > { %3634 = vmatmul.bf16.gmra.mxu3 %v2444_v53  ;;  %v6530_v53 = vld [vmem:[#allocation2 + $0x3c] sm:$0xff]  }
 0x369   : > { %v2656_v30 = vrot.slane %v5085_v19, 1  ;;  %v2555_v26 = vor.u32 %v2554_v12, %v2550_v62  ;;  %3810 = vmatmul.bf16.gmra.mxu0 %v6530_v53  ;;  %v2164_v19 = vld [vmem:[#allocation2 + $0x3c] sm:$0xff]  }
 0x36a   : > { %v2576_v2 = vshll.u32 %v2164_v19, 16  ;;  %v2574_v62 = vshrl.u32 %v2164_v19, 16 }
 0x36b   : > { %v2658_v4 = vsel %vm485_vm1, %v2656_v30, %v2657_v46  ;;  %v2176_v46 = vld [vmem:[#allocation2 + $0x44] sm:$0x1] }
 0x36c   : > { %v2578_v12 = vrot.slane %v2576_v2, 1 }
 0x373   : > { %v3502_v56 = vpop.f32.mrf.mxu1 }
 0x376   : > { %3648 = vmatmul.bf16.vlgmr.msrb.gmra.mxu1 %v2156_v45  ;;  %v2519_v45 = vpack.c.b16 %v2511_v52, %v2511_v52 }
 0x377   : > { %3697 = vmatmul.bf16.vlgmr.msrb.gmra.mxu2 %v2536_v0 }
 0x378   : > { %3746 = vmatmul.bf16.vlgmr.msra.gmra.mxu3 %v2655_v49  ;;  %v2660_v39 = vrot.slane %v2519_v45, 1  ;;  %v2520_v49 = vpack.c.b16 %v2512_v11, %v2512_v11 }
 0x379   : > { %3815 = vmatmul.bf16.gmra.mxu0 %v6441_v55 }
 0x37a   : > { %v3551_v59 = vpop.f32.mrf.mxu2  ;;  %v2661_v0 = vsel %vm485_vm1, %v2659_v38, %v2660_v39  ;;  %v2569_v54 = vshll.u32 %v2520_v49, 16  ;;  %v2663_v30 = vrot.slane %v2520_v49, 1  ;;  %v2579_v38 = vor.u32 %v2578_v12, %v2574_v62 }
 0x37b   : > { %v3552_v7 = vadd.f32 %v3551_v59, %v3502_v56  ;;  %v3600_v41 = vpop.f32.mrf.mxu3  ;;  %v3504_v25 = vpop.f32.mrf.mxu1  ;;  %v5087_v59 = vld [vmem:[#allocation2 + $0x30] sm:$0xe] }
 0x37c   : > { %v5088_v6 = vor.u32 %v5087_v59, %v5086_v28  ;;  %v2571_v48 = vrot.slane %v2569_v54, 1  ;;  %v5006_v28 = vld [vmem:[%s6834_s2 + $0x208] sm:$0xff] }
 0x37d   : > { %v6515_v5 = vadd.f32 %v3600_v41, %v3552_v7  ;;  %v5000_v7 = vld [vmem:[%s6834_s2 + $0x1d8] sm:$0xff]  ;;  %3891 = vmatpush.bf16.msra.mxu2 %v5006_v28  ;;  %v2179_v28 = vld [vmem:[#allocation2 + $0x68] sm:$0x1] }
 0x37e   : > { %3840 = vmatpush.bf16.msra.mxu1 %v5000_v7  ;;  %v2662_v60 = vrot.slane %v5088_v6, 1  ;;  %v5090_v7 = vld [vmem:[#allocation2 + $0x48] sm:$0xe] }
 0x37f   : > { %v4998_v6 = vld [vmem:[%s6834_s2 + $0x1c8] sm:$0xff] }
 0x382   : > { %v3553_v10 = vpop.f32.mrf.mxu2  ;;  %3841 = vmatpush.bf16.msra.mxu1 %v4999_v50  ;;  %v5005_v50 = vld [vmem:[%s6834_s2 + $0x200] sm:$0xff] }
 0x383   : > { %v3554_v20 = vadd.f32 %v3553_v10, %v3504_v25  ;;  %v3602_v3 = vpop.f32.mrf.mxu3  ;;  %v3507_v42 = vpop.f32.mrf.mxu1  ;;  %3892 = vmatpush.bf16.msra.mxu2 %v5005_v50 }
 0x385   : > { %v6520_v63 = vadd.f32 %v3602_v3, %v3554_v20 }
 0x386   : > { %3653 = vmatmul.bf16.gmra.mxu1 %v6375_v9  ;;  %v2557_v9 = vshll.u32 %v2519_v45, 16 }
 0x387   : > { %3702 = vmatmul.bf16.gmra.mxu2 %v2548_v1  ;;  %v2513_v1 = vunpack.c.l.b16 %v2176_v46  ;;  %v5191_v46 = vld [vmem:[#allocation2 + $0x54] sm:$0xf0]  ;;  %3842 = vmatpush.bf16.msra.mxu1 %v4998_v6 }
 0x388   : > { %3751 = vmatmul.bf16.gmra.mxu3 %v2658_v4  ;;  %v2559_v13 = vrot.slane %v2557_v9, 1  ;;  %v2664_v4 = vsel %vm485_vm1, %v2662_v60, %v2663_v30  ;;  %v6562_v9 = vld [vmem:[#allocation2 + $0x54] sm:$0xff]  }
 0x389   : > { %v2521_v45 = vpack.c.b16 %v2513_v1, %v2513_v1  ;;  %3820 = vmatmul.bf16.gmra.mxu0 %v6562_v9  ;;  %v2168_v30 = vld [vmem:[#allocation2 + $0x54] sm:$0xff]  }
 0x38a   : > { %v3556_v34 = vpop.f32.mrf.mxu2  ;;  %v2560_v21 = vsel %vm354_vm0, %v2555_v26, %v2559_v13  ;;  %v2600_v62 = vshll.u32 %v2168_v30, 16 }
 0x38b   : > { %v3557_v57 = vadd.f32 %v3556_v34, %v3507_v42  ;;  %v3605_v44 = vpop.f32.mrf.mxu3  ;;  %v3509_v61 = vpop.f32.mrf.mxu1  ;;  %v2572_v42 = vsel %vm354_vm0, %v6409_v36, %v2571_v48 }
 0x38d   : > { %v6534_v33 = vadd.f32 %v3605_v44, %v3557_v57 }
 0x392   : > { %v3558_v18 = vpop.f32.mrf.mxu2 }
 0x393   : > { %v3559_v22 = vadd.f32 %v3558_v18, %v3509_v61  ;;  %v3607_v51 = vpop.f32.mrf.mxu3  ;;  %v3512_v8 = vpop.f32.mrf.mxu1  ;;  %v2666_v18 = vrot.slane %v2521_v45, 1 }
 0x395   : > { %v6538_v56 = vadd.f32 %v3607_v51, %v3559_v22  ;;  %v2177_v22 = vld [vmem:[#allocation2 + $0x50] sm:$0x1] }
 0x396   : > { %3658 = vmatmul.bf16.gmra.mxu1 %v2160_v27  ;;  %v5188_v27 = vld [vmem:[#allocation2 + $0x3c] sm:$0xf0]  ;;  %v2514_v35 = vunpack.c.l.b16 %v2177_v22  ;;  %v6596_v22 = vld [vmem:[#allocation2 + $0x6c] sm:$0xff]  }
 0x397   : > { %3707 = vmatmul.bf16.gmra.mxu2 %v2560_v21  ;;  %v5190_v13 = vor.u32 %v5189_v40, %v5188_v27 }
 0x398   : > { %3756 = vmatmul.bf16.gmra.mxu3 %v2661_v0  ;;  %v2522_v59 = vpack.c.b16 %v2514_v35, %v2514_v35 }
 0x399   : > { %v2665_v32 = vrot.slane %v5190_v13, 1 }
 0x39a   : > { %v3561_v29 = vpop.f32.mrf.mxu2  ;;  %v2593_v48 = vshll.u32 %v2522_v59, 16 }
 0x39b   : > { %v3562_v58 = vadd.f32 %v3561_v29, %v3512_v8  ;;  %v3610_v16 = vpop.f32.mrf.mxu3  ;;  %v3514_v41 = vpop.f32.mrf.mxu1  ;;  %v2667_v29 = vsel %vm485_vm1, %v2665_v32, %v2666_v18  ;;  %v2598_v32 = vshrl.u32 %v2168_v30, 16  ;;  %v2602_v18 = vrot.slane %v2600_v62, 1 }
 0x39d   : > { %v6547_v25 = vadd.f32 %v3610_v16, %v3562_v58  ;;  %v5089_v16 = vld [vmem:[#allocation2 + $0x48] sm:$0xf0] }
 0x39e   : > { %v5091_v60 = vor.u32 %v5090_v7, %v5089_v16 }
 0x3a2   : > { %v3563_v31 = vpop.f32.mrf.mxu2 }
 0x3a3   : > { %v3564_v10 = vadd.f32 %v3563_v31, %v3514_v41  ;;  %v3612_v20 = vpop.f32.mrf.mxu3  ;;  %v3517_v3 = vpop.f32.mrf.mxu1  ;;  %v6581_v31 = vld [vmem:[#allocation2 + $0x60] sm:$0xff]  }
 0x3a4   : > { %3825 = vmatmul.bf16.gmra.mxu0 %v6581_v31 }
 0x3a5   : > { %v6552_v52 = vadd.f32 %v3612_v20, %v3564_v10  ;;  %v2595_v10 = vrot.slane %v2593_v48, 1  ;;  %v2668_v20 = vrot.slane %v5091_v60, 1  ;;  %v2832_v48 = vshll.u32 %v6581_v31, 16 }
 0x3a6   : > { %3663 = vmatmul.bf16.gmra.mxu1 %v6399_v43  ;;  %v2581_v43 = vshll.u32 %v2521_v45, 16 }
 0x3a7   : > { %3712 = vmatmul.bf16.gmra.mxu2 %v2572_v42  ;;  %v2178_v42 = vld [vmem:[#allocation2 + $0x5c] sm:$0x1]  ;;  %v2596_v45 = vsel %vm354_vm0, %v6469_v37, %v2595_v10  ;;  %v5092_v10 = vld [vmem:[#allocation2 + $0x60] sm:$0xf0] }
 0x3a8   : > { %3761 = vmatmul.bf16.gmra.mxu3 %v2664_v4  ;;  %v2583_v39 = vrot.slane %v2581_v43, 1  ;;  %v2515_v2 = vunpack.c.l.b16 %v2178_v42 }
 0x3aa   : > { %v3566_v34 = vpop.f32.mrf.mxu2  ;;  %v2584_v0 = vsel %vm354_vm0, %v2579_v38, %v2583_v39  ;;  %v4997_v38 = vld [vmem:[%s6834_s2 + $0x1c0] sm:$0xff] }
 0x3ab   : > { %v3567_v57 = vadd.f32 %v3566_v34, %v3517_v3  ;;  %v3615_v44 = vpop.f32.mrf.mxu3  ;;  %v3519_v61 = vpop.f32.mrf.mxu1  ;;  %v2669_v3 = vrot.slane %v2522_v59, 1  ;;  %3843 = vmatpush.bf16.msra.mxu1 %v4997_v38 }
 0x3ad   : > { %v6566_v26 = vadd.f32 %v3615_v44, %v3567_v57  ;;  %v2670_v57 = vsel %vm485_vm1, %v2668_v20, %v2669_v3  ;;  %v5192_v44 = vld [vmem:[#allocation2 + $0x54] sm:$0xe]  ;;  %v5093_v20 = vld [vmem:[#allocation2 + $0x60] sm:$0xe] }
 0x3b2   : > { %v3568_v51 = vpop.f32.mrf.mxu2 }
 0x3b3   : > { %v3569_v8 = vadd.f32 %v3568_v51, %v3519_v61  ;;  %v3617_v21 = vpop.f32.mrf.mxu3  ;;  %v3522_v11 = vpop.f32.mrf.mxu1  ;;  %v2523_v61 = vpack.c.b16 %v2515_v2, %v2515_v2  ;;  %v6598_v51 = vld [vmem:[#allocation2 + $0x6c] sm:$0xf0]  ;;  %v5094_v2 = vor.u32 %v5093_v20, %v5092_v10 }
 0x3b4   : > { %3830 = vmatmul.bf16.gmra.mxu0 %v6596_v22 }
 0x3b5   : > { %v6570_v49 = vadd.f32 %v3617_v21, %v3569_v8  ;;  %v5193_v21 = vor.u32 %v5192_v44, %v5191_v46  ;;  %v2674_v44 = vrot.slane %v5094_v2, 1 }
 0x3b6   : > { %3668 = vmatmul.bf16.gmra.mxu1 %v2164_v19 }
 0x3b7   : > { %3717 = vmatmul.bf16.gmra.mxu2 %v2584_v0  ;;  %v2671_v35 = vrot.slane %v5193_v21, 1  ;;  %v5095_v21 = vld [vmem:[#allocation2 + $0x18] sm:$0xf0] }
 0x3b8   : > { %3766 = vmatmul.bf16.gmra.mxu3 %v2667_v29  ;;  %v2672_v29 = vrot.slane %v2523_v61, 1 }
 0x3ba   : > { %v3571_v58 = vpop.f32.mrf.mxu2 }
 0x3bb   : > { %v3572_v41 = vadd.f32 %v3571_v58, %v3522_v11  ;;  %v3620_v54 = vpop.f32.mrf.mxu3  ;;  %v3524_v27 = vpop.f32.mrf.mxu1  ;;  %v2603_v11 = vor.u32 %v2602_v18, %v2598_v32 }
 0x3bd   : > { %v6579_v19 = vadd.f32 %v3620_v54, %v3572_v41  ;;  %v2516_v54 = vunpack.c.l.b16 %v2179_v28 }
 0x3bf   : > { %v2524_v60 = vpack.c.b16 %v2516_v54, %v2516_v54 }
 0x3c1   : > { %v2675_v50 = vrot.slane %v2524_v60, 1 }
 0x3c2   : > { %v3573_v1 = vpop.f32.mrf.mxu2 }
 0x3c3   : > { %v3574_v4 = vadd.f32 %v3573_v1, %v3524_v27  ;;  %v3622_v40 = vpop.f32.mrf.mxu3  ;;  %v3527_v15 = vpop.f32.mrf.mxu1  ;;  %v2673_v27 = vsel %vm485_vm1, %v2671_v35, %v2672_v29  ;;  %v2676_v18 = vsel %vm485_vm1, %v2674_v44, %v2675_v50  ;;  %v2770_v50 = vshrl.u32 %v6502_v23, 16 }
 0x3c5   : > { %v6586_v34 = vadd.f32 %v3622_v40, %v3574_v4  ;;  %v2830_v4 = vshrl.u32 %v6581_v31, 16  ;;  %v2834_v40 = vrot.slane %v2832_v48, 1 }
 0x3c6   : > { %3673 = vmatmul.bf16.gmra.mxu1 %v6441_v55  ;;  %v2605_v55 = vshll.u32 %v2523_v61, 16  ;;  %v2205_v61 = vld [vmem:[#allocation2 + $0x20] sm:$0x1] }
 0x3c7   : > { %3722 = vmatmul.bf16.gmra.mxu2 %v2596_v45 }
 0x3c8   : > { %3771 = vmatmul.bf16.gmra.mxu3 %v2670_v57  ;;  %v2607_v0 = vrot.slane %v2605_v55, 1  ;;  %v6611_v57 = vor.u32 %v2834_v40, %v2830_v4  ;;  %v5195_v4 = vld [vmem:[#allocation2 + $0x24] sm:$0xe] }
 0x3ca   : > { %v3576_v12 = vpop.f32.mrf.mxu2  ;;  %v2608_v41 = vsel %vm354_vm0, %v2603_v11, %v2607_v0  ;;  %v5096_v11 = vld [vmem:[#allocation2 + $0x18] sm:$0xe] }
 0x3cb   : > { %v3577_v43 = vadd.f32 %v3576_v12, %v3527_v15  ;;  %v3625_v13 = vpop.f32.mrf.mxu3  ;;  %v3529_v39 = vpop.f32.mrf.mxu1  ;;  %v2617_v15 = vshll.u32 %v2524_v60, 16 }
 0x3cd   : > { %v6600_v8 = vadd.f32 %v3625_v13, %v3577_v43 }
 0x3d2   : > { %v3578_v59 = vpop.f32.mrf.mxu2 }
 0x3d3   : > { %v3579_v58 = vadd.f32 %v3578_v59, %v3529_v39  ;;  %v3627_v16 = vpop.f32.mrf.mxu3  ;;  %v3532_v7 = vpop.f32.mrf.mxu1  ;;  %v2741_v39 = vunpack.c.l.b16 %v2205_v61 }
 0x3d5   : > { %v6604_v6 = vadd.f32 %v3627_v16, %v3579_v58  ;;  %v2749_v55 = vpack.c.b16 %v2741_v39, %v2741_v39  ;;  %v5097_v58 = vor.u32 %v5096_v11, %v5095_v21  ;;  %v2207_v39 = vld [vmem:[#allocation2 + $0x38] sm:$0x1] }
 0x3d6   : > { %3678 = vmatmul.bf16.gmra.mxu1 %v2168_v30  ;;  %v2619_v30 = vrot.slane %v2617_v15, 1  ;;  %v2772_v15 = vshll.u32 %v6502_v23, 16  ;;  %v2743_v23 = vunpack.c.l.b16 %v2207_v39 }
 0x3d7   : > { %3727 = vmatmul.bf16.gmra.mxu2 %v2608_v41  ;;  %v2765_v59 = vshll.u32 %v2749_v55, 16  ;;  %v2885_v41 = vrot.slane %v5097_v58, 1  ;;  %v2886_v54 = vrot.slane %v2749_v55, 1 }
 0x3d8   : > { %3776 = vmatmul.bf16.gmra.mxu3 %v2673_v27  ;;  %v2620_v38 = vsel %vm354_vm0, %v6611_v57, %v2619_v30  ;;  %v2206_v27 = vld [vmem:[#allocation2 + $0x2c] sm:$0x1] }
 0x3d9   : > { %v2887_v20 = vsel %vm485_vm1, %v2885_v41, %v2886_v54 }
 0x3da   : > { %v3581_v46 = vpop.f32.mrf.mxu2 }
 0x3db   : > { %v3582_v3 = vadd.f32 %v3581_v46, %v3532_v7  ;;  %v3630_v42 = vpop.f32.mrf.mxu3  ;;  %v3534_v1 = vpop.f32.mrf.mxu1  ;;  %v2767_v7 = vrot.slane %v2765_v59, 1 }
 0x3dd   : > { %v6609_v45 = vadd.f32 %v3630_v42, %v3582_v3  ;;  %v2768_v10 = vsel %vm354_vm0, %v6385_v14, %v2767_v7  ;;  %v2742_v3 = vunpack.c.l.b16 %v2206_v27  ;;  %v2774_v14 = vrot.slane %v2772_v15, 1 }
 0x3de   : > { %v2796_v15 = vshll.u32 %v6530_v53, 16 }
 0x3df   : > { %v2750_v40 = vpack.c.b16 %v2742_v3, %v2742_v3 }
 0x3e1   : > { %v2777_v61 = vshll.u32 %v2750_v40, 16 }
 0x3e2   : > { %v3583_v62 = vpop.f32.mrf.mxu2 }
 0x3e3   : > { %v3584_v12 = vadd.f32 %v3583_v62, %v3534_v1  ;;  %v3632_v43 = vpop.f32.mrf.mxu3  ;;  %v3537_v13 = vpop.f32.mrf.mxu1  ;;  %v5196_v62 = vor.u32 %v5195_v4, %v6504_v24  ;;  %v2751_v24 = vpack.c.b16 %v2743_v23, %v2743_v23 }
 0x3e5   : > { %v6615_v32 = vadd.f32 %v3632_v43, %v3584_v12  ;;  %v2775_v43 = vor.u32 %v2774_v14, %v2770_v50  ;;  %v2789_v7 = vshll.u32 %v2751_v24, 16  ;;  %v2794_v14 = vshrl.u32 %v6530_v53, 16 }
 0x3e6   : > { %3683 = vmatmul.bf16.gmra.mxu1 %v6581_v31 }
 0x3e7   : > { %3732 = vmatmul.bf16.gmra.mxu2 %v2620_v38  ;;  %v2889_v38 = vrot.slane %v2750_v40, 1  ;;  %v2791_v27 = vrot.slane %v2789_v7, 1  ;;  %v5198_v40 = vld [vmem:[#allocation2 + $0x3c] sm:$0xe] }
 0x3e8   : > { %3781 = vmatmul.bf16.gmra.mxu3 %v2676_v18 }
 0x3ea   : > { %v3586_v0 = vpop.f32.mrf.mxu2 }
 0x3eb   : > { %v3587_v35 = vadd.f32 %v3586_v0, %v3537_v13  ;;  %v3635_v29 = vpop.f32.mrf.mxu3  ;;  %v3539_v28 = vpop.f32.mrf.mxu1  ;;  %v2888_v13 = vrot.slane %v5196_v62, 1 }
 0x3ed   : > { %v6619_v16 = vadd.f32 %v3635_v29, %v3587_v35  ;;  %v2890_v0 = vsel %vm485_vm1, %v2888_v13, %v2889_v38  ;;  %v5099_v29 = vld [vmem:[#allocation2 + $0x30] sm:$0xe]  ;;  %v2209_v38 = vld [vmem:[#allocation2 + $0x50] sm:$0x1] }
 0x3ee   : > { %v2745_v53 = vunpack.c.l.b16 %v2209_v38 }
 0x3f2   : > { %v3588_v48 = vpop.f32.mrf.mxu2 }
 0x3f3   : > { %v3589_v60 = vadd.f32 %v3588_v48, %v3539_v28  ;;  %v3637_v31 = vpop.f32.mrf.mxu3  ;;  %v3649_v46 = vpop.f32.mrf.mxu1 }
 0x3f4   : > { %v3650_v1 = vadd.f32 %v3649_v46, %v6515_v5  ;;  %v2779_v5 = vrot.slane %v2777_v61, 1  ;;  %v2798_v61 = vrot.slane %v2796_v15, 1 }
 0x3f5   : > { %v6624_v42 = vadd.f32 %v3637_v31, %v3589_v60  ;;  %v2892_v60 = vrot.slane %v2751_v24, 1  ;;  %v2208_v31 = vld [vmem:[#allocation2 + $0x44] sm:$0x1] }
 0x3f6   : > { %3844 = vmatmul.bf16.vlgmr.msra.gmra.mxu1 %v2768_v10  ;;  %v2780_v11 = vsel %vm354_vm0, %v2775_v43, %v2779_v5  ;;  %v2799_v43 = vor.u32 %v2798_v61, %v2794_v14 }
 0x3f7   : > { %3893 = vmatmul.bf16.vlgmr.msra.gmra.mxu2 %v2887_v20  ;;  %v2792_v20 = vsel %vm354_vm0, %v6409_v36, %v2791_v27  ;;  %v5199_v36 = vor.u32 %v5198_v40, %v6532_v47  ;;  %v2753_v47 = vpack.c.b16 %v2745_v53, %v2745_v53 }
 0x3f9   : > { %v2894_v5 = vrot.slane %v5199_v36, 1  ;;  %v2898_v27 = vrot.slane %v2753_v47, 1 }
 0x3fa   : > { %v3698_v2 = vpop.f32.mrf.mxu2 }
 0x3fb   : > { %v6628_v30 = vadd.f32 %v3698_v2, %v3650_v1  ;;  %v3651_v44 = vpop.f32.mrf.mxu1  ;;  %v2744_v1 = vunpack.c.l.b16 %v2208_v31 }
 0x3fc   : > { %v3652_v12 = vadd.f32 %v3651_v44, %v6520_v63  ;;  %v5098_v63 = vld [vmem:[#allocation2 + $0x30] sm:$0xf0] }
 0x3fd   : > { %v5100_v41 = vor.u32 %v5099_v29, %v5098_v63 }
 0x3ff   : > { %v2891_v48 = vrot.slane %v5100_v41, 1 }
 0x401   : > { %v2893_v3 = vsel %vm485_vm1, %v2891_v48, %v2892_v60  ;;  %v2210_v48 = vld [vmem:[#allocation2 + $0x5c] sm:$0x1] }
 0x402   : > { %v3700_v18 = vpop.f32.mrf.mxu2 }
 0x403   : > { %v6633_v55 = vadd.f32 %v3700_v18, %v3652_v12  ;;  %v3654_v21 = vpop.f32.mrf.mxu1 }
 0x404   : > { %v3655_v35 = vadd.f32 %v3654_v21, %v6534_v33 }
 0x406   : > { %3849 = vmatmul.bf16.gmra.mxu1 %v2780_v11 }
 0x407   : > { %3898 = vmatmul.bf16.gmra.mxu2 %v2890_v0 }
 0x40a   : > { %v3703_v28 = vpop.f32.mrf.mxu2 }
 0x40b   : > { %v6638_v59 = vadd.f32 %v3703_v28, %v3655_v35  ;;  %v3656_v58 = vpop.f32.mrf.mxu1  ;;  %v5102_v35 = vld [vmem:[#allocation2 + $0x48] sm:$0xe]  ;;  %v2813_v28 = vshll.u32 %v2753_v47, 16 }
 0x40c   : > { %v3657_v54 = vadd.f32 %v3656_v58, %v6538_v56  ;;  %v2752_v56 = vpack.c.b16 %v2744_v1, %v2744_v1  ;;  %v5201_v1 = vld [vmem:[#allocation2 + $0x54] sm:$0xe] }
 0x40d   : > { %v2815_v41 = vrot.slane %v2813_v28, 1 }
 0x40e   : > { %v2801_v62 = vshll.u32 %v2752_v56, 16  ;;  %v2895_v13 = vrot.slane %v2752_v56, 1 }
 0x410   : > { %v2896_v0 = vsel %vm485_vm1, %v2894_v5, %v2895_v13 }
 0x412   : > { %v3705_v46 = vpop.f32.mrf.mxu2 }
 0x413   : > { %v6641_v10 = vadd.f32 %v3705_v46, %v3657_v54  ;;  %v3659_v33 = vpop.f32.mrf.mxu1  ;;  %v2816_v46 = vsel %vm354_vm0, %v6469_v37, %v2815_v41  ;;  %v5202_v37 = vor.u32 %v5201_v1, %v6564_v17 }
 0x414   : > { %v3660_v4 = vadd.f32 %v3659_v33, %v6547_v25  ;;  %v2803_v25 = vrot.slane %v2801_v62, 1 }
 0x415   : > { %v2900_v36 = vrot.slane %v5202_v37, 1 }
 0x416   : > { %3854 = vmatmul.bf16.gmra.mxu1 %v2792_v20  ;;  %v2804_v11 = vsel %vm354_vm0, %v2799_v43, %v2803_v25  ;;  %v2746_v20 = vunpack.c.l.b16 %v2210_v48  ;;  %v2211_v43 = vld [vmem:[#allocation2 + $0x68] sm:$0x1] }
 0x417   : > { %3903 = vmatmul.bf16.gmra.mxu2 %v2893_v3 }
 0x41a   : > { %v3708_v2 = vpop.f32.mrf.mxu2 }
 0x41b   : > { %v6648_v44 = vadd.f32 %v3708_v2, %v3660_v4  ;;  %v3661_v50 = vpop.f32.mrf.mxu1  ;;  %v2820_v4 = vshll.u32 %v6562_v9, 16  ;;  %v2818_v2 = vshrl.u32 %v6562_v9, 16  ;;  %v2747_v9 = vunpack.c.l.b16 %v2211_v43 }
 0x41c   : > { %v3662_v12 = vadd.f32 %v3661_v50, %v6552_v52  ;;  %v5101_v52 = vld [vmem:[#allocation2 + $0x48] sm:$0xf0] }
 0x41d   : > { %v5103_v58 = vor.u32 %v5102_v35, %v5101_v52  ;;  %v2822_v50 = vrot.slane %v2820_v4, 1  ;;  %v2755_v17 = vpack.c.b16 %v2747_v9, %v2747_v9 }
 0x41f   : > { %v2897_v54 = vrot.slane %v5103_v58, 1  ;;  %v2823_v62 = vor.u32 %v2822_v50, %v2818_v2  ;;  %v2837_v47 = vshll.u32 %v2755_v17, 16  ;;  %v2904_v28 = vrot.slane %v2755_v17, 1  ;;  %v2212_v58 = vld [vmem:[#allocation2 + $0x74] sm:$0x1] }
 0x421   : > { %v2899_v33 = vsel %vm485_vm1, %v2897_v54, %v2898_v27 }
 0x422   : > { %v3710_v39 = vpop.f32.mrf.mxu2 }
 0x423   : > { %v6653_v18 = vadd.f32 %v3710_v39, %v3662_v12  ;;  %v3664_v21 = vpop.f32.mrf.mxu1 }
 0x424   : > { %v3665_v23 = vadd.f32 %v3664_v21, %v6566_v26 }
 0x426   : > { %3859 = vmatmul.bf16.gmra.mxu1 %v2804_v11  ;;  %v5105_v11 = vld [vmem:[#allocation2 + $0x60] sm:$0xe] }
 0x427   : > { %3908 = vmatmul.bf16.gmra.mxu2 %v2896_v0 }
 0x42a   : > { %v3713_v24 = vpop.f32.mrf.mxu2 }
 0x42b   : > { %v6658_v63 = vadd.f32 %v3713_v24, %v3665_v23  ;;  %v3666_v29 = vpop.f32.mrf.mxu1  ;;  %v2839_v24 = vrot.slane %v2837_v47, 1  ;;  %v6887_v47 = vld [vmem:[#allocation3_spill] sm:$0xff] }
 0x42c   : > { %v3667_v7 = vadd.f32 %v3666_v29, %v6570_v49  ;;  %v2754_v49 = vpack.c.b16 %v2746_v20, %v2746_v20  ;;  %v2844_v20 = vshll.u32 %v6596_v22, 16 }
 0x42d   : > { %v2840_v27 = vsel %vm354_vm0, %v6611_v57, %v2839_v24 }
 0x42e   : > { %v2825_v14 = vshll.u32 %v2754_v49, 16  ;;  %v2901_v12 = vrot.slane %v2754_v49, 1  ;;  %v2846_v57 = vrot.slane %v2844_v20, 1 }
 0x430   : > { %v2902_v39 = vsel %vm485_vm1, %v2900_v36, %v2901_v12 }
 0x432   : > { %v3715_v60 = vpop.f32.mrf.mxu2 }
 0x433   : > { %v6661_v31 = vadd.f32 %v3715_v60, %v3667_v7  ;;  %v3669_v26 = vpop.f32.mrf.mxu1  ;;  %v3747_v7 = vpop.f32.mrf.mxu3  ;;  %v2748_v60 = vunpack.c.l.b16 %v2212_v58 }
 0x434   : > { %v3670_v3 = vadd.f32 %v3669_v26, %v6579_v19  ;;  %v2827_v19 = vrot.slane %v2825_v14, 1 }
 0x436   : > { %3864 = vmatmul.bf16.gmra.mxu1 %v2816_v46  ;;  %v2828_v38 = vsel %vm354_vm0, %v2823_v62, %v2827_v19  ;;  %v5204_v46 = vld [vmem:[#allocation2 + $0x6c] sm:$0xe] }
 0x437   : > { %3913 = vmatmul.bf16.gmra.mxu2 %v2899_v33  ;;  %v3796_v33 = vpop.f32.mrf.mxu0  ;;  %v5205_v2 = vor.u32 %v5204_v46, %v6598_v51  ;;  %v6888_v46 = vld [vmem:[#allocation14_spill] sm:$0xff] }
 0x43a   : > { %v3718_v40 = vpop.f32.mrf.mxu2 }
 0x43b   : > { %v6668_v56 = vadd.f32 %v3718_v40, %v3670_v3  ;;  %v3671_v15 = vpop.f32.mrf.mxu1  ;;  %v3749_v49 = vpop.f32.mrf.mxu3  ;;  %v2842_v40 = vshrl.u32 %v6596_v22, 16 }
 0x43c   : > { %v3672_v61 = vadd.f32 %v3671_v15, %v6586_v34  ;;  %v5104_v34 = vld [vmem:[#allocation2 + $0x60] sm:$0xf0] }
 0x43d   : > { %v5106_v52 = vor.u32 %v5105_v11, %v5104_v34  ;;  %v2847_v14 = vor.u32 %v2846_v57, %v2842_v40  ;;  %v3748_v34 = vadd.f32 %v3747_v7, %v6628_v30  ;;  %v3750_v30 = vadd.f32 %v3749_v49, %v6633_v55 }
 0x43f   : > { %v2903_v29 = vrot.slane %v5106_v52, 1  ;;  %v3798_v50 = vpop.f32.mrf.mxu0  ;;  %v3971_v52 = vunpack.c.h.bf16 %v6887_v47 }
 0x441   : > { %v2905_v48 = vsel %vm485_vm1, %v2903_v29, %v2904_v28  ;;  %v6709_v29 = vld [vmem:[%s6835_s3 + $0x2] ss:$0 sm:$0xff] }
 0x442   : > { %v3720_v25 = vpop.f32.mrf.mxu2 }
 0x443   : > { %v6673_v5 = vadd.f32 %v3720_v25, %v3672_v61  ;;  %v3674_v13 = vpop.f32.mrf.mxu1  ;;  %v2906_v61 = vrot.slane %v5205_v2, 1 }
 0x444   : > { %v3675_v21 = vadd.f32 %v3674_v13, %v6600_v8  ;;  %v3752_v13 = vpop.f32.mrf.mxu3 }
 0x445   : > { %v3753_v40 = vadd.f32 %v3752_v13, %v6638_v59 }
 0x446   : > { %3869 = vmatmul.bf16.gmra.mxu1 %v2828_v38 }
 0x447   : > { %3918 = vmatmul.bf16.gmra.mxu2 %v2902_v39  ;;  %v3801_v51 = vpop.f32.mrf.mxu0 }
 0x44a   : > { %v3723_v0 = vpop.f32.mrf.mxu2 }
 0x44b   : > { %v6678_v53 = vadd.f32 %v3723_v0, %v3675_v21  ;;  %v3676_v23 = vpop.f32.mrf.mxu1 }
 0x44c   : > { %v3677_v35 = vadd.f32 %v3676_v23, %v6604_v6  ;;  %v2756_v6 = vpack.c.b16 %v2748_v60, %v2748_v60  ;;  %v3754_v21 = vpop.f32.mrf.mxu3 }
 0x44e   : > { %v2849_v15 = vshll.u32 %v2756_v6, 16  ;;  %v2907_v62 = vrot.slane %v2756_v6, 1  ;;  %v3799_v6 = vadd.f32 %v3798_v50, %v3750_v30 }
 0x44f   : > { %v3803_v0 = vpop.f32.mrf.mxu0 }
 0x450   : > { %v2851_v37 = vrot.slane %v2849_v15, 1  ;;  %v2908_v25 = vsel %vm485_vm1, %v2906_v61, %v2907_v62  ;;  %v6889_v61 = vld [vmem:[#allocation4_spill] sm:$0xff] }
 0x451   : > { %v3973_v50 = vunpack.c.l.bf16 %v6889_v61  ;;  %v3974_v62 = vunpack.c.h.bf16 %v6889_v61 }
 0x452   : > { %v3725_v41 = vpop.f32.mrf.mxu2  ;;  %v2852_v43 = vsel %vm354_vm0, %v2847_v14, %v2851_v37 }
 0x453   : > { %v6681_v8 = vadd.f32 %v3725_v41, %v3677_v35  ;;  %v3679_v54 = vpop.f32.mrf.mxu1  ;;  %v3797_v35 = vadd.f32 %v3796_v33, %v3748_v34  ;;  %v4020_v41 = vrot.slane %v3971_v52, 1  ;;  %v3972_v33 = vunpack.c.l.bf16 %v6888_v46 }
 0x454   : > { %v3680_v26 = vadd.f32 %v3679_v54, %v6609_v45  ;;  %v6715_v54 = vld [vmem:[%s6835_s3 + $0x3] ss:$0 sm:$0xff]  ;;  %v4024_v13 = vrot.slane %v3973_v50, 1  ;;  %v6892_v50 = vld [vmem:[#allocation17_spill] sm:$0xff] }
 0x456   : > { %3874 = vmatmul.bf16.gmra.mxu1 %v2840_v27 }
 0x457   : > { %3923 = vmatmul.bf16.gmra.mxu2 %v2905_v48  ;;  %v3806_v60 = vpop.f32.mrf.mxu0 }
 0x45a   : > { %v3728_v3 = vpop.f32.mrf.mxu2 }
 0x45b   : > { %v6688_v1 = vadd.f32 %v3728_v3, %v3680_v26  ;;  %v3681_v4 = vpop.f32.mrf.mxu1 }
 0x45c   : > { %v3682_v45 = vadd.f32 %v3681_v4, %v6615_v32  ;;  %v4022_v4 = vrot.slane %v3972_v33, 1  ;;  %v6891_v33 = vld [vmem:[#allocation5_spill] sm:$0xff] }
 0x45e   : > { %v4023_v37 = vsel %vm485_vm1, %v4020_v41, %v4022_v4 }
 0x462   : > { %v3730_v19 = vpop.f32.mrf.mxu2 }
 0x463   : > { %v6693_v36 = vadd.f32 %v3730_v19, %v3682_v45  ;;  %v3684_v12 = vpop.f32.mrf.mxu1  ;;  %v3802_v19 = vadd.f32 %v3801_v51, %v3753_v40 }
 0x464   : > { %v3685_v22 = vadd.f32 %v3684_v12, %v6619_v16  ;;  %v3970_v16 = vunpack.c.l.bf16 %v6887_v47 }
 0x466   : > { %3879 = vmatmul.bf16.gmra.mxu1 %v2852_v43  ;;  %v4019_v58 = vrot.slane %v3970_v16, 1  ;;  %v3808_v43 = vpop.f32.mrf.mxu0  ;;  %v6890_v16 = vld [vmem:[#allocation13_spill] sm:$0xff] }
 0x467   : > { %3928 = vmatmul.bf16.gmra.mxu2 %v2908_v25  ;;  %v3975_v52 = vunpack.c.l.bf16 %v6890_v16 }
 0x468   : > { %v4021_v26 = vsel %vm485_vm1, %v4019_v58, %v4020_v41 }
 0x46a   : > { %v3733_v32 = vpop.f32.mrf.mxu2 }
 0x46b   : > { %v6698_v38 = vadd.f32 %v3733_v32, %v3685_v22  ;;  %v3686_v39 = vpop.f32.mrf.mxu1  ;;  %v4025_v32 = vrot.slane %v3974_v62, 1  ;;  %v3978_v62 = vunpack.c.l.bf16 %v6892_v50 }
 0x46c   : > { %v3687_v9 = vadd.f32 %v3686_v39, %v6624_v42  ;;  %v3757_v42 = vpop.f32.mrf.mxu3  ;;  %v3755_v39 = vadd.f32 %v3754_v21, %v6641_v10  ;;  %v4027_v10 = vrot.slane %v3975_v52, 1 }
 0x46d   : > { %v4026_v51 = vsel %vm485_vm1, %v4024_v13, %v4025_v32  ;;  %v3758_v21 = vadd.f32 %v3757_v42, %v6648_v44 }
 0x46e   : > { %v3811_v41 = vpop.f32.mrf.mxu0  ;;  %v4028_v46 = vsel %vm485_vm1, %v4025_v32, %v4027_v10 }
 0x472   : > { %v3735_v17 = vpop.f32.mrf.mxu2 }
 0x473   : > { %v6702_v11 = vadd.f32 %v3735_v17, %v3687_v9  ;;  %v3845_v23 = vpop.f32.mrf.mxu1 }
 0x474   : > { %v3846_v24 = vadd.f32 %v3845_v23, %v3797_v35  ;;  %v3759_v2 = vpop.f32.mrf.mxu3  ;;  %v3804_v35 = vadd.f32 %v3803_v0, %v3755_v39  ;;  %v3976_v0 = vunpack.c.l.bf16 %v6891_v33 }
 0x476   : > { %v4029_v42 = vrot.slane %v3976_v0, 1 }
 0x47a   : > { %v3894_v28 = vpop.f32.mrf.mxu2 }
 0x47b   : > { %v3895_v7 = vadd.f32 %v3894_v28, %v3846_v24  ;;  %v3847_v27 = vpop.f32.mrf.mxu1 }
 0x47c   : > { %v3848_v55 = vadd.f32 %v3847_v27, %v3799_v6  ;;  %v3762_v47 = vpop.f32.mrf.mxu3  ;;  %v3977_v6 = vunpack.c.h.bf16 %v6891_v33 }
 0x47d   : > { %v3936_v48 = vmul.f32 %v6709_v29, %v3895_v7 }
 0x47e   : > { %v4030_v40 = vrot.slane %v3977_v6, 1 }
 0x47f   : > { %v3954_v20 = vadd.f32 %v6715_v54, %v3936_v48 }
 0x481   : > { %v4075_v3 = vadd.f32 %v4021_v26, %v3954_v20  ;;  %v3807_v20 = vadd.f32 %v3806_v60, %v3758_v21  ;;  %v4031_v60 = vsel %vm485_vm1, %v4029_v42, %v4030_v40 }
 0x482   : > { %v3896_v49 = vpop.f32.mrf.mxu2 }
 0x483   : > { %v4091_v57 = vmax.f32 %v4075_v3, 0.0  ;;  %v3897_v15 = vadd.f32 %v3896_v49, %v3848_v55  ;;  %v3850_v45 = vpop.f32.mrf.mxu1 }
 0x484   : > { %v3851_v59 = vadd.f32 %v3850_v45, %v3802_v19  ;;  %v3764_v55 = vpop.f32.mrf.mxu3 }
 0x485   : > { %4107 = vst [vmem:[%s5345_s7] sm:$0xff] %v4091_v57  ;;  %v3937_v14 = vmul.f32 %v6709_v29, %v3897_v15  ;;  %v3760_v57 = vadd.f32 %v3759_v2, %v6653_v18  ;;  %v4032_v18 = vrot.slane %v3978_v62, 1  ;;  %v3763_v2 = vadd.f32 %v3762_v47, %v6658_v63 }
 0x487   : > { %v3955_v12 = vadd.f32 %v6715_v54, %v3937_v14  ;;  %v3813_v14 = vpop.f32.mrf.mxu0  ;;  %v3809_v19 = vadd.f32 %v3808_v43, %v3760_v57  ;;  %v6893_v43 = vld [vmem:[#allocation6_spill] sm:$0xff]  ;;  %v3812_v52 = vadd.f32 %v3811_v41, %v3763_v2 }
 0x488   : > { %v3980_v16 = vunpack.c.h.bf16 %v6893_v43  ;;  %v6894_v41 = vld [vmem:[#allocation18_spill] sm:$0xff] }
 0x489   : > { %v4076_v25 = vadd.f32 %v4023_v37, %v3955_v12 }
 0x48a   : > { %v3899_v22 = vpop.f32.mrf.mxu2 }
 0x48b   : > { %v4092_v9 = vmax.f32 %v4076_v25, 0.0  ;;  %v3900_v17 = vadd.f32 %v3899_v22, %v3851_v59  ;;  %v3852_v34 = vpop.f32.mrf.mxu1 }
 0x48c   : > { %v3853_v58 = vadd.f32 %v3852_v34, %v3804_v35  ;;  %v3767_v22 = vpop.f32.mrf.mxu3 }
 0x48d   : > { %4108 = vst [vmem:[%s5345_s7 + $0x8] sm:$0xff] %v4092_v9  ;;  %v3938_v23 = vmul.f32 %v6709_v29, %v3900_v17 }
 0x48f   : > { %v3956_v24 = vadd.f32 %v6715_v54, %v3938_v23  ;;  %v3816_v34 = vpop.f32.mrf.mxu0  ;;  %v4033_v23 = vsel %vm485_vm1, %v4030_v40, %v4032_v18 }
 0x491   : > { %v4077_v28 = vadd.f32 %v4026_v51, %v3956_v24  ;;  %v3979_v51 = vunpack.c.l.bf16 %v6893_v43 }
 0x492   : > { %v3901_v30 = vpop.f32.mrf.mxu2 }
 0x493   : > { %v4093_v7 = vmax.f32 %v4077_v28, 0.0  ;;  %v3902_v27 = vadd.f32 %v3901_v30, %v3853_v58  ;;  %v3855_v48 = vpop.f32.mrf.mxu1  ;;  %v4034_v47 = vrot.slane %v3979_v51, 1  ;;  %v4035_v58 = vrot.slane %v3980_v16, 1 }
 0x494   : > { %v3856_v4 = vadd.f32 %v3855_v48, %v3807_v20  ;;  %v3765_v30 = vadd.f32 %v3764_v55, %v6661_v31  ;;  %v3768_v55 = vadd.f32 %v3767_v22, %v6668_v56 }
 0x495   : > { %4109 = vst [vmem:[%s5345_s7 + $0x10] sm:$0xff] %v4093_v7  ;;  %v3939_v26 = vmul.f32 %v6709_v29, %v3902_v27  ;;  %v3769_v7 = vpop.f32.mrf.mxu3 }
 0x496   : > { %v3814_v33 = vadd.f32 %v3813_v14, %v3765_v30  ;;  %v6897_v30 = vld [vmem:[#allocation8_spill] sm:$0xff] }
 0x497   : > { %v3957_v3 = vadd.f32 %v6715_v54, %v3939_v26  ;;  %v4036_v26 = vsel %vm485_vm1, %v4034_v47, %v4035_v58  ;;  %v3818_v6 = vpop.f32.mrf.mxu0 }
 0x499   : > { %v4078_v49 = vadd.f32 %v4028_v46, %v3957_v3  ;;  %v3981_v46 = vunpack.c.l.bf16 %v6894_v41 }
 0x49a   : > { %v3904_v44 = vpop.f32.mrf.mxu2 }
 0x49b   : > { %v4094_v15 = vmax.f32 %v4078_v49, 0.0  ;;  %v3905_v45 = vadd.f32 %v3904_v44, %v3856_v4  ;;  %v3857_v37 = vpop.f32.mrf.mxu1  ;;  %v4037_v31 = vrot.slane %v3981_v46, 1 }
 0x49c   : > { %v3858_v59 = vadd.f32 %v3857_v37, %v3809_v19 }
 0x49d   : > { %4110 = vst [vmem:[%s5345_s7 + $0x18] sm:$0xff] %v4094_v15  ;;  %v3940_v61 = vmul.f32 %v6709_v29, %v3905_v45  ;;  %v3772_v57 = vpop.f32.mrf.mxu3  ;;  %v4038_v15 = vsel %vm485_vm1, %v4035_v58, %v4037_v31  ;;  %v6895_v45 = vld [vmem:[#allocation7_spill] sm:$0xff] }
 0x49e   : > { %v3982_v14 = vunpack.c.l.bf16 %v6895_v45  ;;  %v3983_v37 = vunpack.c.h.bf16 %v6895_v45 }
 0x49f   : > { %v3958_v12 = vadd.f32 %v6715_v54, %v3940_v61  ;;  %v3817_v61 = vadd.f32 %v3816_v34, %v3768_v55  ;;  %v3821_v56 = vpop.f32.mrf.mxu0 }
 0x4a1   : > { %v4079_v25 = vadd.f32 %v4031_v60, %v3958_v12  ;;  %v4039_v12 = vrot.slane %v3982_v14, 1 }
 0x4a2   : > { %v3906_v13 = vpop.f32.mrf.mxu2 }
 0x4a3   : > { %v4095_v32 = vmax.f32 %v4079_v25, 0.0  ;;  %v3907_v39 = vadd.f32 %v3906_v13, %v3858_v59  ;;  %v3860_v9 = vpop.f32.mrf.mxu1  ;;  %v4040_v25 = vrot.slane %v3983_v37, 1  ;;  %v3770_v59 = vadd.f32 %v3769_v7, %v6673_v5 }
 0x4a4   : > { %v3861_v28 = vadd.f32 %v3860_v9, %v3812_v52  ;;  %v3773_v5 = vadd.f32 %v3772_v57, %v6678_v53 }
 0x4a5   : > { %4111 = vst [vmem:[%s5345_s7 + $0x20] sm:$0xff] %v4095_v32  ;;  %v3941_v17 = vmul.f32 %v6709_v29, %v3907_v39  ;;  %v4041_v32 = vsel %vm485_vm1, %v4039_v12, %v4040_v25  ;;  %v6896_v39 = vld [vmem:[#allocation19_spill] sm:$0xff] }
 0x4a6   : > { %v3984_v9 = vunpack.c.l.bf16 %v6896_v39  ;;  %v3822_v7 = vadd.f32 %v3821_v56, %v3773_v5 }
 0x4a7   : > { %v3959_v35 = vadd.f32 %v6715_v54, %v3941_v17  ;;  %v3819_v17 = vadd.f32 %v3818_v6, %v3770_v59 }
 0x4a8   : > { %v4042_v52 = vrot.slane %v3984_v9, 1 }
 0x4a9   : > { %v4080_v24 = vadd.f32 %v4033_v23, %v3959_v35  ;;  %v3774_v23 = vpop.f32.mrf.mxu3 }
 0x4aa   : > { %v3909_v63 = vpop.f32.mrf.mxu2  ;;  %v4043_v58 = vsel %vm485_vm1, %v4040_v25, %v4042_v52  ;;  %v6900_v52 = vld [vmem:[#allocation12_spill] sm:$0xff] }
 0x4ab   : > { %v4096_v10 = vmax.f32 %v4080_v24, 0.0  ;;  %v3910_v21 = vadd.f32 %v3909_v63, %v3861_v28  ;;  %v3862_v27 = vpop.f32.mrf.mxu1  ;;  %v3823_v28 = vpop.f32.mrf.mxu0  ;;  %v3990_v5 = vunpack.c.l.bf16 %v6900_v52 }
 0x4ac   : > { %v3863_v3 = vadd.f32 %v3862_v27, %v3814_v33 }
 0x4ad   : > { %4112 = vst [vmem:[%s5345_s7 + $0x28] sm:$0xff] %v4096_v10  ;;  %v3942_v48 = vmul.f32 %v6709_v29, %v3910_v21  ;;  %v3985_v10 = vunpack.c.l.bf16 %v6897_v30  ;;  %v3986_v21 = vunpack.c.h.bf16 %v6897_v30 }
 0x4af   : > { %v3960_v0 = vadd.f32 %v6715_v54, %v3942_v48  ;;  %v4044_v46 = vrot.slane %v3985_v10, 1  ;;  %v4045_v33 = vrot.slane %v3986_v21, 1 }
 0x4b1   : > { %v4081_v20 = vadd.f32 %v4036_v26, %v3960_v0  ;;  %v3777_v53 = vpop.f32.mrf.mxu3  ;;  %v3775_v0 = vadd.f32 %v3774_v23, %v6681_v8  ;;  %v4046_v55 = vsel %vm485_vm1, %v4044_v46, %v4045_v33 }
 0x4b2   : > { %v3911_v49 = vpop.f32.mrf.mxu2  ;;  %v3778_v8 = vadd.f32 %v3777_v53, %v6688_v1 }
 0x4b3   : > { %v4097_v4 = vmax.f32 %v4081_v20, 0.0  ;;  %v3912_v44 = vadd.f32 %v3911_v49, %v3863_v3  ;;  %v3865_v42 = vpop.f32.mrf.mxu1  ;;  %v3826_v31 = vpop.f32.mrf.mxu0 }
 0x4b4   : > { %v3866_v62 = vadd.f32 %v3865_v42, %v3817_v61  ;;  %v3824_v42 = vadd.f32 %v3823_v28, %v3775_v0  ;;  %v3827_v59 = vadd.f32 %v3826_v31, %v3778_v8 }
 0x4b5   : > { %4113 = vst [vmem:[%s5345_s7 + $0x30] sm:$0xff] %v4097_v4  ;;  %v3943_v40 = vmul.f32 %v6709_v29, %v3912_v44  ;;  %v6898_v4 = vld [vmem:[#allocation11_spill] sm:$0xff] }
 0x4b6   : > { %v3987_v44 = vunpack.c.l.bf16 %v6898_v4 }
 0x4b7   : > { %v3961_v60 = vadd.f32 %v6715_v54, %v3943_v40 }
 0x4b8   : > { %v4047_v14 = vrot.slane %v3987_v44, 1 }
 0x4b9   : > { %v4082_v50 = vadd.f32 %v4038_v15, %v3961_v60  ;;  %v3779_v60 = vpop.f32.mrf.mxu3 }
 0x4ba   : > { %v3914_v19 = vpop.f32.mrf.mxu2  ;;  %v4048_v56 = vsel %vm485_vm1, %v4045_v33, %v4047_v14  ;;  %v3780_v9 = vadd.f32 %v3779_v60, %v6693_v36  ;;  %v4052_v36 = vrot.slane %v3990_v5, 1 }
 0x4bb   : > { %v4098_v22 = vmax.f32 %v4082_v50, 0.0  ;;  %v3915_v13 = vadd.f32 %v3914_v19, %v3866_v62  ;;  %v3867_v18 = vpop.f32.mrf.mxu1  ;;  %v6899_v19 = vld [vmem:[#allocation9_spill] sm:$0xff] }
 0x4bc   : > { %v3868_v51 = vadd.f32 %v3867_v18, %v3819_v17  ;;  %v3988_v12 = vunpack.c.l.bf16 %v6899_v19  ;;  %v3989_v25 = vunpack.c.h.bf16 %v6899_v19 }
 0x4bd   : > { %4114 = vst [vmem:[%s5345_s7 + $0x38] sm:$0xff] %v4098_v22  ;;  %v3944_v2 = vmul.f32 %v6709_v29, %v3915_v13  ;;  %v3828_v13 = vpop.f32.mrf.mxu0 }
 0x4be   : > { %v4050_v39 = vrot.slane %v3989_v25, 1 }
 0x4bf   : > { %v3962_v34 = vadd.f32 %v6715_v54, %v3944_v2 }
 0x4c1   : > { %v4083_v43 = vadd.f32 %v4041_v32, %v3962_v34  ;;  %v4049_v32 = vrot.slane %v3988_v12, 1 }
 0x4c2   : > { %v3916_v16 = vpop.f32.mrf.mxu2 }
 0x4c3   : > { %v4099_v35 = vmax.f32 %v4083_v43, 0.0  ;;  %v3917_v24 = vadd.f32 %v3916_v16, %v3868_v51  ;;  %v3870_v63 = vpop.f32.mrf.mxu1  ;;  %v3782_v51 = vpop.f32.mrf.mxu3  ;;  %v4051_v16 = vsel %vm485_vm1, %v4049_v32, %v4050_v39 }
 0x4c4   : > { %v3871_v26 = vadd.f32 %v3870_v63, %v3822_v7  ;;  %v3783_v30 = vadd.f32 %v3782_v51, %v6698_v38 }
 0x4c5   : > { %4115 = vst [vmem:[%s5345_s7 + $0x40] sm:$0xff] %v4099_v35  ;;  %v3945_v47 = vmul.f32 %v6709_v29, %v3917_v24  ;;  %v3829_v35 = vadd.f32 %v3828_v13, %v3780_v9 }
 0x4c7   : > { %v3963_v27 = vadd.f32 %v6715_v54, %v3945_v47  ;;  %v3831_v47 = vpop.f32.mrf.mxu0 }
 0x4c8   : > { %v3832_v46 = vadd.f32 %v3831_v47, %v3783_v30 }
 0x4c9   : > { %v4084_v48 = vadd.f32 %v4043_v58, %v3963_v27 }
 0x4ca   : > { %v3919_v41 = vpop.f32.mrf.mxu2 }
 0x4cb   : > { %v4100_v6 = vmax.f32 %v4084_v48, 0.0  ;;  %v3920_v20 = vadd.f32 %v3919_v41, %v3871_v26  ;;  %v3872_v3 = vpop.f32.mrf.mxu1  ;;  %v4053_v48 = vsel %vm485_vm1, %v4050_v39, %v4052_v36  ;;  %v6901_v26 = vld [vmem:[#allocation10_spill] sm:$0xff]  ;;  %v3784_v0 = vpop.f32.mrf.mxu3 }
 0x4cc   : > { %v3873_v15 = vadd.f32 %v3872_v3, %v3824_v42  ;;  %v3991_v53 = vunpack.c.l.bf16 %v6901_v26  ;;  %v3992_v41 = vunpack.c.h.bf16 %v6901_v26  ;;  %v3785_v31 = vadd.f32 %v3784_v0, %v6702_v11 }
 0x4cd   : > { %4116 = vst [vmem:[%s5345_s7 + $0x48] sm:$0xff] %v4100_v6  ;;  %v3946_v49 = vmul.f32 %v6709_v29, %v3920_v20 }
 0x4ce   : > { %v4054_v3 = vrot.slane %v3991_v53, 1 }
 0x4cf   : > { %v3964_v40 = vadd.f32 %v6715_v54, %v3946_v49  ;;  %v4055_v49 = vrot.slane %v3992_v41, 1  ;;  %v3833_v44 = vpop.f32.mrf.mxu0 }
 0x4d0   : > { %v3834_v14 = vadd.f32 %v3833_v44, %v3785_v31 }
 0x4d1   : > { %v4085_v57 = vadd.f32 %v4046_v55, %v3964_v40  ;;  %v4056_v40 = vsel %vm485_vm1, %v4054_v3, %v4055_v49 }
 0x4d2   : > { %v3921_v45 = vpop.f32.mrf.mxu2 }
 0x4d3   : > { %v4101_v37 = vmax.f32 %v4085_v57, 0.0  ;;  %v3922_v61 = vadd.f32 %v3921_v45, %v3873_v15  ;;  %v3875_v50 = vpop.f32.mrf.mxu1  ;;  %v6902_v15 = vld [vmem:[#allocation15_spill] sm:$0xff] }
 0x4d4   : > { %v3876_v1 = vadd.f32 %v3875_v50, %v3827_v59  ;;  %v3993_v45 = vunpack.c.l.bf16 %v6902_v15 }
 0x4d5   : > { %4117 = vst [vmem:[%s5345_s7 + $0x50] sm:$0xff] %v4101_v37  ;;  %v3947_v62 = vmul.f32 %v6709_v29, %v3922_v61 }
 0x4d6   : > { %v4057_v11 = vrot.slane %v3993_v45, 1 }
 0x4d7   : > { %v3965_v22 = vadd.f32 %v6715_v54, %v3947_v62 }
 0x4d8   : > { %v4058_v19 = vsel %vm485_vm1, %v4055_v49, %v4057_v11 }
 0x4d9   : > { %v4086_v18 = vadd.f32 %v4048_v56, %v3965_v22 }
 0x4da   : > { %v3924_v2 = vpop.f32.mrf.mxu2 }
 0x4db   : > { %v4102_v17 = vmax.f32 %v4086_v18, 0.0  ;;  %v3925_v34 = vadd.f32 %v3924_v2, %v3876_v1  ;;  %v3877_v23 = vpop.f32.mrf.mxu1 }
 0x4dc   : > { %v3878_v63 = vadd.f32 %v3877_v23, %v3829_v35 }
 0x4dd   : > { %4118 = vst [vmem:[%s5345_s7 + $0x58] sm:$0xff] %v4102_v17  ;;  %v3948_v43 = vmul.f32 %v6709_v29, %v3925_v34 }
 0x4df   : > { %v3966_v24 = vadd.f32 %v6715_v54, %v3948_v43 }
 0x4e1   : > { %v4087_v28 = vadd.f32 %v4051_v16, %v3966_v24 }
 0x4e2   : > { %v3926_v58 = vpop.f32.mrf.mxu2 }
 0x4e3   : > { %v4103_v10 = vmax.f32 %v4087_v28, 0.0  ;;  %v3927_v21 = vadd.f32 %v3926_v58, %v3878_v63  ;;  %v3880_v7 = vpop.f32.mrf.mxu1 }
 0x4e4   : > { %v3881_v20 = vadd.f32 %v3880_v7, %v3832_v46 }
 0x4e5   : > { %4119 = vst [vmem:[%s5345_s7 + $0x60] sm:$0xff] %v4103_v10  ;;  %v3949_v27 = vmul.f32 %v6709_v29, %v3927_v21 }
 0x4e7   : > { %v3967_v33 = vadd.f32 %v6715_v54, %v3949_v27 }
 0x4e9   : > { %v4088_v6 = vadd.f32 %v4053_v48, %v3967_v33 }
 0x4ea   : > { %v3929_v38 = vpop.f32.mrf.mxu2 }
 0x4eb   : > { %v4104_v55 = vmax.f32 %v4088_v6, 0.0  ;;  %v3930_v4 = vadd.f32 %v3929_v38, %v3881_v20  ;;  %v3882_v57 = vpop.f32.mrf.mxu1 }
 0x4ec   : > { %v3883_v61 = vadd.f32 %v3882_v57, %v3834_v14 }
 0x4ed   : > { %4120 = vst [vmem:[%s5345_s7 + $0x68] sm:$0xff] %v4104_v55  ;;  %v3950_v42 = vmul.f32 %v6709_v29, %v3930_v4 }
 0x4ef   : > { %v3968_v8 = vadd.f32 %v6715_v54, %v3950_v42 }
 0x4f1   : > { %v4089_v37 = vadd.f32 %v4056_v40, %v3968_v8 }
 0x4f2   : > { %v3931_v60 = vpop.f32.mrf.mxu2 }
 0x4f3   : > { %v4105_v50 = vmax.f32 %v4089_v37, 0.0  ;;  %v3932_v62 = vadd.f32 %v3931_v60, %v3883_v61 }
 0x4f5   : > { %4121 = vst [vmem:[%s5345_s7 + $0x70] sm:$0xff] %v4105_v50  ;;  %v3951_v56 = vmul.f32 %v6709_v29, %v3932_v62 }
 0x4f7   : > { %v3969_v12 = vadd.f32 %v6715_v54, %v3951_v56 }
 0x4f9   : > { %v4090_v25 = vadd.f32 %v4058_v19, %v3969_v12 }
 0x4fb   : > { %v4106_v59 = vmax.f32 %v4090_v25, 0.0 }
 0x4fd   : > { %4122 = vst [vmem:[%s5345_s7 + $0x78] sm:$0xff] %v4106_v59 }
 0x4fe PF: > { %s14_s19 = sadd.s32 1, %s5244_s19   ;;  %s6903_s15 = smov %s5236_s17 }
 0x4ff   : > { %p11_p9 = scmp.ge.s32.totalorder %s14_s19, 6   ;;  %s6904_s16 = smov %s5240_s18 }
 0x500   : > { %s6905_s17 = smov %s6908_s20  ;;  %s6906_s18 = smov %s6912_s21 }
 0x501   :  { %13 = sbr.rel (!%p11_p9) target bundleno = 3 (0x3), region = 78 }

</bundles_post_ra>
